<compile_context>
chip_gen: v7x
topology: tpu7x:2x2x1
jax: 0.10.0
libtpu: 0.0.40
codegen_flags: <defaults>
</compile_context>

<pallas_src>
import functools

import jax
import jax.numpy as jnp
from jax import lax
from jax.experimental import pallas as pl
from jax.experimental.pallas import tpu as pltpu

NUM_CLASSES = 2  # len(INSTRUMENT_MAP)


# ---------------------------------------------------------------------------
# Fused Pallas kernel: whole network for one batch element, all in VMEM.
# ---------------------------------------------------------------------------
def _simple_cnn_kernel(x_ref, w1_ref, s1_ref, t1_ref,
                       w2_ref, s2_ref, t2_ref,
                       w3_ref, s3_ref, t3_ref,
                       wfct_ref, bfc_ref, out_ref,
                       pad1_ref, pad2_ref, pad3_ref, hmax1_ref, hmax2_ref,
                       *, H, W, C1, C2, C3):
    """x_ref: (1, H, W, 1); out_ref: (1, 1, NUM_CLASSES).

    pad1_ref:  (H+2,   W+2,   C1) zero-padded, channel-broadcast input
    pad2_ref:  (H/2+2, W/2+2, C1) zero-padded pooled layer-1 output
    pad3_ref:  (H/4+2, W/4+2, C2) zero-padded pooled layer-2 output
    hmax1_ref: (H/2,   W,     C1) layer-1 activations max-pooled along H
    hmax2_ref: (H/4,   W/2,   C2) layer-2 activations max-pooled along H
    """
    H2, W2 = H // 2, W // 2
    H3, W3 = H2 // 2, W2 // 2

    # Padded buffers.  Full zero-fill is kept (interiors are overwritten below);
    # border-only zeroing would need per-column masked stores and is not cheaper
    # at these shapes.  Not gated on program_id: scratch is per-core and the
    # batch axis may be megacore-sharded.
    pad1_ref[...] = jnp.zeros_like(pad1_ref)
    pad2_ref[...] = jnp.zeros_like(pad2_ref)
    pad3_ref[...] = jnp.zeros_like(pad3_ref)
    # Channel-broadcast the (H, W, 1) input once so the 9 tap loads below are
    # plain lane-aligned slices (no per-tap broadcast work inside the loop).
    pad1_ref[1:H + 1, 1:W + 1, :] = jnp.broadcast_to(x_ref[0], (H, W, C1))

    # ---- layer 1: 3x3 conv (Cin=1) as 9 whole-image MACs on the VPU
    # (K=9 cannot feed the MXU usefully); folded BN + ReLU applied once.
    acc1 = jnp.zeros((H, W, C1), jnp.float32)
    for dh in range(3):
        for dw in range(3):
            acc1 = acc1 + pad1_ref[dh:dh + H, dw:dw + W, :] * w1_ref[dh * 3 + dw]
    act1 = jnp.maximum(acc1 * s1_ref[...] + t1_ref[...], 0.0)         # (H, W, C1)

    # 2x2 stride-2 max pool: H-pool via whole-row maxima, W-pool via two
    # stride-2 reads, then ONE block store into the padded layer-2 input.
    for i in range(H2):
        hmax1_ref[i] = jnp.maximum(act1[2 * i], act1[2 * i + 1])      # (W, C1)
    pad2_ref[1:1 + H2, 1:1 + W2, :] = jnp.maximum(
        hmax1_ref[:, pl.ds(0, W2, 2), :], hmax1_ref[:, pl.ds(1, W2, 2), :])

    # ---- layer 2: 9 accumulated per-tap GEMMs on the MXU (M=H2*W2, K=C1, N=C2),
    # no im2col concatenation.
    acc2 = jnp.zeros((H2 * W2, C2), jnp.float32)
    for dh in range(3):
        for dw in range(3):
            p = pad2_ref[dh:dh + H2, dw:dw + W2, :]                   # (H2, W2, C1)
            acc2 = acc2 + jnp.dot(p.reshape(H2 * W2, C1), w2_ref[dh * 3 + dw],
                                  preferred_element_type=jnp.float32)
    act2 = jnp.maximum(acc2 * s2_ref[...] + t2_ref[...], 0.0)         # (H2*W2, C2)

    for i in range(H3):
        hmax2_ref[i] = jnp.maximum(act2[(2 * i) * W2:(2 * i + 1) * W2, :],
                                   act2[(2 * i + 1) * W2:(2 * i + 2) * W2, :])
    pad3_ref[1:1 + H3, 1:1 + W3, :] = jnp.maximum(
        hmax2_ref[:, pl.ds(0, W3, 2), :], hmax2_ref[:, pl.ds(1, W3, 2), :])

    # ---- layer 3: single pass of 9 accumulated per-tap GEMMs (M=H3*W3, K=C2),
    # folded BN + ReLU, fused with the adaptive (1,1) average pool.
    acc3 = jnp.zeros((H3 * W3, C3), jnp.float32)
    for dh in range(3):
        for dw in range(3):
            p = pad3_ref[dh:dh + H3, dw:dw + W3, :]                   # (H3, W3, C2)
            acc3 = acc3 + jnp.dot(p.reshape(H3 * W3, C2), w3_ref[dh * 3 + dw],
                                  preferred_element_type=jnp.float32)
    act3 = jnp.maximum(acc3 * s3_ref[...] + t3_ref[...], 0.0)         # (H3*W3, C3)
    avg = jnp.sum(act3, axis=0, keepdims=True) * (1.0 / float(H3 * W3))  # (1, C3)

    # ---- fc head on the VPU (avoids an M=1 MXU dot); wfct is (ncls, C3).
    logits = jnp.sum(avg * wfct_ref[...], axis=1)[None, :] + bfc_ref[...]
    out_ref[0] = logits


# ---------------------------------------------------------------------------
# Wrapper: one pallas_call for the whole network.
# ---------------------------------------------------------------------------
def simple_cnn_forward(x, p):
    """x: (B, H, W) float32 -> logits (B, NUM_CLASSES)."""
    B, H, W = x.shape
    assert H % 4 == 0 and W % 4 == 0, "H and W must be divisible by 4"
    C1 = p["w1"].shape[-1]
    C2 = p["w2"].shape[-1]
    C3 = p["w3"].shape[-1]
    ncls = p["wfc"].shape[-1]
    H2, W2, H3, W3 = H // 2, W // 2, H // 4, W // 4

    x4 = x[..., None]                          # unsqueeze(1) -> NHWC with C=1
    w1 = p["w1"].reshape(9, 1, C1)             # (tap, Cin=1, Cout)
    w2 = p["w2"].reshape(9, C1, C2)            # (tap, Cin, Cout) per-tap slabs
    w3 = p["w3"].reshape(9, C2, C3)
    wfct = p["wfc"].T                          # (ncls, C3) for the VPU fc head

    kernel = functools.partial(_simple_cnn_kernel, H=H, W=W, C1=C1, C2=C2, C3=C3)
    out = pl.pallas_call(
        kernel,
        out_shape=jax.ShapeDtypeStruct((B, 1, ncls), jnp.float32),
        grid_spec=pltpu.PrefetchScalarGridSpec(
            num_scalar_prefetch=0,
            grid=(B,),
            in_specs=[
                pl.BlockSpec((1, H, W, 1), lambda b: (b, 0, 0, 0)),
                pl.BlockSpec((9, 1, C1), lambda b: (0, 0, 0)),
                pl.BlockSpec((1, C1), lambda b: (0, 0)),
                pl.BlockSpec((1, C1), lambda b: (0, 0)),
                pl.BlockSpec((9, C1, C2), lambda b: (0, 0, 0)),
                pl.BlockSpec((1, C2), lambda b: (0, 0)),
                pl.BlockSpec((1, C2), lambda b: (0, 0)),
                pl.BlockSpec((9, C2, C3), lambda b: (0, 0, 0)),
                pl.BlockSpec((1, C3), lambda b: (0, 0)),
                pl.BlockSpec((1, C3), lambda b: (0, 0)),
                pl.BlockSpec((ncls, C3), lambda b: (0, 0)),
                pl.BlockSpec((1, ncls), lambda b: (0, 0)),
            ],
            out_specs=pl.BlockSpec((1, 1, ncls), lambda b: (b, 0, 0)),
            scratch_shapes=[
                pltpu.VMEM((H + 2, W + 2, C1), jnp.float32),
                pltpu.VMEM((H2 + 2, W2 + 2, C1), jnp.float32),
                pltpu.VMEM((H3 + 2, W3 + 2, C2), jnp.float32),
                pltpu.VMEM((H2, W, C1), jnp.float32),
                pltpu.VMEM((H3, W2, C2), jnp.float32),
            ],
        ),
        compiler_params=pltpu.CompilerParams(dimension_semantics=("parallel",)),
    )(x4, w1, p["s1"].reshape(1, C1), p["t1"].reshape(1, C1),
      w2, p["s2"].reshape(1, C2), p["t2"].reshape(1, C2),
      w3, p["s3"].reshape(1, C3), p["t3"].reshape(1, C3),
      wfct, p["bfc"].reshape(1, ncls))
    return out.reshape(B, ncls)


# ---------------------------------------------------------------------------
# Deterministic parameter construction (BN folded into scale/shift)
# ---------------------------------------------------------------------------
def _fold_bn(conv_bias, gamma, beta, mean, var, eps=1e-5):
    s = gamma / jnp.sqrt(var + eps)
    return s, s * (conv_bias - mean) + beta


def init_params(key):
    keys = jax.random.split(key, 12)

    def conv_p(kw, kb, cin, cout):
        w = 0.2 * jax.random.normal(kw, (3, 3, cin, cout), jnp.float32)
        b = 0.1 * jax.random.normal(kb, (cout,), jnp.float32)
        return w, b

    def bn_p(k, c):
        k1, k2, k3, k4 = jax.random.split(k, 4)
        gamma = 1.0 + 0.1 * jax.random.normal(k1, (c,), jnp.float32)
        beta = 0.1 * jax.random.normal(k2, (c,), jnp.float32)
        mean = 0.1 * jax.random.normal(k3, (c,), jnp.float32)
        var = 1.0 + 0.2 * jax.random.uniform(k4, (c,), jnp.float32)
        return gamma, beta, mean, var

    w1, b1 = conv_p(keys[0], keys[1], 1, 16)
    w2, b2 = conv_p(keys[2], keys[3], 16, 32)
    w3, b3 = conv_p(keys[4], keys[5], 32, 64)
    s1, t1 = _fold_bn(b1, *bn_p(keys[6], 16))
    s2, t2 = _fold_bn(b2, *bn_p(keys[7], 32))
    s3, t3 = _fold_bn(b3, *bn_p(keys[8], 64))
    wfc = 0.2 * jax.random.normal(keys[9], (64, NUM_CLASSES), jnp.float32)
    bfc = 0.1 * jax.random.normal(keys[10], (NUM_CLASSES,), jnp.float32)
    return dict(w1=w1, s1=s1, t1=t1, w2=w2, s2=s2, t2=t2,
                w3=w3, s3=s3, t3=t3, wfc=wfc, bfc=bfc)


# ---------------------------------------------------------------------------
# Pure-JAX reference (independent of the Pallas kernel)
# ---------------------------------------------------------------------------
def reference_forward(x, p):
    h = x[..., None]

    def block(h, w, s, t):
        y = lax.conv_general_dilated(h, w, (1, 1), "SAME",
                                     dimension_numbers=("NHWC", "HWIO", "NHWC"))
        y = jnp.maximum(y * s + t, 0.0)
        B, H, W, C = y.shape
        return y.reshape(B, H // 2, 2, W // 2, 2, C).max(axis=(2, 4))

    h = block(h, p["w1"], p["s1"], p["t1"])
    h = block(h, p["w2"], p["s2"], p["t2"])
    y = lax.conv_general_dilated(h, p["w3"], (1, 1), "SAME",
                                 dimension_numbers=("NHWC", "HWIO", "NHWC"))
    y = jnp.maximum(y * p["s3"] + p["t3"], 0.0)
    y = y.mean(axis=(1, 2))
    return y @ p["wfc"] + p["bfc"]


if __name__ == "__main__":
    key = jax.random.PRNGKey(0)
    kx, kp = jax.random.split(key)
    x = jax.random.normal(kx, (2, 16, 16), jnp.float32)   # (B, H, W) spectrogram-like
    params = init_params(kp)

    out = jax.jit(simple_cnn_forward)(x, params)
    out = jax.block_until_ready(out)
    assert out.shape == (2, NUM_CLASSES)

    ref = reference_forward(x, params)
    if not jnp.allclose(out, ref, atol=2e-3, rtol=2e-3):
        raise AssertionError(f"Pallas output mismatch:\n{out}\nvs reference:\n{ref}")
    print("KERNEL_OK")
</pallas_src>

<mosaic_0001>
module attributes {stable_mosaic.version = 11 : i64} {
  func.func @_simple_cnn_kernel(%arg0: i32, %arg1: memref<1x16x16x1xf32, #tpu.memory_space<vmem>>, %arg2: memref<9x1x16xf32, #tpu.memory_space<vmem>>, %arg3: memref<1x16xf32, #tpu.memory_space<vmem>>, %arg4: memref<1x16xf32, #tpu.memory_space<vmem>>, %arg5: memref<9x16x32xf32, #tpu.memory_space<vmem>>, %arg6: memref<1x32xf32, #tpu.memory_space<vmem>>, %arg7: memref<1x32xf32, #tpu.memory_space<vmem>>, %arg8: memref<9x32x64xf32, #tpu.memory_space<vmem>>, %arg9: memref<1x64xf32, #tpu.memory_space<vmem>>, %arg10: memref<1x64xf32, #tpu.memory_space<vmem>>, %arg11: memref<2x64xf32, #tpu.memory_space<vmem>>, %arg12: memref<1x2xf32, #tpu.memory_space<vmem>>, %arg13: memref<1x1x2xf32, #tpu.memory_space<vmem>>, %arg14: memref<18x18x16xf32, #tpu.memory_space<vmem>>, %arg15: memref<10x10x16xf32, #tpu.memory_space<vmem>>, %arg16: memref<6x6x32xf32, #tpu.memory_space<vmem>>, %arg17: memref<8x16x16xf32, #tpu.memory_space<vmem>>, %arg18: memref<4x8x32xf32, #tpu.memory_space<vmem>>) attributes {dimension_semantics = [#tpu.dimension_semantics<parallel>], iteration_bounds = array<i64: 2>, scalar_prefetch = 0 : i64, scratch_operands = 5 : i64, tpu.core_type = #tpu.core_type<tc>, window_params = [{transform_indices = @transform_0, window_bounds = array<i64: 1, 16, 16, 1>}, {pipeline_mode = #tpu.pipeline_mode<synchronous>, transform_indices = @transform_1, window_bounds = array<i64: 9, 1, 16>}, {pipeline_mode = #tpu.pipeline_mode<synchronous>, transform_indices = @transform_2, window_bounds = array<i64: 1, 16>}, {pipeline_mode = #tpu.pipeline_mode<synchronous>, transform_indices = @transform_3, window_bounds = array<i64: 1, 16>}, {pipeline_mode = #tpu.pipeline_mode<synchronous>, transform_indices = @transform_4, window_bounds = array<i64: 9, 16, 32>}, {pipeline_mode = #tpu.pipeline_mode<synchronous>, transform_indices = @transform_5, window_bounds = array<i64: 1, 32>}, {pipeline_mode = #tpu.pipeline_mode<synchronous>, transform_indices = @transform_6, window_bounds = array<i64: 1, 32>}, {pipeline_mode = #tpu.pipeline_mode<synchronous>, transform_indices = @transform_7, window_bounds = array<i64: 9, 32, 64>}, {pipeline_mode = #tpu.pipeline_mode<synchronous>, transform_indices = @transform_8, window_bounds = array<i64: 1, 64>}, {pipeline_mode = #tpu.pipeline_mode<synchronous>, transform_indices = @transform_9, window_bounds = array<i64: 1, 64>}, {pipeline_mode = #tpu.pipeline_mode<synchronous>, transform_indices = @transform_10, window_bounds = array<i64: 2, 64>}, {pipeline_mode = #tpu.pipeline_mode<synchronous>, transform_indices = @transform_11, window_bounds = array<i64: 1, 2>}, {transform_indices = @transform_12, window_bounds = array<i64: 1, 1, 2>}]} {
    %cst = arith.constant 0.000000e+00 : f32
    %0 = vector.broadcast %cst : f32 to vector<18x18x16xf32>
    %c0 = arith.constant 0 : index
    %c0_0 = arith.constant 0 : index
    %c0_1 = arith.constant 0 : index
    %1 = vector.load %arg14[%c0, %c0_0, %c0_1] : memref<18x18x16xf32, #tpu.memory_space<vmem>>, vector<18x18x16xf32>
    tpu.vector_store %arg14[%c0, %c0_0, %c0_1], %0 {strides = array<i32>} : memref<18x18x16xf32, #tpu.memory_space<vmem>>, vector<18x18x16xf32>,
    %cst_2 = arith.constant 0.000000e+00 : f32
    %2 = vector.broadcast %cst_2 : f32 to vector<10x10x16xf32>
    %c0_3 = arith.constant 0 : index
    %c0_4 = arith.constant 0 : index
    %c0_5 = arith.constant 0 : index
    %3 = vector.load %arg15[%c0_3, %c0_4, %c0_5] : memref<10x10x16xf32, #tpu.memory_space<vmem>>, vector<10x10x16xf32>
    tpu.vector_store %arg15[%c0_3, %c0_4, %c0_5], %2 {strides = array<i32>} : memref<10x10x16xf32, #tpu.memory_space<vmem>>, vector<10x10x16xf32>,
    %cst_6 = arith.constant 0.000000e+00 : f32
    %4 = vector.broadcast %cst_6 : f32 to vector<6x6x32xf32>
    %c0_7 = arith.constant 0 : index
    %c0_8 = arith.constant 0 : index
    %c0_9 = arith.constant 0 : index
    %5 = vector.load %arg16[%c0_7, %c0_8, %c0_9] : memref<6x6x32xf32, #tpu.memory_space<vmem>>, vector<6x6x32xf32>
    tpu.vector_store %arg16[%c0_7, %c0_8, %c0_9], %4 {strides = array<i32>} : memref<6x6x32xf32, #tpu.memory_space<vmem>>, vector<6x6x32xf32>,
    %c0_10 = arith.constant 0 : index
    %c0_11 = arith.constant 0 : index
    %c0_12 = arith.constant 0 : index
    %c0_13 = arith.constant 0 : index
    %6 = vector.load %arg1[%c0_10, %c0_11, %c0_12, %c0_13] : memref<1x16x16x1xf32, #tpu.memory_space<vmem>>, vector<1x16x16x1xf32>
    %7 = vector.shape_cast %6 : vector<1x16x16x1xf32> to vector<16x16x1xf32>
    %8 = vector.shape_cast %7 : vector<16x16x1xf32> to vector<16x16x1xf32>
    %9 = vector.broadcast %8 : vector<16x16x1xf32> to vector<16x16x16xf32>
    %c1 = arith.constant 1 : index
    %c1_14 = arith.constant 1 : index
    %c0_15 = arith.constant 0 : index
    %10 = vector.load %arg14[%c1, %c1_14, %c0_15] : memref<18x18x16xf32, #tpu.memory_space<vmem>>, vector<16x16x16xf32>
    tpu.vector_store %arg14[%c1, %c1_14, %c0_15], %9 {strides = array<i32>} : memref<18x18x16xf32, #tpu.memory_space<vmem>>, vector<16x16x16xf32>,
    %cst_16 = arith.constant 0.000000e+00 : f32
    %11 = vector.broadcast %cst_16 : f32 to vector<16x16x16xf32>
    %c0_17 = arith.constant 0 : index
    %c0_18 = arith.constant 0 : index
    %c0_19 = arith.constant 0 : index
    %12 = vector.load %arg14[%c0_17, %c0_18, %c0_19] : memref<18x18x16xf32, #tpu.memory_space<vmem>>, vector<16x16x16xf32>
    %c0_20 = arith.constant 0 : index
    %c0_21 = arith.constant 0 : index
    %c0_22 = arith.constant 0 : index
    %13 = vector.load %arg2[%c0_20, %c0_21, %c0_22] : memref<9x1x16xf32, #tpu.memory_space<vmem>>, vector<1x1x16xf32>
    %14 = vector.shape_cast %13 : vector<1x1x16xf32> to vector<1x16xf32>
    %15 = vector.shape_cast %14 : vector<1x16xf32> to vector<1x1x16xf32>
    %16 = vector.broadcast %15 : vector<1x1x16xf32> to vector<16x16x16xf32>
    %17 = arith.mulf %12, %16 : vector<16x16x16xf32>
    %18 = arith.addf %11, %17 : vector<16x16x16xf32>
    %c0_23 = arith.constant 0 : index
    %c1_24 = arith.constant 1 : index
    %c0_25 = arith.constant 0 : index
    %19 = vector.load %arg14[%c0_23, %c1_24, %c0_25] : memref<18x18x16xf32, #tpu.memory_space<vmem>>, vector<16x16x16xf32>
    %c1_26 = arith.constant 1 : index
    %c0_27 = arith.constant 0 : index
    %c0_28 = arith.constant 0 : index
    %20 = vector.load %arg2[%c1_26, %c0_27, %c0_28] : memref<9x1x16xf32, #tpu.memory_space<vmem>>, vector<1x1x16xf32>
    %21 = vector.shape_cast %20 : vector<1x1x16xf32> to vector<1x16xf32>
    %22 = vector.shape_cast %21 : vector<1x16xf32> to vector<1x1x16xf32>
    %23 = vector.broadcast %22 : vector<1x1x16xf32> to vector<16x16x16xf32>
    %24 = arith.mulf %19, %23 : vector<16x16x16xf32>
    %25 = arith.addf %18, %24 : vector<16x16x16xf32>
    %c0_29 = arith.constant 0 : index
    %c2 = arith.constant 2 : index
    %c0_30 = arith.constant 0 : index
    %26 = vector.load %arg14[%c0_29, %c2, %c0_30] : memref<18x18x16xf32, #tpu.memory_space<vmem>>, vector<16x16x16xf32>
    %c2_31 = arith.constant 2 : index
    %c0_32 = arith.constant 0 : index
    %c0_33 = arith.constant 0 : index
    %27 = vector.load %arg2[%c2_31, %c0_32, %c0_33] : memref<9x1x16xf32, #tpu.memory_space<vmem>>, vector<1x1x16xf32>
    %28 = vector.shape_cast %27 : vector<1x1x16xf32> to vector<1x16xf32>
    %29 = vector.shape_cast %28 : vector<1x16xf32> to vector<1x1x16xf32>
    %30 = vector.broadcast %29 : vector<1x1x16xf32> to vector<16x16x16xf32>
    %31 = arith.mulf %26, %30 : vector<16x16x16xf32>
    %32 = arith.addf %25, %31 : vector<16x16x16xf32>
    %c1_34 = arith.constant 1 : index
    %c0_35 = arith.constant 0 : index
    %c0_36 = arith.constant 0 : index
    %33 = vector.load %arg14[%c1_34, %c0_35, %c0_36] : memref<18x18x16xf32, #tpu.memory_space<vmem>>, vector<16x16x16xf32>
    %c3 = arith.constant 3 : index
    %c0_37 = arith.constant 0 : index
    %c0_38 = arith.constant 0 : index
    %34 = vector.load %arg2[%c3, %c0_37, %c0_38] : memref<9x1x16xf32, #tpu.memory_space<vmem>>, vector<1x1x16xf32>
    %35 = vector.shape_cast %34 : vector<1x1x16xf32> to vector<1x16xf32>
    %36 = vector.shape_cast %35 : vector<1x16xf32> to vector<1x1x16xf32>
    %37 = vector.broadcast %36 : vector<1x1x16xf32> to vector<16x16x16xf32>
    %38 = arith.mulf %33, %37 : vector<16x16x16xf32>
    %39 = arith.addf %32, %38 : vector<16x16x16xf32>
    %c1_39 = arith.constant 1 : index
    %c1_40 = arith.constant 1 : index
    %c0_41 = arith.constant 0 : index
    %40 = vector.load %arg14[%c1_39, %c1_40, %c0_41] : memref<18x18x16xf32, #tpu.memory_space<vmem>>, vector<16x16x16xf32>
    %c4 = arith.constant 4 : index
    %c0_42 = arith.constant 0 : index
    %c0_43 = arith.constant 0 : index
    %41 = vector.load %arg2[%c4, %c0_42, %c0_43] : memref<9x1x16xf32, #tpu.memory_space<vmem>>, vector<1x1x16xf32>
    %42 = vector.shape_cast %41 : vector<1x1x16xf32> to vector<1x16xf32>
    %43 = vector.shape_cast %42 : vector<1x16xf32> to vector<1x1x16xf32>
    %44 = vector.broadcast %43 : vector<1x1x16xf32> to vector<16x16x16xf32>
    %45 = arith.mulf %40, %44 : vector<16x16x16xf32>
    %46 = arith.addf %39, %45 : vector<16x16x16xf32>
    %c1_44 = arith.constant 1 : index
    %c2_45 = arith.constant 2 : index
    %c0_46 = arith.constant 0 : index
    %47 = vector.load %arg14[%c1_44, %c2_45, %c0_46] : memref<18x18x16xf32, #tpu.memory_space<vmem>>, vector<16x16x16xf32>
    %c5 = arith.constant 5 : index
    %c0_47 = arith.constant 0 : index
    %c0_48 = arith.constant 0 : index
    %48 = vector.load %arg2[%c5, %c0_47, %c0_48] : memref<9x1x16xf32, #tpu.memory_space<vmem>>, vector<1x1x16xf32>
    %49 = vector.shape_cast %48 : vector<1x1x16xf32> to vector<1x16xf32>
    %50 = vector.shape_cast %49 : vector<1x16xf32> to vector<1x1x16xf32>
    %51 = vector.broadcast %50 : vector<1x1x16xf32> to vector<16x16x16xf32>
    %52 = arith.mulf %47, %51 : vector<16x16x16xf32>
    %53 = arith.addf %46, %52 : vector<16x16x16xf32>
    %c2_49 = arith.constant 2 : index
    %c0_50 = arith.constant 0 : index
    %c0_51 = arith.constant 0 : index
    %54 = vector.load %arg14[%c2_49, %c0_50, %c0_51] : memref<18x18x16xf32, #tpu.memory_space<vmem>>, vector<16x16x16xf32>
    %c6 = arith.constant 6 : index
    %c0_52 = arith.constant 0 : index
    %c0_53 = arith.constant 0 : index
    %55 = vector.load %arg2[%c6, %c0_52, %c0_53] : memref<9x1x16xf32, #tpu.memory_space<vmem>>, vector<1x1x16xf32>
    %56 = vector.shape_cast %55 : vector<1x1x16xf32> to vector<1x16xf32>
    %57 = vector.shape_cast %56 : vector<1x16xf32> to vector<1x1x16xf32>
    %58 = vector.broadcast %57 : vector<1x1x16xf32> to vector<16x16x16xf32>
    %59 = arith.mulf %54, %58 : vector<16x16x16xf32>
    %60 = arith.addf %53, %59 : vector<16x16x16xf32>
    %c2_54 = arith.constant 2 : index
    %c1_55 = arith.constant 1 : index
    %c0_56 = arith.constant 0 : index
    %61 = vector.load %arg14[%c2_54, %c1_55, %c0_56] : memref<18x18x16xf32, #tpu.memory_space<vmem>>, vector<16x16x16xf32>
    %c7 = arith.constant 7 : index
    %c0_57 = arith.constant 0 : index
    %c0_58 = arith.constant 0 : index
    %62 = vector.load %arg2[%c7, %c0_57, %c0_58] : memref<9x1x16xf32, #tpu.memory_space<vmem>>, vector<1x1x16xf32>
    %63 = vector.shape_cast %62 : vector<1x1x16xf32> to vector<1x16xf32>
    %64 = vector.shape_cast %63 : vector<1x16xf32> to vector<1x1x16xf32>
    %65 = vector.broadcast %64 : vector<1x1x16xf32> to vector<16x16x16xf32>
    %66 = arith.mulf %61, %65 : vector<16x16x16xf32>
    %67 = arith.addf %60, %66 : vector<16x16x16xf32>
    %c2_59 = arith.constant 2 : index
    %c2_60 = arith.constant 2 : index
    %c0_61 = arith.constant 0 : index
    %68 = vector.load %arg14[%c2_59, %c2_60, %c0_61] : memref<18x18x16xf32, #tpu.memory_space<vmem>>, vector<16x16x16xf32>
    %c8 = arith.constant 8 : index
    %c0_62 = arith.constant 0 : index
    %c0_63 = arith.constant 0 : index
    %69 = vector.load %arg2[%c8, %c0_62, %c0_63] : memref<9x1x16xf32, #tpu.memory_space<vmem>>, vector<1x1x16xf32>
    %70 = vector.shape_cast %69 : vector<1x1x16xf32> to vector<1x16xf32>
    %71 = vector.shape_cast %70 : vector<1x16xf32> to vector<1x1x16xf32>
    %72 = vector.broadcast %71 : vector<1x1x16xf32> to vector<16x16x16xf32>
    %73 = arith.mulf %68, %72 : vector<16x16x16xf32>
    %74 = arith.addf %67, %73 : vector<16x16x16xf32>
    %c0_64 = arith.constant 0 : index
    %c0_65 = arith.constant 0 : index
    %75 = vector.load %arg3[%c0_64, %c0_65] : memref<1x16xf32, #tpu.memory_space<vmem>>, vector<1x16xf32>
    %76 = vector.shape_cast %75 : vector<1x16xf32> to vector<1x1x16xf32>
    %77 = vector.broadcast %76 : vector<1x1x16xf32> to vector<16x16x16xf32>
    %78 = arith.mulf %74, %77 : vector<16x16x16xf32>
    %c0_66 = arith.constant 0 : index
    %c0_67 = arith.constant 0 : index
    %79 = vector.load %arg4[%c0_66, %c0_67] : memref<1x16xf32, #tpu.memory_space<vmem>>, vector<1x16xf32>
    %80 = vector.shape_cast %79 : vector<1x16xf32> to vector<1x1x16xf32>
    %81 = vector.broadcast %80 : vector<1x1x16xf32> to vector<16x16x16xf32>
    %82 = arith.addf %78, %81 : vector<16x16x16xf32>
    %cst_68 = arith.constant 0.000000e+00 : f32
    %83 = vector.broadcast %cst_68 : f32 to vector<16x16x16xf32>
    %84 = arith.maximumf %82, %83 : vector<16x16x16xf32>
    %85 = vector.extract_strided_slice %84 {offsets = [0, 0, 0], sizes = [1, 16, 16], strides = [1, 1, 1]} : vector<16x16x16xf32> to vector<1x16x16xf32>
    %86 = vector.shape_cast %85 : vector<1x16x16xf32> to vector<16x16xf32>
    %87 = vector.extract_strided_slice %84 {offsets = [1, 0, 0], sizes = [1, 16, 16], strides = [1, 1, 1]} : vector<16x16x16xf32> to vector<1x16x16xf32>
    %88 = vector.shape_cast %87 : vector<1x16x16xf32> to vector<16x16xf32>
    %89 = arith.maximumf %86, %88 : vector<16x16xf32>
    %c0_69 = arith.constant 0 : index
    %c0_70 = arith.constant 0 : index
    %c0_71 = arith.constant 0 : index
    %90 = vector.load %arg17[%c0_69, %c0_70, %c0_71] : memref<8x16x16xf32, #tpu.memory_space<vmem>>, vector<1x16x16xf32>
    %91 = vector.shape_cast %90 : vector<1x16x16xf32> to vector<16x16xf32>
    %92 = vector.shape_cast %89 : vector<16x16xf32> to vector<1x16x16xf32>
    tpu.vector_store %arg17[%c0_69, %c0_70, %c0_71], %92 {strides = array<i32>} : memref<8x16x16xf32, #tpu.memory_space<vmem>>, vector<1x16x16xf32>,
    %93 = vector.extract_strided_slice %84 {offsets = [2, 0, 0], sizes = [1, 16, 16], strides = [1, 1, 1]} : vector<16x16x16xf32> to vector<1x16x16xf32>
    %94 = vector.shape_cast %93 : vector<1x16x16xf32> to vector<16x16xf32>
    %95 = vector.extract_strided_slice %84 {offsets = [3, 0, 0], sizes = [1, 16, 16], strides = [1, 1, 1]} : vector<16x16x16xf32> to vector<1x16x16xf32>
    %96 = vector.shape_cast %95 : vector<1x16x16xf32> to vector<16x16xf32>
    %97 = arith.maximumf %94, %96 : vector<16x16xf32>
    %c1_72 = arith.constant 1 : index
    %c0_73 = arith.constant 0 : index
    %c0_74 = arith.constant 0 : index
    %98 = vector.load %arg17[%c1_72, %c0_73, %c0_74] : memref<8x16x16xf32, #tpu.memory_space<vmem>>, vector<1x16x16xf32>
    %99 = vector.shape_cast %98 : vector<1x16x16xf32> to vector<16x16xf32>
    %100 = vector.shape_cast %97 : vector<16x16xf32> to vector<1x16x16xf32>
    tpu.vector_store %arg17[%c1_72, %c0_73, %c0_74], %100 {strides = array<i32>} : memref<8x16x16xf32, #tpu.memory_space<vmem>>, vector<1x16x16xf32>,
    %101 = vector.extract_strided_slice %84 {offsets = [4, 0, 0], sizes = [1, 16, 16], strides = [1, 1, 1]} : vector<16x16x16xf32> to vector<1x16x16xf32>
    %102 = vector.shape_cast %101 : vector<1x16x16xf32> to vector<16x16xf32>
    %103 = vector.extract_strided_slice %84 {offsets = [5, 0, 0], sizes = [1, 16, 16], strides = [1, 1, 1]} : vector<16x16x16xf32> to vector<1x16x16xf32>
    %104 = vector.shape_cast %103 : vector<1x16x16xf32> to vector<16x16xf32>
    %105 = arith.maximumf %102, %104 : vector<16x16xf32>
    %c2_75 = arith.constant 2 : index
    %c0_76 = arith.constant 0 : index
    %c0_77 = arith.constant 0 : index
    %106 = vector.load %arg17[%c2_75, %c0_76, %c0_77] : memref<8x16x16xf32, #tpu.memory_space<vmem>>, vector<1x16x16xf32>
    %107 = vector.shape_cast %106 : vector<1x16x16xf32> to vector<16x16xf32>
    %108 = vector.shape_cast %105 : vector<16x16xf32> to vector<1x16x16xf32>
    tpu.vector_store %arg17[%c2_75, %c0_76, %c0_77], %108 {strides = array<i32>} : memref<8x16x16xf32, #tpu.memory_space<vmem>>, vector<1x16x16xf32>,
    %109 = vector.extract_strided_slice %84 {offsets = [6, 0, 0], sizes = [1, 16, 16], strides = [1, 1, 1]} : vector<16x16x16xf32> to vector<1x16x16xf32>
    %110 = vector.shape_cast %109 : vector<1x16x16xf32> to vector<16x16xf32>
    %111 = vector.extract_strided_slice %84 {offsets = [7, 0, 0], sizes = [1, 16, 16], strides = [1, 1, 1]} : vector<16x16x16xf32> to vector<1x16x16xf32>
    %112 = vector.shape_cast %111 : vector<1x16x16xf32> to vector<16x16xf32>
    %113 = arith.maximumf %110, %112 : vector<16x16xf32>
    %c3_78 = arith.constant 3 : index
    %c0_79 = arith.constant 0 : index
    %c0_80 = arith.constant 0 : index
    %114 = vector.load %arg17[%c3_78, %c0_79, %c0_80] : memref<8x16x16xf32, #tpu.memory_space<vmem>>, vector<1x16x16xf32>
    %115 = vector.shape_cast %114 : vector<1x16x16xf32> to vector<16x16xf32>
    %116 = vector.shape_cast %113 : vector<16x16xf32> to vector<1x16x16xf32>
    tpu.vector_store %arg17[%c3_78, %c0_79, %c0_80], %116 {strides = array<i32>} : memref<8x16x16xf32, #tpu.memory_space<vmem>>, vector<1x16x16xf32>,
    %117 = vector.extract_strided_slice %84 {offsets = [8, 0, 0], sizes = [1, 16, 16], strides = [1, 1, 1]} : vector<16x16x16xf32> to vector<1x16x16xf32>
    %118 = vector.shape_cast %117 : vector<1x16x16xf32> to vector<16x16xf32>
    %119 = vector.extract_strided_slice %84 {offsets = [9, 0, 0], sizes = [1, 16, 16], strides = [1, 1, 1]} : vector<16x16x16xf32> to vector<1x16x16xf32>
    %120 = vector.shape_cast %119 : vector<1x16x16xf32> to vector<16x16xf32>
    %121 = arith.maximumf %118, %120 : vector<16x16xf32>
    %c4_81 = arith.constant 4 : index
    %c0_82 = arith.constant 0 : index
    %c0_83 = arith.constant 0 : index
    %122 = vector.load %arg17[%c4_81, %c0_82, %c0_83] : memref<8x16x16xf32, #tpu.memory_space<vmem>>, vector<1x16x16xf32>
    %123 = vector.shape_cast %122 : vector<1x16x16xf32> to vector<16x16xf32>
    %124 = vector.shape_cast %121 : vector<16x16xf32> to vector<1x16x16xf32>
    tpu.vector_store %arg17[%c4_81, %c0_82, %c0_83], %124 {strides = array<i32>} : memref<8x16x16xf32, #tpu.memory_space<vmem>>, vector<1x16x16xf32>,
    %125 = vector.extract_strided_slice %84 {offsets = [10, 0, 0], sizes = [1, 16, 16], strides = [1, 1, 1]} : vector<16x16x16xf32> to vector<1x16x16xf32>
    %126 = vector.shape_cast %125 : vector<1x16x16xf32> to vector<16x16xf32>
    %127 = vector.extract_strided_slice %84 {offsets = [11, 0, 0], sizes = [1, 16, 16], strides = [1, 1, 1]} : vector<16x16x16xf32> to vector<1x16x16xf32>
    %128 = vector.shape_cast %127 : vector<1x16x16xf32> to vector<16x16xf32>
    %129 = arith.maximumf %126, %128 : vector<16x16xf32>
    %c5_84 = arith.constant 5 : index
    %c0_85 = arith.constant 0 : index
    %c0_86 = arith.constant 0 : index
    %130 = vector.load %arg17[%c5_84, %c0_85, %c0_86] : memref<8x16x16xf32, #tpu.memory_space<vmem>>, vector<1x16x16xf32>
    %131 = vector.shape_cast %130 : vector<1x16x16xf32> to vector<16x16xf32>
    %132 = vector.shape_cast %129 : vector<16x16xf32> to vector<1x16x16xf32>
    tpu.vector_store %arg17[%c5_84, %c0_85, %c0_86], %132 {strides = array<i32>} : memref<8x16x16xf32, #tpu.memory_space<vmem>>, vector<1x16x16xf32>,
    %133 = vector.extract_strided_slice %84 {offsets = [12, 0, 0], sizes = [1, 16, 16], strides = [1, 1, 1]} : vector<16x16x16xf32> to vector<1x16x16xf32>
    %134 = vector.shape_cast %133 : vector<1x16x16xf32> to vector<16x16xf32>
    %135 = vector.extract_strided_slice %84 {offsets = [13, 0, 0], sizes = [1, 16, 16], strides = [1, 1, 1]} : vector<16x16x16xf32> to vector<1x16x16xf32>
    %136 = vector.shape_cast %135 : vector<1x16x16xf32> to vector<16x16xf32>
    %137 = arith.maximumf %134, %136 : vector<16x16xf32>
    %c6_87 = arith.constant 6 : index
    %c0_88 = arith.constant 0 : index
    %c0_89 = arith.constant 0 : index
    %138 = vector.load %arg17[%c6_87, %c0_88, %c0_89] : memref<8x16x16xf32, #tpu.memory_space<vmem>>, vector<1x16x16xf32>
    %139 = vector.shape_cast %138 : vector<1x16x16xf32> to vector<16x16xf32>
    %140 = vector.shape_cast %137 : vector<16x16xf32> to vector<1x16x16xf32>
    tpu.vector_store %arg17[%c6_87, %c0_88, %c0_89], %140 {strides = array<i32>} : memref<8x16x16xf32, #tpu.memory_space<vmem>>, vector<1x16x16xf32>,
    %141 = vector.extract_strided_slice %84 {offsets = [14, 0, 0], sizes = [1, 16, 16], strides = [1, 1, 1]} : vector<16x16x16xf32> to vector<1x16x16xf32>
    %142 = vector.shape_cast %141 : vector<1x16x16xf32> to vector<16x16xf32>
    %143 = vector.extract_strided_slice %84 {offsets = [15, 0, 0], sizes = [1, 16, 16], strides = [1, 1, 1]} : vector<16x16x16xf32> to vector<1x16x16xf32>
    %144 = vector.shape_cast %143 : vector<1x16x16xf32> to vector<16x16xf32>
    %145 = arith.maximumf %142, %144 : vector<16x16xf32>
    %c7_90 = arith.constant 7 : index
    %c0_91 = arith.constant 0 : index
    %c0_92 = arith.constant 0 : index
    %146 = vector.load %arg17[%c7_90, %c0_91, %c0_92] : memref<8x16x16xf32, #tpu.memory_space<vmem>>, vector<1x16x16xf32>
    %147 = vector.shape_cast %146 : vector<1x16x16xf32> to vector<16x16xf32>
    %148 = vector.shape_cast %145 : vector<16x16xf32> to vector<1x16x16xf32>
    tpu.vector_store %arg17[%c7_90, %c0_91, %c0_92], %148 {strides = array<i32>} : memref<8x16x16xf32, #tpu.memory_space<vmem>>, vector<1x16x16xf32>,
    %c0_93 = arith.constant 0 : index
    %c0_94 = arith.constant 0 : index
    %c0_95 = arith.constant 0 : index
    %149 = tpu.strided_load %arg17[%c0_93, %c0_94, %c0_95] {strides = array<i32: 1, 2, 1>} : memref<8x16x16xf32, #tpu.memory_space<vmem>>, vector<8x8x16xf32>
    %c0_96 = arith.constant 0 : index
    %c1_97 = arith.constant 1 : index
    %c0_98 = arith.constant 0 : index
    %150 = tpu.strided_load %arg17[%c0_96, %c1_97, %c0_98] {strides = array<i32: 1, 2, 1>} : memref<8x16x16xf32, #tpu.memory_space<vmem>>, vector<8x8x16xf32>
    %151 = arith.maximumf %149, %150 : vector<8x8x16xf32>
    %c1_99 = arith.constant 1 : index
    %c1_100 = arith.constant 1 : index
    %c0_101 = arith.constant 0 : index
    %152 = vector.load %arg15[%c1_99, %c1_100, %c0_101] : memref<10x10x16xf32, #tpu.memory_space<vmem>>, vector<8x8x16xf32>
    tpu.vector_store %arg15[%c1_99, %c1_100, %c0_101], %151 {strides = array<i32>} : memref<10x10x16xf32, #tpu.memory_space<vmem>>, vector<8x8x16xf32>,
    %cst_102 = arith.constant 0.000000e+00 : f32
    %153 = vector.broadcast %cst_102 : f32 to vector<64x32xf32>
    %c0_103 = arith.constant 0 : index
    %c0_104 = arith.constant 0 : index
    %c0_105 = arith.constant 0 : index
    %154 = vector.load %arg15[%c0_103, %c0_104, %c0_105] : memref<10x10x16xf32, #tpu.memory_space<vmem>>, vector<8x8x16xf32>
    %155 = vector.shape_cast %154 : vector<8x8x16xf32> to vector<64x16xf32>
    %c0_106 = arith.constant 0 : index
    %c0_107 = arith.constant 0 : index
    %c0_108 = arith.constant 0 : index
    %156 = vector.load %arg5[%c0_106, %c0_107, %c0_108] : memref<9x16x32xf32, #tpu.memory_space<vmem>>, vector<1x16x32xf32>
    %157 = vector.shape_cast %156 : vector<1x16x32xf32> to vector<16x32xf32>
    %cst_109 = arith.constant dense<0.000000e+00> : vector<64x32xf32>
    %158 = tpu.matmul %155, %157, %cst_109 {dimension_numbers = #tpu.dot_dimension_numbers<[1], [0], [0], [1], [0, 0, 1, 1], [], []>} : vector<64x16xf32>, vector<16x32xf32>, vector<64x32xf32> -> vector<64x32xf32>
    %159 = arith.addf %153, %158 : vector<64x32xf32>
    %c0_110 = arith.constant 0 : index
    %c1_111 = arith.constant 1 : index
    %c0_112 = arith.constant 0 : index
    %160 = vector.load %arg15[%c0_110, %c1_111, %c0_112] : memref<10x10x16xf32, #tpu.memory_space<vmem>>, vector<8x8x16xf32>
    %161 = vector.shape_cast %160 : vector<8x8x16xf32> to vector<64x16xf32>
    %c1_113 = arith.constant 1 : index
    %c0_114 = arith.constant 0 : index
    %c0_115 = arith.constant 0 : index
    %162 = vector.load %arg5[%c1_113, %c0_114, %c0_115] : memref<9x16x32xf32, #tpu.memory_space<vmem>>, vector<1x16x32xf32>
    %163 = vector.shape_cast %162 : vector<1x16x32xf32> to vector<16x32xf32>
    %cst_116 = arith.constant dense<0.000000e+00> : vector<64x32xf32>
    %164 = tpu.matmul %161, %163, %cst_116 {dimension_numbers = #tpu.dot_dimension_numbers<[1], [0], [0], [1], [0, 0, 1, 1], [], []>} : vector<64x16xf32>, vector<16x32xf32>, vector<64x32xf32> -> vector<64x32xf32>
    %165 = arith.addf %159, %164 : vector<64x32xf32>
    %c0_117 = arith.constant 0 : index
    %c2_118 = arith.constant 2 : index
    %c0_119 = arith.constant 0 : index
    %166 = vector.load %arg15[%c0_117, %c2_118, %c0_119] : memref<10x10x16xf32, #tpu.memory_space<vmem>>, vector<8x8x16xf32>
    %167 = vector.shape_cast %166 : vector<8x8x16xf32> to vector<64x16xf32>
    %c2_120 = arith.constant 2 : index
    %c0_121 = arith.constant 0 : index
    %c0_122 = arith.constant 0 : index
    %168 = vector.load %arg5[%c2_120, %c0_121, %c0_122] : memref<9x16x32xf32, #tpu.memory_space<vmem>>, vector<1x16x32xf32>
    %169 = vector.shape_cast %168 : vector<1x16x32xf32> to vector<16x32xf32>
    %cst_123 = arith.constant dense<0.000000e+00> : vector<64x32xf32>
    %170 = tpu.matmul %167, %169, %cst_123 {dimension_numbers = #tpu.dot_dimension_numbers<[1], [0], [0], [1], [0, 0, 1, 1], [], []>} : vector<64x16xf32>, vector<16x32xf32>, vector<64x32xf32> -> vector<64x32xf32>
    %171 = arith.addf %165, %170 : vector<64x32xf32>
    %c1_124 = arith.constant 1 : index
    %c0_125 = arith.constant 0 : index
    %c0_126 = arith.constant 0 : index
    %172 = vector.load %arg15[%c1_124, %c0_125, %c0_126] : memref<10x10x16xf32, #tpu.memory_space<vmem>>, vector<8x8x16xf32>
    %173 = vector.shape_cast %172 : vector<8x8x16xf32> to vector<64x16xf32>
    %c3_127 = arith.constant 3 : index
    %c0_128 = arith.constant 0 : index
    %c0_129 = arith.constant 0 : index
    %174 = vector.load %arg5[%c3_127, %c0_128, %c0_129] : memref<9x16x32xf32, #tpu.memory_space<vmem>>, vector<1x16x32xf32>
    %175 = vector.shape_cast %174 : vector<1x16x32xf32> to vector<16x32xf32>
    %cst_130 = arith.constant dense<0.000000e+00> : vector<64x32xf32>
    %176 = tpu.matmul %173, %175, %cst_130 {dimension_numbers = #tpu.dot_dimension_numbers<[1], [0], [0], [1], [0, 0, 1, 1], [], []>} : vector<64x16xf32>, vector<16x32xf32>, vector<64x32xf32> -> vector<64x32xf32>
    %177 = arith.addf %171, %176 : vector<64x32xf32>
    %c1_131 = arith.constant 1 : index
    %c1_132 = arith.constant 1 : index
    %c0_133 = arith.constant 0 : index
    %178 = vector.load %arg15[%c1_131, %c1_132, %c0_133] : memref<10x10x16xf32, #tpu.memory_space<vmem>>, vector<8x8x16xf32>
    %179 = vector.shape_cast %178 : vector<8x8x16xf32> to vector<64x16xf32>
    %c4_134 = arith.constant 4 : index
    %c0_135 = arith.constant 0 : index
    %c0_136 = arith.constant 0 : index
    %180 = vector.load %arg5[%c4_134, %c0_135, %c0_136] : memref<9x16x32xf32, #tpu.memory_space<vmem>>, vector<1x16x32xf32>
    %181 = vector.shape_cast %180 : vector<1x16x32xf32> to vector<16x32xf32>
    %cst_137 = arith.constant dense<0.000000e+00> : vector<64x32xf32>
    %182 = tpu.matmul %179, %181, %cst_137 {dimension_numbers = #tpu.dot_dimension_numbers<[1], [0], [0], [1], [0, 0, 1, 1], [], []>} : vector<64x16xf32>, vector<16x32xf32>, vector<64x32xf32> -> vector<64x32xf32>
    %183 = arith.addf %177, %182 : vector<64x32xf32>
    %c1_138 = arith.constant 1 : index
    %c2_139 = arith.constant 2 : index
    %c0_140 = arith.constant 0 : index
    %184 = vector.load %arg15[%c1_138, %c2_139, %c0_140] : memref<10x10x16xf32, #tpu.memory_space<vmem>>, vector<8x8x16xf32>
    %185 = vector.shape_cast %184 : vector<8x8x16xf32> to vector<64x16xf32>
    %c5_141 = arith.constant 5 : index
    %c0_142 = arith.constant 0 : index
    %c0_143 = arith.constant 0 : index
    %186 = vector.load %arg5[%c5_141, %c0_142, %c0_143] : memref<9x16x32xf32, #tpu.memory_space<vmem>>, vector<1x16x32xf32>
    %187 = vector.shape_cast %186 : vector<1x16x32xf32> to vector<16x32xf32>
    %cst_144 = arith.constant dense<0.000000e+00> : vector<64x32xf32>
    %188 = tpu.matmul %185, %187, %cst_144 {dimension_numbers = #tpu.dot_dimension_numbers<[1], [0], [0], [1], [0, 0, 1, 1], [], []>} : vector<64x16xf32>, vector<16x32xf32>, vector<64x32xf32> -> vector<64x32xf32>
    %189 = arith.addf %183, %188 : vector<64x32xf32>
    %c2_145 = arith.constant 2 : index
    %c0_146 = arith.constant 0 : index
    %c0_147 = arith.constant 0 : index
    %190 = vector.load %arg15[%c2_145, %c0_146, %c0_147] : memref<10x10x16xf32, #tpu.memory_space<vmem>>, vector<8x8x16xf32>
    %191 = vector.shape_cast %190 : vector<8x8x16xf32> to vector<64x16xf32>
    %c6_148 = arith.constant 6 : index
    %c0_149 = arith.constant 0 : index
    %c0_150 = arith.constant 0 : index
    %192 = vector.load %arg5[%c6_148, %c0_149, %c0_150] : memref<9x16x32xf32, #tpu.memory_space<vmem>>, vector<1x16x32xf32>
    %193 = vector.shape_cast %192 : vector<1x16x32xf32> to vector<16x32xf32>
    %cst_151 = arith.constant dense<0.000000e+00> : vector<64x32xf32>
    %194 = tpu.matmul %191, %193, %cst_151 {dimension_numbers = #tpu.dot_dimension_numbers<[1], [0], [0], [1], [0, 0, 1, 1], [], []>} : vector<64x16xf32>, vector<16x32xf32>, vector<64x32xf32> -> vector<64x32xf32>
    %195 = arith.addf %189, %194 : vector<64x32xf32>
    %c2_152 = arith.constant 2 : index
    %c1_153 = arith.constant 1 : index
    %c0_154 = arith.constant 0 : index
    %196 = vector.load %arg15[%c2_152, %c1_153, %c0_154] : memref<10x10x16xf32, #tpu.memory_space<vmem>>, vector<8x8x16xf32>
    %197 = vector.shape_cast %196 : vector<8x8x16xf32> to vector<64x16xf32>
    %c7_155 = arith.constant 7 : index
    %c0_156 = arith.constant 0 : index
    %c0_157 = arith.constant 0 : index
    %198 = vector.load %arg5[%c7_155, %c0_156, %c0_157] : memref<9x16x32xf32, #tpu.memory_space<vmem>>, vector<1x16x32xf32>
    %199 = vector.shape_cast %198 : vector<1x16x32xf32> to vector<16x32xf32>
    %cst_158 = arith.constant dense<0.000000e+00> : vector<64x32xf32>
    %200 = tpu.matmul %197, %199, %cst_158 {dimension_numbers = #tpu.dot_dimension_numbers<[1], [0], [0], [1], [0, 0, 1, 1], [], []>} : vector<64x16xf32>, vector<16x32xf32>, vector<64x32xf32> -> vector<64x32xf32>
    %201 = arith.addf %195, %200 : vector<64x32xf32>
    %c2_159 = arith.constant 2 : index
    %c2_160 = arith.constant 2 : index
    %c0_161 = arith.constant 0 : index
    %202 = vector.load %arg15[%c2_159, %c2_160, %c0_161] : memref<10x10x16xf32, #tpu.memory_space<vmem>>, vector<8x8x16xf32>
    %203 = vector.shape_cast %202 : vector<8x8x16xf32> to vector<64x16xf32>
    %c8_162 = arith.constant 8 : index
    %c0_163 = arith.constant 0 : index
    %c0_164 = arith.constant 0 : index
    %204 = vector.load %arg5[%c8_162, %c0_163, %c0_164] : memref<9x16x32xf32, #tpu.memory_space<vmem>>, vector<1x16x32xf32>
    %205 = vector.shape_cast %204 : vector<1x16x32xf32> to vector<16x32xf32>
    %cst_165 = arith.constant dense<0.000000e+00> : vector<64x32xf32>
    %206 = tpu.matmul %203, %205, %cst_165 {dimension_numbers = #tpu.dot_dimension_numbers<[1], [0], [0], [1], [0, 0, 1, 1], [], []>} : vector<64x16xf32>, vector<16x32xf32>, vector<64x32xf32> -> vector<64x32xf32>
    %207 = arith.addf %201, %206 : vector<64x32xf32>
    %c0_166 = arith.constant 0 : index
    %c0_167 = arith.constant 0 : index
    %208 = vector.load %arg6[%c0_166, %c0_167] : memref<1x32xf32, #tpu.memory_space<vmem>>, vector<1x32xf32>
    %209 = vector.broadcast %208 : vector<1x32xf32> to vector<64x32xf32>
    %210 = arith.mulf %207, %209 : vector<64x32xf32>
    %c0_168 = arith.constant 0 : index
    %c0_169 = arith.constant 0 : index
    %211 = vector.load %arg7[%c0_168, %c0_169] : memref<1x32xf32, #tpu.memory_space<vmem>>, vector<1x32xf32>
    %212 = vector.broadcast %211 : vector<1x32xf32> to vector<64x32xf32>
    %213 = arith.addf %210, %212 : vector<64x32xf32>
    %cst_170 = arith.constant 0.000000e+00 : f32
    %214 = vector.broadcast %cst_170 : f32 to vector<64x32xf32>
    %215 = arith.maximumf %213, %214 : vector<64x32xf32>
    %216 = vector.extract_strided_slice %215 {offsets = [0, 0], sizes = [8, 32], strides = [1, 1]} : vector<64x32xf32> to vector<8x32xf32>
    %217 = vector.extract_strided_slice %215 {offsets = [8, 0], sizes = [8, 32], strides = [1, 1]} : vector<64x32xf32> to vector<8x32xf32>
    %218 = arith.maximumf %216, %217 : vector<8x32xf32>
    %c0_171 = arith.constant 0 : index
    %c0_172 = arith.constant 0 : index
    %c0_173 = arith.constant 0 : index
    %219 = vector.load %arg18[%c0_171, %c0_172, %c0_173] : memref<4x8x32xf32, #tpu.memory_space<vmem>>, vector<1x8x32xf32>
    %220 = vector.shape_cast %219 : vector<1x8x32xf32> to vector<8x32xf32>
    %221 = vector.shape_cast %218 : vector<8x32xf32> to vector<1x8x32xf32>
    tpu.vector_store %arg18[%c0_171, %c0_172, %c0_173], %221 {strides = array<i32>} : memref<4x8x32xf32, #tpu.memory_space<vmem>>, vector<1x8x32xf32>,
    %222 = vector.extract_strided_slice %215 {offsets = [16, 0], sizes = [8, 32], strides = [1, 1]} : vector<64x32xf32> to vector<8x32xf32>
    %223 = vector.extract_strided_slice %215 {offsets = [24, 0], sizes = [8, 32], strides = [1, 1]} : vector<64x32xf32> to vector<8x32xf32>
    %224 = arith.maximumf %222, %223 : vector<8x32xf32>
    %c1_174 = arith.constant 1 : index
    %c0_175 = arith.constant 0 : index
    %c0_176 = arith.constant 0 : index
    %225 = vector.load %arg18[%c1_174, %c0_175, %c0_176] : memref<4x8x32xf32, #tpu.memory_space<vmem>>, vector<1x8x32xf32>
    %226 = vector.shape_cast %225 : vector<1x8x32xf32> to vector<8x32xf32>
    %227 = vector.shape_cast %224 : vector<8x32xf32> to vector<1x8x32xf32>
    tpu.vector_store %arg18[%c1_174, %c0_175, %c0_176], %227 {strides = array<i32>} : memref<4x8x32xf32, #tpu.memory_space<vmem>>, vector<1x8x32xf32>,
    %228 = vector.extract_strided_slice %215 {offsets = [32, 0], sizes = [8, 32], strides = [1, 1]} : vector<64x32xf32> to vector<8x32xf32>
    %229 = vector.extract_strided_slice %215 {offsets = [40, 0], sizes = [8, 32], strides = [1, 1]} : vector<64x32xf32> to vector<8x32xf32>
    %230 = arith.maximumf %228, %229 : vector<8x32xf32>
    %c2_177 = arith.constant 2 : index
    %c0_178 = arith.constant 0 : index
    %c0_179 = arith.constant 0 : index
    %231 = vector.load %arg18[%c2_177, %c0_178, %c0_179] : memref<4x8x32xf32, #tpu.memory_space<vmem>>, vector<1x8x32xf32>
    %232 = vector.shape_cast %231 : vector<1x8x32xf32> to vector<8x32xf32>
    %233 = vector.shape_cast %230 : vector<8x32xf32> to vector<1x8x32xf32>
    tpu.vector_store %arg18[%c2_177, %c0_178, %c0_179], %233 {strides = array<i32>} : memref<4x8x32xf32, #tpu.memory_space<vmem>>, vector<1x8x32xf32>,
    %234 = vector.extract_strided_slice %215 {offsets = [48, 0], sizes = [8, 32], strides = [1, 1]} : vector<64x32xf32> to vector<8x32xf32>
    %235 = vector.extract_strided_slice %215 {offsets = [56, 0], sizes = [8, 32], strides = [1, 1]} : vector<64x32xf32> to vector<8x32xf32>
    %236 = arith.maximumf %234, %235 : vector<8x32xf32>
    %c3_180 = arith.constant 3 : index
    %c0_181 = arith.constant 0 : index
    %c0_182 = arith.constant 0 : index
    %237 = vector.load %arg18[%c3_180, %c0_181, %c0_182] : memref<4x8x32xf32, #tpu.memory_space<vmem>>, vector<1x8x32xf32>
    %238 = vector.shape_cast %237 : vector<1x8x32xf32> to vector<8x32xf32>
    %239 = vector.shape_cast %236 : vector<8x32xf32> to vector<1x8x32xf32>
    tpu.vector_store %arg18[%c3_180, %c0_181, %c0_182], %239 {strides = array<i32>} : memref<4x8x32xf32, #tpu.memory_space<vmem>>, vector<1x8x32xf32>,
    %c0_183 = arith.constant 0 : index
    %c0_184 = arith.constant 0 : index
    %c0_185 = arith.constant 0 : index
    %240 = tpu.strided_load %arg18[%c0_183, %c0_184, %c0_185] {strides = array<i32: 1, 2, 1>} : memref<4x8x32xf32, #tpu.memory_space<vmem>>, vector<4x4x32xf32>
    %c0_186 = arith.constant 0 : index
    %c1_187 = arith.constant 1 : index
    %c0_188 = arith.constant 0 : index
    %241 = tpu.strided_load %arg18[%c0_186, %c1_187, %c0_188] {strides = array<i32: 1, 2, 1>} : memref<4x8x32xf32, #tpu.memory_space<vmem>>, vector<4x4x32xf32>
    %242 = arith.maximumf %240, %241 : vector<4x4x32xf32>
    %c1_189 = arith.constant 1 : index
    %c1_190 = arith.constant 1 : index
    %c0_191 = arith.constant 0 : index
    %243 = vector.load %arg16[%c1_189, %c1_190, %c0_191] : memref<6x6x32xf32, #tpu.memory_space<vmem>>, vector<4x4x32xf32>
    tpu.vector_store %arg16[%c1_189, %c1_190, %c0_191], %242 {strides = array<i32>} : memref<6x6x32xf32, #tpu.memory_space<vmem>>, vector<4x4x32xf32>,
    %cst_192 = arith.constant 0.000000e+00 : f32
    %244 = vector.broadcast %cst_192 : f32 to vector<16x64xf32>
    %c0_193 = arith.constant 0 : index
    %c0_194 = arith.constant 0 : index
    %c0_195 = arith.constant 0 : index
    %245 = vector.load %arg16[%c0_193, %c0_194, %c0_195] : memref<6x6x32xf32, #tpu.memory_space<vmem>>, vector<4x4x32xf32>
    %246 = vector.shape_cast %245 : vector<4x4x32xf32> to vector<16x32xf32>
    %c0_196 = arith.constant 0 : index
    %c0_197 = arith.constant 0 : index
    %c0_198 = arith.constant 0 : index
    %247 = vector.load %arg8[%c0_196, %c0_197, %c0_198] : memref<9x32x64xf32, #tpu.memory_space<vmem>>, vector<1x32x64xf32>
    %248 = vector.shape_cast %247 : vector<1x32x64xf32> to vector<32x64xf32>
    %cst_199 = arith.constant dense<0.000000e+00> : vector<16x64xf32>
    %249 = tpu.matmul %246, %248, %cst_199 {dimension_numbers = #tpu.dot_dimension_numbers<[1], [0], [0], [1], [0, 0, 1, 1], [], []>} : vector<16x32xf32>, vector<32x64xf32>, vector<16x64xf32> -> vector<16x64xf32>
    %250 = arith.addf %244, %249 : vector<16x64xf32>
    %c0_200 = arith.constant 0 : index
    %c1_201 = arith.constant 1 : index
    %c0_202 = arith.constant 0 : index
    %251 = vector.load %arg16[%c0_200, %c1_201, %c0_202] : memref<6x6x32xf32, #tpu.memory_space<vmem>>, vector<4x4x32xf32>
    %252 = vector.shape_cast %251 : vector<4x4x32xf32> to vector<16x32xf32>
    %c1_203 = arith.constant 1 : index
    %c0_204 = arith.constant 0 : index
    %c0_205 = arith.constant 0 : index
    %253 = vector.load %arg8[%c1_203, %c0_204, %c0_205] : memref<9x32x64xf32, #tpu.memory_space<vmem>>, vector<1x32x64xf32>
    %254 = vector.shape_cast %253 : vector<1x32x64xf32> to vector<32x64xf32>
    %cst_206 = arith.constant dense<0.000000e+00> : vector<16x64xf32>
    %255 = tpu.matmul %252, %254, %cst_206 {dimension_numbers = #tpu.dot_dimension_numbers<[1], [0], [0], [1], [0, 0, 1, 1], [], []>} : vector<16x32xf32>, vector<32x64xf32>, vector<16x64xf32> -> vector<16x64xf32>
    %256 = arith.addf %250, %255 : vector<16x64xf32>
    %c0_207 = arith.constant 0 : index
    %c2_208 = arith.constant 2 : index
    %c0_209 = arith.constant 0 : index
    %257 = vector.load %arg16[%c0_207, %c2_208, %c0_209] : memref<6x6x32xf32, #tpu.memory_space<vmem>>, vector<4x4x32xf32>
    %258 = vector.shape_cast %257 : vector<4x4x32xf32> to vector<16x32xf32>
    %c2_210 = arith.constant 2 : index
    %c0_211 = arith.constant 0 : index
    %c0_212 = arith.constant 0 : index
    %259 = vector.load %arg8[%c2_210, %c0_211, %c0_212] : memref<9x32x64xf32, #tpu.memory_space<vmem>>, vector<1x32x64xf32>
    %260 = vector.shape_cast %259 : vector<1x32x64xf32> to vector<32x64xf32>
    %cst_213 = arith.constant dense<0.000000e+00> : vector<16x64xf32>
    %261 = tpu.matmul %258, %260, %cst_213 {dimension_numbers = #tpu.dot_dimension_numbers<[1], [0], [0], [1], [0, 0, 1, 1], [], []>} : vector<16x32xf32>, vector<32x64xf32>, vector<16x64xf32> -> vector<16x64xf32>
    %262 = arith.addf %256, %261 : vector<16x64xf32>
    %c1_214 = arith.constant 1 : index
    %c0_215 = arith.constant 0 : index
    %c0_216 = arith.constant 0 : index
    %263 = vector.load %arg16[%c1_214, %c0_215, %c0_216] : memref<6x6x32xf32, #tpu.memory_space<vmem>>, vector<4x4x32xf32>
    %264 = vector.shape_cast %263 : vector<4x4x32xf32> to vector<16x32xf32>
    %c3_217 = arith.constant 3 : index
    %c0_218 = arith.constant 0 : index
    %c0_219 = arith.constant 0 : index
    %265 = vector.load %arg8[%c3_217, %c0_218, %c0_219] : memref<9x32x64xf32, #tpu.memory_space<vmem>>, vector<1x32x64xf32>
    %266 = vector.shape_cast %265 : vector<1x32x64xf32> to vector<32x64xf32>
    %cst_220 = arith.constant dense<0.000000e+00> : vector<16x64xf32>
    %267 = tpu.matmul %264, %266, %cst_220 {dimension_numbers = #tpu.dot_dimension_numbers<[1], [0], [0], [1], [0, 0, 1, 1], [], []>} : vector<16x32xf32>, vector<32x64xf32>, vector<16x64xf32> -> vector<16x64xf32>
    %268 = arith.addf %262, %267 : vector<16x64xf32>
    %c1_221 = arith.constant 1 : index
    %c1_222 = arith.constant 1 : index
    %c0_223 = arith.constant 0 : index
    %269 = vector.load %arg16[%c1_221, %c1_222, %c0_223] : memref<6x6x32xf32, #tpu.memory_space<vmem>>, vector<4x4x32xf32>
    %270 = vector.shape_cast %269 : vector<4x4x32xf32> to vector<16x32xf32>
    %c4_224 = arith.constant 4 : index
    %c0_225 = arith.constant 0 : index
    %c0_226 = arith.constant 0 : index
    %271 = vector.load %arg8[%c4_224, %c0_225, %c0_226] : memref<9x32x64xf32, #tpu.memory_space<vmem>>, vector<1x32x64xf32>
    %272 = vector.shape_cast %271 : vector<1x32x64xf32> to vector<32x64xf32>
    %cst_227 = arith.constant dense<0.000000e+00> : vector<16x64xf32>
    %273 = tpu.matmul %270, %272, %cst_227 {dimension_numbers = #tpu.dot_dimension_numbers<[1], [0], [0], [1], [0, 0, 1, 1], [], []>} : vector<16x32xf32>, vector<32x64xf32>, vector<16x64xf32> -> vector<16x64xf32>
    %274 = arith.addf %268, %273 : vector<16x64xf32>
    %c1_228 = arith.constant 1 : index
    %c2_229 = arith.constant 2 : index
    %c0_230 = arith.constant 0 : index
    %275 = vector.load %arg16[%c1_228, %c2_229, %c0_230] : memref<6x6x32xf32, #tpu.memory_space<vmem>>, vector<4x4x32xf32>
    %276 = vector.shape_cast %275 : vector<4x4x32xf32> to vector<16x32xf32>
    %c5_231 = arith.constant 5 : index
    %c0_232 = arith.constant 0 : index
    %c0_233 = arith.constant 0 : index
    %277 = vector.load %arg8[%c5_231, %c0_232, %c0_233] : memref<9x32x64xf32, #tpu.memory_space<vmem>>, vector<1x32x64xf32>
    %278 = vector.shape_cast %277 : vector<1x32x64xf32> to vector<32x64xf32>
    %cst_234 = arith.constant dense<0.000000e+00> : vector<16x64xf32>
    %279 = tpu.matmul %276, %278, %cst_234 {dimension_numbers = #tpu.dot_dimension_numbers<[1], [0], [0], [1], [0, 0, 1, 1], [], []>} : vector<16x32xf32>, vector<32x64xf32>, vector<16x64xf32> -> vector<16x64xf32>
    %280 = arith.addf %274, %279 : vector<16x64xf32>
    %c2_235 = arith.constant 2 : index
    %c0_236 = arith.constant 0 : index
    %c0_237 = arith.constant 0 : index
    %281 = vector.load %arg16[%c2_235, %c0_236, %c0_237] : memref<6x6x32xf32, #tpu.memory_space<vmem>>, vector<4x4x32xf32>
    %282 = vector.shape_cast %281 : vector<4x4x32xf32> to vector<16x32xf32>
    %c6_238 = arith.constant 6 : index
    %c0_239 = arith.constant 0 : index
    %c0_240 = arith.constant 0 : index
    %283 = vector.load %arg8[%c6_238, %c0_239, %c0_240] : memref<9x32x64xf32, #tpu.memory_space<vmem>>, vector<1x32x64xf32>
    %284 = vector.shape_cast %283 : vector<1x32x64xf32> to vector<32x64xf32>
    %cst_241 = arith.constant dense<0.000000e+00> : vector<16x64xf32>
    %285 = tpu.matmul %282, %284, %cst_241 {dimension_numbers = #tpu.dot_dimension_numbers<[1], [0], [0], [1], [0, 0, 1, 1], [], []>} : vector<16x32xf32>, vector<32x64xf32>, vector<16x64xf32> -> vector<16x64xf32>
    %286 = arith.addf %280, %285 : vector<16x64xf32>
    %c2_242 = arith.constant 2 : index
    %c1_243 = arith.constant 1 : index
    %c0_244 = arith.constant 0 : index
    %287 = vector.load %arg16[%c2_242, %c1_243, %c0_244] : memref<6x6x32xf32, #tpu.memory_space<vmem>>, vector<4x4x32xf32>
    %288 = vector.shape_cast %287 : vector<4x4x32xf32> to vector<16x32xf32>
    %c7_245 = arith.constant 7 : index
    %c0_246 = arith.constant 0 : index
    %c0_247 = arith.constant 0 : index
    %289 = vector.load %arg8[%c7_245, %c0_246, %c0_247] : memref<9x32x64xf32, #tpu.memory_space<vmem>>, vector<1x32x64xf32>
    %290 = vector.shape_cast %289 : vector<1x32x64xf32> to vector<32x64xf32>
    %cst_248 = arith.constant dense<0.000000e+00> : vector<16x64xf32>
    %291 = tpu.matmul %288, %290, %cst_248 {dimension_numbers = #tpu.dot_dimension_numbers<[1], [0], [0], [1], [0, 0, 1, 1], [], []>} : vector<16x32xf32>, vector<32x64xf32>, vector<16x64xf32> -> vector<16x64xf32>
    %292 = arith.addf %286, %291 : vector<16x64xf32>
    %c2_249 = arith.constant 2 : index
    %c2_250 = arith.constant 2 : index
    %c0_251 = arith.constant 0 : index
    %293 = vector.load %arg16[%c2_249, %c2_250, %c0_251] : memref<6x6x32xf32, #tpu.memory_space<vmem>>, vector<4x4x32xf32>
    %294 = vector.shape_cast %293 : vector<4x4x32xf32> to vector<16x32xf32>
    %c8_252 = arith.constant 8 : index
    %c0_253 = arith.constant 0 : index
    %c0_254 = arith.constant 0 : index
    %295 = vector.load %arg8[%c8_252, %c0_253, %c0_254] : memref<9x32x64xf32, #tpu.memory_space<vmem>>, vector<1x32x64xf32>
    %296 = vector.shape_cast %295 : vector<1x32x64xf32> to vector<32x64xf32>
    %cst_255 = arith.constant dense<0.000000e+00> : vector<16x64xf32>
    %297 = tpu.matmul %294, %296, %cst_255 {dimension_numbers = #tpu.dot_dimension_numbers<[1], [0], [0], [1], [0, 0, 1, 1], [], []>} : vector<16x32xf32>, vector<32x64xf32>, vector<16x64xf32> -> vector<16x64xf32>
    %298 = arith.addf %292, %297 : vector<16x64xf32>
    %c0_256 = arith.constant 0 : index
    %c0_257 = arith.constant 0 : index
    %299 = vector.load %arg9[%c0_256, %c0_257] : memref<1x64xf32, #tpu.memory_space<vmem>>, vector<1x64xf32>
    %300 = vector.broadcast %299 : vector<1x64xf32> to vector<16x64xf32>
    %301 = arith.mulf %298, %300 : vector<16x64xf32>
    %c0_258 = arith.constant 0 : index
    %c0_259 = arith.constant 0 : index
    %302 = vector.load %arg10[%c0_258, %c0_259] : memref<1x64xf32, #tpu.memory_space<vmem>>, vector<1x64xf32>
    %303 = vector.broadcast %302 : vector<1x64xf32> to vector<16x64xf32>
    %304 = arith.addf %301, %303 : vector<16x64xf32>
    %cst_260 = arith.constant 0.000000e+00 : f32
    %305 = vector.broadcast %cst_260 : f32 to vector<16x64xf32>
    %306 = arith.maximumf %304, %305 : vector<16x64xf32>
    %cst_261 = arith.constant dense<0.000000e+00> : vector<64xf32>
    %307 = vector.multi_reduction <add>, %306, %cst_261 [0] : vector<16x64xf32> to vector<64xf32>
    %308 = vector.shape_cast %307 : vector<64xf32> to vector<1x64xf32>
    %cst_262 = arith.constant 6.250000e-02 : f32
    %309 = vector.broadcast %cst_262 : f32 to vector<1x64xf32>
    %310 = arith.mulf %308, %309 : vector<1x64xf32>
    %c0_263 = arith.constant 0 : index
    %c0_264 = arith.constant 0 : index
    %311 = vector.load %arg11[%c0_263, %c0_264] : memref<2x64xf32, #tpu.memory_space<vmem>>, vector<2x64xf32>
    %312 = vector.broadcast %310 : vector<1x64xf32> to vector<2x64xf32>
    %313 = arith.mulf %312, %311 : vector<2x64xf32>
    %cst_265 = arith.constant dense<0.000000e+00> : vector<2xf32>
    %314 = vector.multi_reduction <add>, %313, %cst_265 [1] : vector<2x64xf32> to vector<2xf32>
    %315 = vector.shape_cast %314 : vector<2xf32> to vector<1x2xf32>
    %c0_266 = arith.constant 0 : index
    %c0_267 = arith.constant 0 : index
    %316 = vector.load %arg12[%c0_266, %c0_267] : memref<1x2xf32, #tpu.memory_space<vmem>>, vector<1x2xf32>
    %317 = arith.addf %315, %316 : vector<1x2xf32>
    %c0_268 = arith.constant 0 : index
    %c0_269 = arith.constant 0 : index
    %c0_270 = arith.constant 0 : index
    %318 = vector.load %arg13[%c0_268, %c0_269, %c0_270] : memref<1x1x2xf32, #tpu.memory_space<vmem>>, vector<1x1x2xf32>
    %319 = vector.shape_cast %318 : vector<1x1x2xf32> to vector<1x2xf32>
    %320 = vector.shape_cast %317 : vector<1x2xf32> to vector<1x1x2xf32>
    tpu.vector_store %arg13[%c0_268, %c0_269, %c0_270], %320 {strides = array<i32>} : memref<1x1x2xf32, #tpu.memory_space<vmem>>, vector<1x1x2xf32>,
    return
  }
  func.func @transform_0(%arg0: i32) -> (i32, i32, i32, i32) {
    %c0_i32 = arith.constant 0 : i32
    %c0_i32_0 = arith.constant 0 : i32
    %c0_i32_1 = arith.constant 0 : i32
    %c0_i32_2 = arith.constant 0 : i32
    return %arg0, %c0_i32, %c0_i32_0, %c0_i32_1 : i32, i32, i32, i32
  }
  func.func @transform_1(%arg0: i32) -> (i32, i32, i32) {
    %c0_i32 = arith.constant 0 : i32
    %c0_i32_0 = arith.constant 0 : i32
    %c0_i32_1 = arith.constant 0 : i32
    %c0_i32_2 = arith.constant 0 : i32
    return %c0_i32, %c0_i32_0, %c0_i32_1 : i32, i32, i32
  }
  func.func @transform_2(%arg0: i32) -> (i32, i32) {
    %c0_i32 = arith.constant 0 : i32
    %c0_i32_0 = arith.constant 0 : i32
    %c0_i32_1 = arith.constant 0 : i32
    return %c0_i32, %c0_i32_0 : i32, i32
  }
  func.func @transform_3(%arg0: i32) -> (i32, i32) {
    %c0_i32 = arith.constant 0 : i32
    %c0_i32_0 = arith.constant 0 : i32
    %c0_i32_1 = arith.constant 0 : i32
    return %c0_i32, %c0_i32_0 : i32, i32
  }
  func.func @transform_4(%arg0: i32) -> (i32, i32, i32) {
    %c0_i32 = arith.constant 0 : i32
    %c0_i32_0 = arith.constant 0 : i32
    %c0_i32_1 = arith.constant 0 : i32
    %c0_i32_2 = arith.constant 0 : i32
    return %c0_i32, %c0_i32_0, %c0_i32_1 : i32, i32, i32
  }
  func.func @transform_5(%arg0: i32) -> (i32, i32) {
    %c0_i32 = arith.constant 0 : i32
    %c0_i32_0 = arith.constant 0 : i32
    %c0_i32_1 = arith.constant 0 : i32
    return %c0_i32, %c0_i32_0 : i32, i32
  }
  func.func @transform_6(%arg0: i32) -> (i32, i32) {
    %c0_i32 = arith.constant 0 : i32
    %c0_i32_0 = arith.constant 0 : i32
    %c0_i32_1 = arith.constant 0 : i32
    return %c0_i32, %c0_i32_0 : i32, i32
  }
  func.func @transform_7(%arg0: i32) -> (i32, i32, i32) {
    %c0_i32 = arith.constant 0 : i32
    %c0_i32_0 = arith.constant 0 : i32
    %c0_i32_1 = arith.constant 0 : i32
    %c0_i32_2 = arith.constant 0 : i32
    return %c0_i32, %c0_i32_0, %c0_i32_1 : i32, i32, i32
  }
  func.func @transform_8(%arg0: i32) -> (i32, i32) {
    %c0_i32 = arith.constant 0 : i32
    %c0_i32_0 = arith.constant 0 : i32
    %c0_i32_1 = arith.constant 0 : i32
    return %c0_i32, %c0_i32_0 : i32, i32
  }
  func.func @transform_9(%arg0: i32) -> (i32, i32) {
    %c0_i32 = arith.constant 0 : i32
    %c0_i32_0 = arith.constant 0 : i32
    %c0_i32_1 = arith.constant 0 : i32
    return %c0_i32, %c0_i32_0 : i32, i32
  }
  func.func @transform_10(%arg0: i32) -> (i32, i32) {
    %c0_i32 = arith.constant 0 : i32
    %c0_i32_0 = arith.constant 0 : i32
    %c0_i32_1 = arith.constant 0 : i32
    return %c0_i32, %c0_i32_0 : i32, i32
  }
  func.func @transform_11(%arg0: i32) -> (i32, i32) {
    %c0_i32 = arith.constant 0 : i32
    %c0_i32_0 = arith.constant 0 : i32
    %c0_i32_1 = arith.constant 0 : i32
    return %c0_i32, %c0_i32_0 : i32, i32
  }
  func.func @transform_12(%arg0: i32) -> (i32, i32, i32) {
    %c0_i32 = arith.constant 0 : i32
    %c0_i32_0 = arith.constant 0 : i32
    %c0_i32_1 = arith.constant 0 : i32
    return %arg0, %c0_i32, %c0_i32_0 : i32, i32, i32
  }
}

</mosaic_0001>

<bundles_post_ra>
// kernel: simple_cnn_forward.1
= control target key start
LH: loop header
LB: loop body
LE: loop exit
PB: predicated region body
PF: predicated region fallthrough
CT: control target
= control target key end

     0   :  { %s6503_s0 = inlined_call_operand.vmem [shape: f32[2,16,16,1], index: 0, kind: input, shape index: {}]   ;;  %s6504_s1 = inlined_call_operand.vmem [shape: f32[9,1,16], index: 1, kind: input, shape index: {}]   ;;  %s6505_s2 = inlined_call_operand.vmem [shape: f32[1,16], index: 2, kind: input, shape index: {}]   ;;  %s6506_s3 = inlined_call_operand.vmem [shape: f32[1,16], index: 3, kind: input, shape index: {}]   ;;  %s6507_s4 = inlined_call_operand.vmem [shape: f32[9,16,32], index: 4, kind: input, shape index: {}]   ;;  %s6508_s5 = inlined_call_operand.vmem [shape: f32[1,32], index: 5, kind: input, shape index: {}]   ;;  %s6509_s6 = inlined_call_operand.vmem [shape: f32[1,32], index: 6, kind: input, shape index: {}]   ;;  %s6510_s7 = inlined_call_operand.vmem [shape: f32[9,32,64], index: 7, kind: input, shape index: {}]   ;;  %s6511_s8 = inlined_call_operand.vmem [shape: f32[1,64], index: 8, kind: input, shape index: {}]   ;;  %s6512_s9 = inlined_call_operand.vmem [shape: f32[1,64], index: 9, kind: input, shape index: {}]   ;;  %s6513_s10 = inlined_call_operand.vmem [shape: f32[2,64], index: 10, kind: input, shape index: {}]   ;;  %s6514_s11 = inlined_call_operand.vmem [shape: f32[1,2], index: 11, kind: input, shape index: {}]   ;;  %s6515_s12 = inlined_call_operand.hbm [shape: f32[2,1,2], index: 12, kind: output, shape index: {}]  }
   0x1   :  { %6516 = sst [smem:[#allocation10_spill]] %s6503_s0 }
   0x2   :  { %6517 = sst [smem:[#allocation11_spill]] %s6504_s1 }
   0x3   :  { %17 = vsyncpa [#allocation8], 0 }
   0x4   :  { %19 = vsyncpa [#allocation8 + $0x1], 0  ;;  %s5183_s21 = smov 0   ;;  %s5185_s22 = smov 0  }
   0x5   :  { %s5187_s23 = smov 0   ;;  %s5189_s24 = smov 0  }
   0x6 LB: > { %s5204_s25 = sadd.s32 4294967295, %s5113_s24   ;;  %s4232_s26 = sadd.s32 4294967294, %s5113_s24   ;;  %s5113_s24 = sphi %s5189_s24, %s6525_s24   ;;  %s5109_s23 = sphi %s5187_s23, %s6524_s23   ;;  %s5105_s22 = sphi %s5185_s22, %s6523_s22   ;;  %s5101_s21 = sphi %s5183_s21, %s6522_s21  }
   0x7   : > { %s5208_s27 = sadd.s32 1, %s5113_s24   ;;  %s289_s28 = sadd.s32 1, %s5109_s23 }
   0x8   : > { %s286_s29 = ssub.s32 %s5113_s24, %s5208_s27  ;;  %p299_p0 = scmp.ne.s32.totalorder %s5109_s23, %s5105_s22 }
   0x9   : > { %p287_p1 = scmp.eq.s32.totalorder %s286_s29, 0  ;;  %p300_p2 = scmp.eq.s32.totalorder %s5204_s25, 1 }
   0xa   : > { %p305_p3 = scmp.ne.s32.totalorder %s5105_s22, %s5101_s21  ;;  %p306_p4 = scmp.eq.s32.totalorder %s4232_s26, 1 }
   0xb   : > { %s5219_s30 = scalar_select %p287_p1, %s5109_s23, %s289_s28  }
   0xc   : > { %p5221_p5 = por %p300_p2, %p299_p0  ;;  %p5225_p6 = por %p306_p4, %p305_p3 }
   0xd   : > { %p4235_p7 = scmp.ge.s32.totalorder %s5113_s24, 1  ;;  %p365_p8 = scmp.lt.s32.totalorder %s5113_s24, 3 }
   0xf   : > { %p366_p9 = pnand %p4235_p7, %p365_p8 }
  0x10   : > { %p406_p10 = scmp.lt.s32.totalorder (!%p366_p9), %s5204_s25, 1  ;;  %vm411_vm0 = vcmask (!%p366_p9), 130048   ;;  %v5115_v0 = vmov (!%p366_p9), 0   ;;  %v5116_v1 = vmov (!%p366_p9), 0.0   ;;  %s6520_s0 = sld [smem:[#allocation10_spill]] (!%p366_p9)  ;;  %vm414_vm1 = vcmask (!%p366_p9), 123904  }
  0x11   : > { %369 = sbr.rel (%p366_p9) target bundleno = 1269 (0x4f5), region = 68  ;;  %5021 = vset.pattern.permute.xlu1 (!%p366_p9), %v5115_v0  ;;  %5020 = vset.pattern.permute.xlu0 (!%p366_p9), %v5115_v0  ;;  %419 = vst.msk [vmem:[#allocation2 + $0x30] sm:$0xff] (!%p366_p9), %vm411_vm0, %v5116_v1  ;;  %420 = vst.msk [vmem:[#allocation2 + $0x38] sm:$0xff] (!%p366_p9), %vm411_vm0, %v5116_v1  ;;  %s6521_s1 = sld [smem:[#allocation11_spill]] (!%p366_p9)  ;;  %v4257_v53 = vld [vmem:[%s6507_s4 + $0x10] sm:$0xff] (!%p366_p9)  ;;  %v4258_v54 = vld [vmem:[%s6507_s4 + $0x18] sm:$0xff] (!%p366_p9) }
  0x12   : > { %412 = vst.msk [vmem:[#allocation2] sm:$0xff] (!%p366_p9), %vm411_vm0, %v5116_v1  ;;  %413 = vst.msk [vmem:[#allocation2 + $0x8] sm:$0xff] (!%p366_p9), %vm411_vm0, %v5116_v1  ;;  %v4275_v55 = vld [vmem:[%s6507_s4 + $0x20] sm:$0xff] (!%p366_p9)  ;;  %v4791_v58 = vpack.c.bf16 (!%p366_p9), %v4258_v54, %v4257_v53  ;;  %v4276_v59 = vld [vmem:[%s6507_s4 + $0x28] sm:$0xff] (!%p366_p9)  ;;  %vm487_vm2 = vcmask (!%p366_p9), 259072   ;;  %vm3207_vm3 = vcmask (!%p366_p9), 261120  }
  0x13   : > { %416 = vst.msk [vmem:[#allocation2 + $0x18] sm:$0xff] (!%p366_p9), %vm411_vm0, %v5116_v1  ;;  %417 = vst.msk [vmem:[#allocation2 + $0x20] sm:$0xff] (!%p366_p9), %vm411_vm0, %v5116_v1  ;;  %v4799_v63 = vpack.c.bf16 (!%p366_p9), %v4276_v59, %v4275_v55  ;;  %vm3238_vm4 = vcmask (!%p366_p9), 257024   ;;  %vm4123_vm5 = vcmask (!%p366_p9), 523264   ;;  %vm4136_vm6 = vcmask (!%p366_p9), 517120  }
  0x14   : > { %422 = vst.msk [vmem:[#allocation2 + $0x48] sm:$0xff] (!%p366_p9), %vm411_vm0, %v5116_v1  ;;  %423 = vst.msk [vmem:[#allocation2 + $0x50] sm:$0xff] (!%p366_p9), %vm411_vm0, %v5116_v1  ;;  %4792 = vmatprep.subr.bf16.mxu1 (!%p366_p9), %v4791_v58  ;;  %vm4162_vm7 = vcmask (!%p366_p9), 8192  }
  0x15   : > { %425 = vst.msk [vmem:[#allocation2 + $0x60] sm:$0xff] (!%p366_p9), %vm411_vm0, %v5116_v1  ;;  %426 = vst.msk [vmem:[#allocation2 + $0x68] sm:$0xff] (!%p366_p9), %vm411_vm0, %v5116_v1  ;;  %4800 = vmatprep.subr.bf16.mxu0 (!%p366_p9), %v4799_v63  ;;  %4794 = vmatpush3.bf16.msra.mxu1 (!%p366_p9), %v4791_v58 }
  0x16   : > { %428 = vst.msk [vmem:[#allocation2 + $0x78] sm:$0xff] (!%p366_p9), %vm411_vm0, %v5116_v1  ;;  %429 = vst.msk [vmem:[#allocation2 + $0x80] sm:$0xff] (!%p366_p9), %vm411_vm0, %v5116_v1  ;;  %4802 = vmatpush3.bf16.msra.mxu0 (!%p366_p9), %v4799_v63 }
  0x17   : > { %431 = vst.msk [vmem:[#allocation2 + $0x90] sm:$0xff] (!%p366_p9), %vm411_vm0, %v5116_v1  ;;  %432 = vst.msk [vmem:[#allocation2 + $0x98] sm:$0xff] (!%p366_p9), %vm411_vm0, %v5116_v1  ;;  %v5423_v34 = vld [vmem:[%s6521_s1] ss:$0 sm:$0xff] (!%p366_p9)  ;;  %v5428_v35 = vld [vmem:[%s6521_s1 + $0x1] ss:$0 sm:$0xff] (!%p366_p9) }
  0x18   : > { %434 = vst.msk [vmem:[#allocation2 + $0xa8] sm:$0xff] %vm411_vm0, %v5116_v1  ;;  %435 = vst.msk [vmem:[#allocation2 + $0xb0] sm:$0xff] %vm411_vm0, %v5116_v1  ;;  %s407_s15 = scalar_select %p406_p10, %s5204_s25, 1  ;;  %v5437_v45 = vld [vmem:[%s6521_s1 + $0x2] ss:$0 sm:$0xff] }
  0x19   : > { %437 = vst.msk [vmem:[#allocation2 + $0xc0] sm:$0xff] %vm411_vm0, %v5116_v1  ;;  %438 = vst.msk [vmem:[#allocation2 + $0xc8] sm:$0xff] %vm411_vm0, %v5116_v1  ;;  %v719_v36 = vld [vmem:[#allocation2] sm:$0xff]  ;;  %v720_v38 = vld [vmem:[#allocation2 + $0x8] sm:$0xff] }
  0x1a   : > { %440 = vst.msk [vmem:[#allocation2 + $0xd8] sm:$0xff] %vm411_vm0, %v5116_v1  ;;  %441 = vst.msk [vmem:[#allocation2 + $0xe0] sm:$0xff] %vm411_vm0, %v5116_v1  ;;  %s4403_s16 = sshll.u32 %s407_s15, 8  ;;  %v822_v37 = vld [vmem:[#allocation2 + $0x1] sm:$0xff]  ;;  %v758_v42 = vmul.f32 %v5423_v34, %v719_v36  ;;  %v759_v46 = vmul.f32 %v5423_v34, %v720_v38  ;;  %s404_s15 = sand.u32 1, %s5105_s22  }
  0x1b   : > { %443 = vst.msk [vmem:[#allocation2 + $0xf0] sm:$0xff] %vm411_vm0, %v5116_v1  ;;  %444 = vst.msk [vmem:[#allocation2 + $0xf8] sm:$0xff] %vm411_vm0, %v5116_v1  ;;  %s5330_s19 = scalar_lea.vmem %s6520_s0, %s4403_s16  ;;  %v862_v43 = vmul.f32 %v5428_v35, %v822_v37  ;;  %v926_v44 = vld [vmem:[#allocation2 + $0x2] sm:$0xff]  ;;  %s4400_s16 = sshll.u32 %s5204_s25, 4 }
  0x1c   : > { %446 = vst.msk [vmem:[#allocation2 + $0x108] sm:$0xff] %vm411_vm0, %v5116_v1  ;;  %447 = vst.msk [vmem:[#allocation2 + $0x110] sm:$0xff] %vm411_vm0, %v5116_v1  ;;  %v496_v2 = vld [vmem:[%s5330_s19 + $0x10] sm:$0xff]  ;;  %v494_v3 = vld [vmem:[%s5330_s19] sm:$0xff]  ;;  %v966_v52 = vmul.f32 %v5437_v45, %v926_v44  ;;  %s405_s17 = scalar_lea.vmem [#allocation7], %s404_s15  ;;  %s6461_s0 = scalar_lea.hbm %s6515_s12, %s4400_s16 }
  0x1d   : > { %449 = vst.msk [vmem:[#allocation2 + $0x120] sm:$0xff] %vm411_vm0, %v5116_v1  ;;  %450 = vst.msk [vmem:[#allocation2 + $0x128] sm:$0xff] %vm411_vm0, %v5116_v1  ;;  %538 = vperm.xlu1 %5021, %v496_v2   ;;  %528 = vperm.xlu0 %5020, %v494_v3   ;;  %v497_v4 = vld [vmem:[%s5330_s19 + $0x18] sm:$0xff]  ;;  %v495_v5 = vld [vmem:[%s5330_s19 + $0x8] sm:$0xff]  ;;  %v894_v51 = vadd.f32 %v862_v43, %v758_v42  ;;  %s4177_s18 = sshll.u32 %s405_s17, 4  ;;  %s4165_s26 = scalar_lea.sflag [#allocation8], %s404_s15  ;;  %s6463_s18 = int_to_ptr.vmem [resolvable:$true] %s4177_s18 }
  0x1e   : > { %452 = vst.msk [vmem:[#allocation2 + $0x138] sm:$0xff] %vm411_vm0, %v5116_v1  ;;  %453 = vst.msk [vmem:[#allocation2 + $0x140] sm:$0xff] %vm411_vm0, %v5116_v1  ;;  %v499_v6 = vld [vmem:[%s5330_s19 + $0x28] sm:$0xff]  ;;  %v498_v7 = vld [vmem:[%s5330_s19 + $0x20] sm:$0xff]  ;;  %s5051_s28 = scalar_lea.vmem %s6463_s18, 16  ;;  %s5117_s25 = smov [#allocation7]  }
  0x1f   : > { %455 = vst.msk [vmem:[#allocation2 + $0x150] sm:$0xff] %vm411_vm0, %v5116_v1  ;;  %456 = vst.msk [vmem:[#allocation2 + $0x158] sm:$0xff] %vm411_vm0, %v5116_v1  ;;  %v501_v8 = vld [vmem:[%s5330_s19 + $0x38] sm:$0xff]  ;;  %v500_v9 = vld [vmem:[%s5330_s19 + $0x30] sm:$0xff]  ;;  %p5052_p11 = scmp.ne.s32.totalorder %s6463_s18, %s5051_s28  ;;  %s5055_s29 = sshll.u32 %s5117_s25, 4  ;;  %s5056_s29 = int_to_ptr.vmem [resolvable:$false] %s5055_s29 }
  0x20   : > { %458 = vst.msk [vmem:[#allocation2 + $0x168] sm:$0xff] %vm411_vm0, %v5116_v1  ;;  %459 = vst.msk [vmem:[#allocation2 + $0x170] sm:$0xff] %vm411_vm0, %v5116_v1  ;;  %v503_v10 = vld [vmem:[%s5330_s19 + $0x48] sm:$0xff]  ;;  %v502_v11 = vld [vmem:[%s5330_s19 + $0x40] sm:$0xff]  ;;  %p5058_p0 = scmp.lt.s32.totalorder %s6463_s18, %s5056_s29 }
  0x21   : > { %461 = vst.msk [vmem:[#allocation2 + $0x180] sm:$0xff] %vm411_vm0, %v5116_v1  ;;  %462 = vst.msk [vmem:[#allocation2 + $0x188] sm:$0xff] %vm411_vm0, %v5116_v1  ;;  %543 = vperm.xlu1 %5021, %v497_v4   ;;  %533 = vperm.xlu0 %5020, %v495_v5   ;;  %v505_v12 = vld [vmem:[%s5330_s19 + $0x58] sm:$0xff]  ;;  %v504_v13 = vld [vmem:[%s5330_s19 + $0x50] sm:$0xff]  ;;  %p5053_p12 = pnand %p5052_p11, %p5221_p5 }
  0x22   : > { %464 = vst.msk [vmem:[#allocation2 + $0x198] sm:$0xff] %vm411_vm0, %v5116_v1  ;;  %465 = vst.msk [vmem:[#allocation2 + $0x1a0] sm:$0xff] %vm411_vm0, %v5116_v1  ;;  %v507_v14 = vld [vmem:[%s5330_s19 + $0x68] sm:$0xff]  ;;  %v506_v15 = vld [vmem:[%s5330_s19 + $0x60] sm:$0xff] }
  0x23   : > { %467 = vst.msk [vmem:[#allocation3] sm:$0xff] %vm411_vm0, %v5116_v1  ;;  %469 = vst.msk [vmem:[#allocation3 + $0x10] sm:$0xff] %vm411_vm0, %v5116_v1  ;;  %v509_v16 = vld [vmem:[%s5330_s19 + $0x78] sm:$0xff]  ;;  %v508_v17 = vld [vmem:[%s5330_s19 + $0x70] sm:$0xff]  ;;  %p5054_p13 = pneg %p5053_p12 }
  0x24   : > { %471 = vst.msk [vmem:[#allocation3 + $0x20] sm:$0xff] %vm411_vm0, %v5116_v1  ;;  %473 = vst.msk [vmem:[#allocation3 + $0x30] sm:$0xff] %vm411_vm0, %v5116_v1  ;;  %v511_v18 = vld [vmem:[%s5330_s19 + $0x88] sm:$0xff]  ;;  %v510_v19 = vld [vmem:[%s5330_s19 + $0x80] sm:$0xff] }
  0x25   : > { %475 = vst.msk [vmem:[#allocation3 + $0x40] sm:$0xff] %vm411_vm0, %v5116_v1  ;;  %477 = vst.msk [vmem:[#allocation3 + $0x50] sm:$0xff] %vm411_vm0, %v5116_v1  ;;  %553 = vperm.xlu1 %5021, %v499_v6   ;;  %548 = vperm.xlu0 %5020, %v498_v7   ;;  %v513_v20 = vld [vmem:[%s5330_s19 + $0x98] sm:$0xff]  ;;  %v512_v21 = vld [vmem:[%s5330_s19 + $0x90] sm:$0xff] }
  0x26   : > { %479 = vst.msk [vmem:[#allocation3 + $0x60] sm:$0xff] %vm411_vm0, %v5116_v1  ;;  %481 = vst.msk [vmem:[#allocation3 + $0x70] sm:$0xff] %vm411_vm0, %v5116_v1  ;;  %v515_v22 = vld [vmem:[%s5330_s19 + $0xa8] sm:$0xff]  ;;  %v514_v23 = vld [vmem:[%s5330_s19 + $0xa0] sm:$0xff] }
  0x27   : > { %483 = vst.msk [vmem:[#allocation3 + $0x80] sm:$0xff] %vm411_vm0, %v5116_v1  ;;  %485 = vst.msk [vmem:[#allocation3 + $0x90] sm:$0xff] %vm411_vm0, %v5116_v1  ;;  %v517_v24 = vld [vmem:[%s5330_s19 + $0xb8] sm:$0xff]  ;;  %v516_v25 = vld [vmem:[%s5330_s19 + $0xb0] sm:$0xff] }
  0x28   : > { %421 = vst.msk [vmem:[#allocation2 + $0x40] sm:$0x3] %vm414_vm1, %v5116_v1  ;;  %415 = vst.msk [vmem:[#allocation2 + $0x10] sm:$0x3] %vm414_vm1, %v5116_v1  ;;  %v519_v26 = vld [vmem:[%s5330_s19 + $0xc8] sm:$0xff]  ;;  %v518_v27 = vld [vmem:[%s5330_s19 + $0xc0] sm:$0xff] }
  0x29   : > { %418 = vst.msk [vmem:[#allocation2 + $0x28] sm:$0x3] %vm414_vm1, %v5116_v1  ;;  %424 = vst.msk [vmem:[#allocation2 + $0x58] sm:$0x3] %vm414_vm1, %v5116_v1  ;;  %563 = vperm.xlu1 %5021, %v501_v8   ;;  %558 = vperm.xlu0 %5020, %v500_v9   ;;  %v521_v28 = vld [vmem:[%s5330_s19 + $0xd8] sm:$0xff]  ;;  %v520_v29 = vld [vmem:[%s5330_s19 + $0xd0] sm:$0xff]  ;;  %v998_v9 = vadd.f32 %v966_v52, %v894_v51 }
  0x2a   : > { %427 = vst.msk [vmem:[#allocation2 + $0x70] sm:$0x3] %vm414_vm1, %v5116_v1  ;;  %430 = vst.msk [vmem:[#allocation2 + $0x88] sm:$0x3] %vm414_vm1, %v5116_v1  ;;  %v523_v30 = vld [vmem:[%s5330_s19 + $0xe8] sm:$0xff]  ;;  %v522_v31 = vld [vmem:[%s5330_s19 + $0xe0] sm:$0xff] }
  0x2b   : > { %433 = vst.msk [vmem:[#allocation2 + $0xa0] sm:$0x3] %vm414_vm1, %v5116_v1  ;;  %436 = vst.msk [vmem:[#allocation2 + $0xb8] sm:$0x3] %vm414_vm1, %v5116_v1  ;;  %v525_v32 = vld [vmem:[%s5330_s19 + $0xf8] sm:$0xff]  ;;  %v524_v33 = vld [vmem:[%s5330_s19 + $0xf0] sm:$0xff] }
  0x2c   : > { %439 = vst.msk [vmem:[#allocation2 + $0xd0] sm:$0x3] %vm414_vm1, %v5116_v1  ;;  %442 = vst.msk [vmem:[#allocation2 + $0xe8] sm:$0x3] %vm414_vm1, %v5116_v1  ;;  %v5460_v60 = vld [vmem:[%s6521_s1 + $0x3] ss:$0 sm:$0xff] }
  0x2d   : > { %445 = vst.msk [vmem:[#allocation2 + $0x100] sm:$0x3] %vm414_vm1, %v5116_v1  ;;  %448 = vst.msk [vmem:[#allocation2 + $0x118] sm:$0x3] %vm414_vm1, %v5116_v1  ;;  %573 = vperm.xlu1 %5021, %v503_v10   ;;  %568 = vperm.xlu0 %5020, %v502_v11   ;;  %v5465_v61 = vld [vmem:[%s6521_s1 + $0x4] ss:$0 sm:$0xff] }
  0x2e   : > { %451 = vst.msk [vmem:[#allocation2 + $0x130] sm:$0x3] %vm414_vm1, %v5116_v1  ;;  %454 = vst.msk [vmem:[#allocation2 + $0x148] sm:$0x3] %vm414_vm1, %v5116_v1  ;;  %v5470_v62 = vld [vmem:[%s6521_s1 + $0x6] ss:$0 sm:$0xff] }
  0x2f   : > { %457 = vst.msk [vmem:[#allocation2 + $0x160] sm:$0x3] %vm414_vm1, %v5116_v1  ;;  %460 = vst.msk [vmem:[#allocation2 + $0x178] sm:$0x3] %vm414_vm1, %v5116_v1  ;;  %v823_v39 = vld [vmem:[#allocation2 + $0x9] sm:$0xff] }
  0x30   : > { %463 = vst.msk [vmem:[#allocation2 + $0x190] sm:$0x3] %vm414_vm1, %v5116_v1  ;;  %466 = vst.msk [vmem:[#allocation2 + $0x1a8] sm:$0x3] %vm414_vm1, %v5116_v1  ;;  %v863_v47 = vmul.f32 %v5428_v35, %v823_v39  ;;  %v927_v48 = vld [vmem:[#allocation2 + $0xa] sm:$0xff] }
  0x31   : > { %468 = vst.msk [vmem:[#allocation3 + $0x8] sm:$0x3] %vm414_vm1, %v5116_v1  ;;  %470 = vst.msk [vmem:[#allocation3 + $0x18] sm:$0x3] %vm414_vm1, %v5116_v1  ;;  %583 = vperm.xlu1 %5021, %v505_v12   ;;  %578 = vperm.xlu0 %5020, %v504_v13   ;;  %v967_v57 = vmul.f32 %v5437_v45, %v927_v48  ;;  %v5475_v6 = vld [vmem:[%s6521_s1 + $0x7] ss:$0 sm:$0xff] }
  0x32   : > { %472 = vst.msk [vmem:[#allocation3 + $0x28] sm:$0x3] %vm414_vm1, %v5116_v1  ;;  %474 = vst.msk [vmem:[#allocation3 + $0x38] sm:$0x3] %vm414_vm1, %v5116_v1  ;;  %v895_v56 = vadd.f32 %v863_v47, %v759_v46 }
  0x33   : > { %476 = vst.msk [vmem:[#allocation3 + $0x48] sm:$0x3] %vm414_vm1, %v5116_v1  ;;  %478 = vst.msk [vmem:[#allocation3 + $0x58] sm:$0x3] %vm414_vm1, %v5116_v1 }
  0x34   : > { %480 = vst.msk [vmem:[#allocation3 + $0x68] sm:$0x3] %vm414_vm1, %v5116_v1  ;;  %482 = vst.msk [vmem:[#allocation3 + $0x78] sm:$0x3] %vm414_vm1, %v5116_v1 }
  0x35   : > { %484 = vst.msk [vmem:[#allocation3 + $0x88] sm:$0x3] %vm414_vm1, %v5116_v1  ;;  %486 = vst.msk [vmem:[#allocation3 + $0x98] sm:$0x3] %vm414_vm1, %v5116_v1  ;;  %593 = vperm.xlu1 %5021, %v507_v14   ;;  %588 = vperm.xlu0 %5020, %v506_v15   ;;  %v5486_v14 = vadd.f32 %v967_v57, %v895_v56 }
  0x36   : > { %488 = vst.msk [vmem:[#allocation4] sm:$0x3f] %vm487_vm2, %v5116_v1  ;;  %489 = vst.msk [vmem:[#allocation4 + $0x8] sm:$0x3f] %vm487_vm2, %v5116_v1 }
  0x37   : > { %490 = vst.msk [vmem:[#allocation4 + $0x10] sm:$0x3f] %vm487_vm2, %v5116_v1  ;;  %491 = vst.msk [vmem:[#allocation4 + $0x18] sm:$0x3f] %vm487_vm2, %v5116_v1 }
  0x38   : > { %v1862_v15 = vld [vmem:[#allocation3 + $0x1] sm:$0xff]  ;;  %492 = vst.msk [vmem:[#allocation4 + $0x20] sm:$0x3f] %vm487_vm2, %v5116_v1  ;;  %493 = vst.msk [vmem:[#allocation4 + $0x28] sm:$0x3f] %vm487_vm2, %v5116_v1 }
  0x39   : > { %603 = vperm.xlu1 %5021, %v509_v16   ;;  %598 = vperm.xlu0 %5020, %v508_v17   ;;  %v2131_v16 = vld [vmem:[#allocation3 + $0x2] sm:$0xff] }
  0x3a   : > { %4552 = vmatprep.mubr.msk.f32.mxu1 %vm411_vm0, %v1862_v15  ;;  %4584 = vmatprep.mubr.msk.f32.mxu0 %vm411_vm0, %v2131_v16 }
  0x3d   : > { %613 = vperm.xlu1 %5021, %v511_v18   ;;  %608 = vperm.xlu0 %5020, %v510_v19  }
  0x41   : > { %623 = vperm.xlu1 %5021, %v513_v20   ;;  %618 = vperm.xlu0 %5020, %v512_v21   ;;  %v5498_v20 = vld [vmem:[%s6521_s1 + $0x5] ss:$0 sm:$0xff] }
  0x45   : > { %633 = vperm.xlu1 %5021, %v515_v22   ;;  %628 = vperm.xlu0 %5020, %v514_v23  }
  0x49   : > { %643 = vperm.xlu1 %5021, %v517_v24   ;;  %638 = vperm.xlu0 %5020, %v516_v25  }
  0x4d   : > { %653 = vperm.xlu1 %5021, %v519_v26   ;;  %648 = vperm.xlu0 %5020, %v518_v27  }
  0x51   : > { %663 = vperm.xlu1 %5021, %v521_v28   ;;  %658 = vperm.xlu0 %5020, %v520_v29  }
  0x55   : > { %673 = vperm.xlu1 %5021, %v523_v30   ;;  %668 = vperm.xlu0 %5020, %v522_v31   ;;  %v5509_v31 = vld [vmem:[%s6521_s1 + $0x8] ss:$0 sm:$0xff] }
  0x59   : > { %683 = vperm.xlu1 %5021, %v525_v32   ;;  %678 = vperm.xlu0 %5020, %v524_v33  }
  0x9c   : > { %v539_v40 = vpop.permute.xlu1 %538  ;;  %v529_v41 = vpop.permute.xlu0 %528 }
  0x9d   : > { %689 = vst.msk [vmem:[#allocation2 + $0x31] sm:$0xff] %vm411_vm0, %v539_v40  ;;  %687 = vst.msk [vmem:[#allocation2 + $0x19] sm:$0xff] %vm411_vm0, %v529_v41 }
  0xa0   : > { %v544_v49 = vpop.permute.xlu1 %543  ;;  %v534_v50 = vpop.permute.xlu0 %533 }
  0xa1   : > { %690 = vst.msk [vmem:[#allocation2 + $0x39] sm:$0xff] %vm411_vm0, %v544_v49  ;;  %688 = vst.msk [vmem:[#allocation2 + $0x21] sm:$0xff] %vm411_vm0, %v534_v50 }
  0xa4   : > { %v723_v0 = vld [vmem:[#allocation2 + $0x30] sm:$0xff]  ;;  %v721_v3 = vld [vmem:[#allocation2 + $0x18] sm:$0xff]  ;;  %v554_v4 = vpop.permute.xlu1 %553  ;;  %v549_v5 = vpop.permute.xlu0 %548 }
  0xa5   : > { %v826_v2 = vld [vmem:[#allocation2 + $0x31] sm:$0xff]  ;;  %v762_v7 = vmul.f32 %v5423_v34, %v723_v0  ;;  %v824_v10 = vld [vmem:[#allocation2 + $0x19] sm:$0xff]  ;;  %692 = vst.msk [vmem:[#allocation2 + $0x51] sm:$0xff] %vm411_vm0, %v554_v4  ;;  %691 = vst.msk [vmem:[#allocation2 + $0x49] sm:$0xff] %vm411_vm0, %v549_v5  ;;  %v5482_v11 = vmul.f32 %v5460_v60, %v723_v0  ;;  %v760_v12 = vmul.f32 %v5423_v34, %v721_v3 }
  0xa6   : > { %v866_v8 = vmul.f32 %v5428_v35, %v826_v2  ;;  %v864_v13 = vmul.f32 %v5428_v35, %v824_v10  ;;  %v5489_v17 = vmul.f32 %v5465_v61, %v826_v2  ;;  %v5492_v18 = vmul.f32 %v5470_v62, %v723_v0 }
  0xa7   : > { %v1070_v19 = vmul.f32 %v5460_v60, %v721_v3  ;;  %v5502_v22 = vmul.f32 %v5475_v6, %v826_v2  ;;  %v1174_v24 = vmul.f32 %v5465_v61, %v824_v10 }
  0xa8   : > { %v898_v21 = vadd.f32 %v866_v8, %v762_v7  ;;  %v896_v23 = vadd.f32 %v864_v13, %v760_v12  ;;  %v724_v25 = vld [vmem:[#allocation2 + $0x38] sm:$0xff]  ;;  %v564_v28 = vpop.permute.xlu1 %563  ;;  %v559_v29 = vpop.permute.xlu0 %558  ;;  %v722_v42 = vld [vmem:[#allocation2 + $0x20] sm:$0xff] }
  0xa9   : > { %v827_v26 = vld [vmem:[#allocation2 + $0x39] sm:$0xff]  ;;  %v1102_v30 = vadd.f32 %v1070_v19, %v998_v9  ;;  %v763_v32 = vmul.f32 %v5423_v34, %v724_v25  ;;  %694 = vst.msk [vmem:[#allocation2 + $0x69] sm:$0xff] %vm411_vm0, %v564_v28  ;;  %693 = vst.msk [vmem:[#allocation2 + $0x61] sm:$0xff] %vm411_vm0, %v559_v29  ;;  %v1073_v39 = vmul.f32 %v5460_v60, %v724_v25  ;;  %v825_v43 = vld [vmem:[#allocation2 + $0x21] sm:$0xff] }
  0xaa   : > { %v930_v27 = vld [vmem:[#allocation2 + $0x32] sm:$0xff]  ;;  %v867_v33 = vmul.f32 %v5428_v35, %v827_v26  ;;  %v931_v36 = vld [vmem:[#allocation2 + $0x3a] sm:$0xff]  ;;  %v5519_v40 = vmul.f32 %v5465_v61, %v827_v26  ;;  %v929_v50 = vld [vmem:[#allocation2 + $0x22] sm:$0xff]  ;;  %v1384_v51 = vmul.f32 %v5470_v62, %v724_v25  ;;  %v5531_v52 = vmul.f32 %v5475_v6, %v827_v26 }
  0xab   : > { %v970_v37 = vmul.f32 %v5437_v45, %v930_v27  ;;  %v971_v38 = vmul.f32 %v5437_v45, %v931_v36  ;;  %v5522_v41 = vmul.f32 %v5498_v20, %v930_v27  ;;  %v928_v44 = vld [vmem:[#allocation2 + $0x1a] sm:$0xff]  ;;  %v1206_v46 = vadd.f32 %v1174_v24, %v1102_v30 }
  0xac   : > { %v899_v47 = vadd.f32 %v867_v33, %v763_v32  ;;  %v5527_v49 = vmul.f32 %v5498_v20, %v931_v36  ;;  %v1591_v53 = vmul.f32 %v5509_v31, %v930_v27  ;;  %v5535_v54 = vmul.f32 %v5509_v31, %v931_v36  ;;  %v829_v55 = vld [vmem:[#allocation2 + $0x51] sm:$0xff]  ;;  %v574_v56 = vpop.permute.xlu1 %573  ;;  %v569_v57 = vpop.permute.xlu0 %568  ;;  %v725_v13 = vld [vmem:[#allocation2 + $0x48] sm:$0xff] }
  0xad   : > { %v5524_v48 = vadd.f32 %v970_v37, %v898_v21  ;;  %v761_v59 = vmul.f32 %v5423_v34, %v722_v42  ;;  %v865_v63 = vmul.f32 %v5428_v35, %v825_v43  ;;  %v968_v0 = vmul.f32 %v5437_v45, %v928_v44  ;;  %v933_v2 = vld [vmem:[#allocation2 + $0x52] sm:$0xff]  ;;  %696 = vst.msk [vmem:[#allocation2 + $0x81] sm:$0xff] %vm411_vm0, %v574_v56  ;;  %v828_v25 = vld [vmem:[#allocation2 + $0x49] sm:$0xff]  ;;  %v5578_v56 = vld [vmem:[%s6505_s2] ss:$0 sm:$0xff] }
  0xae   : > { %v5537_v58 = vadd.f32 %v971_v38, %v899_v47  ;;  %695 = vst.msk [vmem:[#allocation2 + $0x79] sm:$0xff] %vm411_vm0, %v569_v57  ;;  %v969_v3 = vmul.f32 %v5437_v45, %v929_v50  ;;  %v1071_v4 = vmul.f32 %v5460_v60, %v722_v42  ;;  %v1175_v5 = vmul.f32 %v5465_v61, %v825_v43  ;;  %v726_v24 = vld [vmem:[#allocation2 + $0x50] sm:$0xff] }
  0xaf   : > { %v1278_v7 = vmul.f32 %v5498_v20, %v928_v44  ;;  %v897_v8 = vadd.f32 %v865_v63, %v761_v59  ;;  %v1000_v9 = vadd.f32 %v968_v0, %v896_v23  ;;  %v1279_v10 = vmul.f32 %v5498_v20, %v929_v50 }
  0xb0   : > { %v869_v12 = vmul.f32 %v5428_v35, %v829_v55  ;;  %v1103_v15 = vadd.f32 %v1071_v4, %v5486_v14  ;;  %v5552_v19 = vmul.f32 %v5437_v45, %v933_v2  ;;  %v1179_v21 = vmul.f32 %v5465_v61, %v829_v55  ;;  %v584_v26 = vpop.permute.xlu1 %583  ;;  %v579_v27 = vpop.permute.xlu0 %578  ;;  %v932_v14 = vld [vmem:[#allocation2 + $0x4a] sm:$0xff] }
  0xb1   : > { %v1310_v16 = vadd.f32 %v1278_v7, %v1206_v46  ;;  %v1001_v28 = vadd.f32 %v969_v3, %v897_v8  ;;  %v1104_v23 = vadd.f32 %v5482_v11, %v1000_v9  ;;  %v5557_v29 = vmul.f32 %v5498_v20, %v933_v2  ;;  %698 = vst.msk [vmem:[#allocation2 + $0x99] sm:$0xff] %vm411_vm0, %v584_v26  ;;  %v5589_v3 = vld [vmem:[%s6506_s3] ss:$0 sm:$0xff]  ;;  %v831_v8 = vld [vmem:[#allocation2 + $0x69] sm:$0xff] }
  0xb2   : > { %v5560_v30 = vmul.f32 %v5475_v6, %v829_v55  ;;  %697 = vst.msk [vmem:[#allocation2 + $0x91] sm:$0xff] %vm411_vm0, %v579_v27  ;;  %v1207_v32 = vadd.f32 %v1175_v5, %v1103_v15  ;;  %v5566_v36 = vmul.f32 %v5509_v31, %v933_v2  ;;  %v764_v37 = vmul.f32 %v5423_v34, %v725_v13  ;;  %v935_v9 = vld [vmem:[#allocation2 + $0x6a] sm:$0xff] }
  0xb3   : > { %v1415_v33 = vadd.f32 %v5492_v18, %v1310_v16  ;;  %v1105_v11 = vadd.f32 %v1073_v39, %v1001_v28  ;;  %v1208_v38 = vadd.f32 %v5489_v17, %v1104_v23  ;;  %v765_v42 = vmul.f32 %v5423_v34, %v726_v24 }
  0xb4   : > { %v868_v43 = vmul.f32 %v5428_v35, %v828_v25  ;;  %v1311_v44 = vadd.f32 %v1279_v10, %v1207_v32  ;;  %v972_v47 = vmul.f32 %v5437_v45, %v932_v14  ;;  %v1074_v50 = vmul.f32 %v5460_v60, %v725_v13  ;;  %v594_v18 = vpop.permute.xlu1 %593  ;;  %v589_v55 = vpop.permute.xlu0 %588 }
  0xb5   : > { %v1519_v46 = vadd.f32 %v5502_v22, %v1415_v33  ;;  %v1209_v17 = vadd.f32 %v5519_v40, %v1105_v11  ;;  %v1312_v39 = vadd.f32 %v5522_v41, %v1208_v38  ;;  %v901_v59 = vadd.f32 %v869_v12, %v765_v42  ;;  %700 = vst.msk [vmem:[#allocation2 + $0xb1] sm:$0xff] %vm411_vm0, %v594_v18  ;;  %v728_v11 = vld [vmem:[#allocation2 + $0x68] sm:$0xff] }
  0xb6   : > { %v900_v57 = vadd.f32 %v868_v43, %v764_v37  ;;  %699 = vst.msk [vmem:[#allocation2 + $0xa9] sm:$0xff] %vm411_vm0, %v589_v55  ;;  %v1416_v22 = vadd.f32 %v1384_v51, %v1311_v44  ;;  %v1075_v0 = vmul.f32 %v5460_v60, %v726_v24  ;;  %v1106_v2 = vadd.f32 %v1074_v50, %v5524_v48  ;;  %v830_v38 = vld [vmem:[#allocation2 + $0x61] sm:$0xff] }
  0xb7   : > { %v1623_v63 = vadd.f32 %v1591_v53, %v1519_v46  ;;  %v1313_v40 = vadd.f32 %v5527_v49, %v1209_v17  ;;  %v1178_v4 = vmul.f32 %v5465_v61, %v828_v25  ;;  %v1282_v5 = vmul.f32 %v5498_v20, %v932_v14  ;;  %v934_v50 = vld [vmem:[#allocation2 + $0x62] sm:$0xff] }
  0xb8   : > { %v1004_v41 = vadd.f32 %v972_v47, %v900_v57  ;;  %v1520_v7 = vadd.f32 %v5531_v52, %v1416_v22  ;;  %v1107_v53 = vadd.f32 %v1075_v0, %v5537_v58  ;;  %v1385_v48 = vmul.f32 %v5470_v62, %v725_v13  ;;  %v604_v10 = vpop.permute.xlu1 %603  ;;  %v599_v12 = vpop.permute.xlu0 %598 }
  0xb9   : > { %v1662_v51 = vmul.f32 %v5578_v56, %v1623_v63  ;;  %v1210_v15 = vadd.f32 %v1178_v4, %v1106_v2  ;;  %v1386_v49 = vmul.f32 %v5470_v62, %v726_v24  ;;  %v1489_v16 = vmul.f32 %v5475_v6, %v828_v25  ;;  %702 = vst.msk [vmem:[#allocation2 + $0xc9] sm:$0xff] %vm411_vm0, %v604_v10 }
  0xba   : > { %v1593_v26 = vmul.f32 %v5509_v31, %v932_v14  ;;  %701 = vst.msk [vmem:[#allocation2 + $0xc1] sm:$0xff] %vm411_vm0, %v599_v12  ;;  %v1624_v52 = vadd.f32 %v5535_v54, %v1520_v7  ;;  %v1211_v13 = vadd.f32 %v1179_v21, %v1107_v53  ;;  %v1417_v27 = vadd.f32 %v1385_v48, %v1312_v39  ;;  %v727_v54 = vld [vmem:[#allocation2 + $0x60] sm:$0xff] }
  0xbb   : > { %v5605_v58 = vadd.f32 %v5589_v3, %v1662_v51  ;;  %v1314_v28 = vadd.f32 %v1282_v5, %v1210_v15  ;;  %v1418_v23 = vadd.f32 %v1386_v49, %v1313_v40  ;;  %v871_v32 = vmul.f32 %v5428_v35, %v831_v8  ;;  %v833_v49 = vld [vmem:[#allocation2 + $0x81] sm:$0xff] }
  0xbc   : > { %v5609_v24 = vmul.f32 %v5437_v45, %v935_v9  ;;  %v1663_v25 = vmul.f32 %v5578_v56, %v1624_v52  ;;  %v1521_v33 = vadd.f32 %v1489_v16, %v1417_v27  ;;  %v1181_v37 = vmul.f32 %v5465_v61, %v831_v8  ;;  %v614_v42 = vpop.permute.xlu1 %613  ;;  %v609_v21 = vpop.permute.xlu0 %608 }
  0xbd   : > { %v1733_v14 = vmax.f32 %v5605_v58, 0.0  ;;  %v1522_v43 = vadd.f32 %v5560_v30, %v1418_v23  ;;  %v5616_v44 = vmul.f32 %v5498_v20, %v935_v9  ;;  %v1492_v46 = vmul.f32 %v5475_v6, %v831_v8  ;;  %704 = vst.msk [vmem:[#allocation2 + $0xe1] sm:$0xff] %vm411_vm0, %v614_v42  ;;  %703 = vst.msk [vmem:[#allocation2 + $0xd9] sm:$0xff] %vm411_vm0, %v609_v21 }
  0xbe   : > { %v5620_v47 = vmul.f32 %v5509_v31, %v935_v9  ;;  %v1702_v18 = vadd.f32 %v5589_v3, %v1663_v25  ;;  %v1625_v55 = vadd.f32 %v1593_v26, %v1521_v33  ;;  %v1005_v17 = vadd.f32 %v5552_v19, %v901_v59 }
  0xbf   : > { %v1315_v30 = vadd.f32 %v5557_v29, %v1211_v13  ;;  %v1626_v39 = vadd.f32 %v5566_v36, %v1522_v43  ;;  %v766_v57 = vmul.f32 %v5423_v34, %v727_v54  ;;  %v767_v22 = vmul.f32 %v5423_v34, %v728_v11  ;;  %v937_v13 = vld [vmem:[#allocation2 + $0x82] sm:$0xff] }
  0xc0   : > { %v870_v63 = vmul.f32 %v5428_v35, %v830_v38  ;;  %v1734_v0 = vmax.f32 %v1702_v18, 0.0  ;;  %v1664_v2 = vmul.f32 %v5578_v56, %v1625_v55  ;;  %v974_v40 = vmul.f32 %v5437_v45, %v934_v50  ;;  %v624_v5 = vpop.permute.xlu1 %623  ;;  %v619_v7 = vpop.permute.xlu0 %618 }
  0xc1   : > { %v1076_v4 = vmul.f32 %v5460_v60, %v727_v54  ;;  %v1665_v19 = vmul.f32 %v5578_v56, %v1626_v39  ;;  %v903_v59 = vadd.f32 %v871_v32, %v767_v22  ;;  %v1077_v36 = vmul.f32 %v5460_v60, %v728_v11  ;;  %706 = vst.msk [vmem:[#allocation2 + $0xf9] sm:$0xff] %vm411_vm0, %v624_v5 }
  0xc2   : > { %v902_v29 = vadd.f32 %v870_v63, %v766_v57  ;;  %705 = vst.msk [vmem:[#allocation2 + $0xf1] sm:$0xff] %vm411_vm0, %v619_v7  ;;  %v1703_v51 = vadd.f32 %v5589_v3, %v1664_v2  ;;  %v1180_v48 = vmul.f32 %v5465_v61, %v830_v38  ;;  %v1284_v8 = vmul.f32 %v5498_v20, %v934_v50 }
  0xc3   : > { %v1108_v53 = vadd.f32 %v1076_v4, %v1004_v41  ;;  %v1704_v9 = vadd.f32 %v5589_v3, %v1665_v19  ;;  %v1109_v12 = vadd.f32 %v1077_v36, %v1005_v17  ;;  %v1387_v15 = vmul.f32 %v5470_v62, %v727_v54  ;;  %v832_v17 = vld [vmem:[#allocation2 + $0x79] sm:$0xff] }
  0xc4   : > { %v1006_v10 = vadd.f32 %v974_v40, %v902_v29  ;;  %v1735_v16 = vmax.f32 %v1703_v51, 0.0  ;;  %v1388_v52 = vmul.f32 %v5470_v62, %v728_v11  ;;  %v1491_v58 = vmul.f32 %v5475_v6, %v830_v38  ;;  %v634_v27 = vpop.permute.xlu1 %633  ;;  %v629_v41 = vpop.permute.xlu0 %628  ;;  %v729_v11 = vld [vmem:[#allocation2 + $0x78] sm:$0xff] }
  0xc5   : > { %v1212_v26 = vadd.f32 %v1180_v48, %v1108_v53  ;;  %v1736_v23 = vmax.f32 %v1704_v9, 0.0  ;;  %v1213_v32 = vadd.f32 %v1181_v37, %v1109_v12  ;;  %v1419_v25 = vadd.f32 %v1387_v15, %v1314_v28  ;;  %708 = vst.msk [vmem:[#allocation2 + $0x111] sm:$0xff] %vm411_vm0, %v634_v27  ;;  %707 = vst.msk [vmem:[#allocation2 + $0x109] sm:$0xff] %vm411_vm0, %v629_v41  ;;  %v730_v28 = vld [vmem:[#allocation2 + $0x80] sm:$0xff] }
  0xc6   : > { %v1595_v33 = vmul.f32 %v5509_v31, %v934_v50  ;;  %v1765_v54 = vmax.f32 %v1733_v14, %v1735_v16  ;;  %v1420_v21 = vadd.f32 %v1388_v52, %v1315_v30  ;;  %v873_v43 = vmul.f32 %v5428_v35, %v833_v49  ;;  %v936_v50 = vld [vmem:[#allocation2 + $0x7a] sm:$0xff] }
  0xc7   : > { %v1316_v42 = vadd.f32 %v1284_v8, %v1212_v26  ;;  %v1766_v18 = vmax.f32 %v1734_v0, %v1736_v23  ;;  %v1523_v38 = vadd.f32 %v1491_v58, %v1419_v25  ;;  %v5650_v55 = vmul.f32 %v5437_v45, %v937_v13  ;;  %v835_v16 = vld [vmem:[#allocation2 + $0x99] sm:$0xff] }
  0xc8   : > { %v1183_v37 = vmul.f32 %v5465_v61, %v833_v49  ;;  %1767 = vst.msk [vmem:[#allocation5] sm:$0xff] %vm411_vm0, %v1765_v54  ;;  %v1524_v39 = vadd.f32 %v1492_v46, %v1420_v21  ;;  %v5655_v14 = vmul.f32 %v5498_v20, %v937_v13  ;;  %v1494_v30 = vmul.f32 %v5475_v6, %v833_v49  ;;  %v644_v22 = vpop.permute.xlu1 %643  ;;  %v639_v63 = vpop.permute.xlu0 %638  ;;  %v939_v27 = vld [vmem:[#allocation2 + $0x9a] sm:$0xff] }
  0xc9   : > { %v5659_v57 = vmul.f32 %v5509_v31, %v937_v13  ;;  %1768 = vst.msk [vmem:[#allocation5 + $0x8] sm:$0xff] %vm411_vm0, %v1766_v18  ;;  %v1627_v0 = vadd.f32 %v1595_v33, %v1523_v38  ;;  %v1007_v2 = vadd.f32 %v5609_v24, %v903_v59  ;;  %v1317_v40 = vadd.f32 %v5616_v44, %v1213_v32 }
  0xca   : > { %v768_v4 = vmul.f32 %v5423_v34, %v729_v11  ;;  %710 = vst.msk [vmem:[#allocation2 + $0x129] sm:$0xff] %vm411_vm0, %v644_v22  ;;  %709 = vst.msk [vmem:[#allocation2 + $0x121] sm:$0xff] %vm411_vm0, %v639_v63  ;;  %v1628_v46 = vadd.f32 %v5620_v47, %v1524_v39  ;;  %v769_v5 = vmul.f32 %v5423_v34, %v730_v28  ;;  %v732_v22 = vld [vmem:[#allocation2 + $0x98] sm:$0xff] }
  0xcb   : > { %v872_v7 = vmul.f32 %v5428_v35, %v832_v17  ;;  %v976_v19 = vmul.f32 %v5437_v45, %v936_v50  ;;  %v1666_v29 = vmul.f32 %v5578_v56, %v1627_v0  ;;  %v1078_v24 = vmul.f32 %v5460_v60, %v729_v11 }
  0xcc   : > { %v1079_v44 = vmul.f32 %v5460_v60, %v730_v28  ;;  %v1182_v59 = vmul.f32 %v5465_v61, %v832_v17  ;;  %v1667_v36 = vmul.f32 %v5578_v56, %v1628_v46  ;;  %v905_v53 = vadd.f32 %v873_v43, %v769_v5  ;;  %v654_v48 = vpop.permute.xlu1 %653  ;;  %v649_v8 = vpop.permute.xlu0 %648  ;;  %v731_v43 = vld [vmem:[#allocation2 + $0x90] sm:$0xff] }
  0xcd   : > { %v904_v51 = vadd.f32 %v872_v7, %v768_v4  ;;  %v1286_v47 = vmul.f32 %v5498_v20, %v936_v50  ;;  %v5678_v9 = vadd.f32 %v5589_v3, %v1666_v29  ;;  %v1110_v12 = vadd.f32 %v1078_v24, %v1006_v10  ;;  %712 = vst.msk [vmem:[#allocation2 + $0x141] sm:$0xff] %vm411_vm0, %v654_v48 }
  0xce   : > { %v1111_v15 = vadd.f32 %v1079_v44, %v1007_v2  ;;  %v1389_v49 = vmul.f32 %v5470_v62, %v729_v11  ;;  %711 = vst.msk [vmem:[#allocation2 + $0x139] sm:$0xff] %vm411_vm0, %v649_v8  ;;  %v5684_v26 = vadd.f32 %v5589_v3, %v1667_v36  ;;  %v1390_v58 = vmul.f32 %v5470_v62, %v730_v28 }
  0xcf   : > { %v1008_v52 = vadd.f32 %v976_v19, %v904_v51  ;;  %v1493_v13 = vmul.f32 %v5475_v6, %v832_v17  ;;  %v1737_v41 = vmax.f32 %v5678_v9, 0.0  ;;  %v1214_v10 = vadd.f32 %v1182_v59, %v1110_v12 }
  0xd0   : > { %v1215_v23 = vadd.f32 %v1183_v37, %v1111_v15  ;;  %v1421_v32 = vadd.f32 %v1389_v49, %v1316_v42  ;;  %v1738_v25 = vmax.f32 %v5684_v26, 0.0  ;;  %v1422_v33 = vadd.f32 %v1390_v58, %v1317_v40  ;;  %v664_v11 = vpop.permute.xlu1 %663  ;;  %v659_v18 = vpop.permute.xlu0 %658  ;;  %v834_v37 = vld [vmem:[#allocation2 + $0x91] sm:$0xff] }
  0xd1   : > { %v1597_v54 = vmul.f32 %v5509_v31, %v936_v50  ;;  %v875_v21 = vmul.f32 %v5428_v35, %v835_v16  ;;  %v1318_v38 = vadd.f32 %v1286_v47, %v1214_v10  ;;  %v5693_v17 = vmul.f32 %v5437_v45, %v939_v27  ;;  %v938_v42 = vld [vmem:[#allocation2 + $0x92] sm:$0xff]  ;;  %714 = vst.msk [vmem:[#allocation2 + $0x159] sm:$0xff] %vm411_vm0, %v664_v11 }
  0xd2   : > { %v1525_v28 = vadd.f32 %v1493_v13, %v1421_v32  ;;  %v1185_v39 = vmul.f32 %v5465_v61, %v835_v16  ;;  %713 = vst.msk [vmem:[#allocation2 + $0x151] sm:$0xff] %vm411_vm0, %v659_v18  ;;  %v1526_v50 = vadd.f32 %v1494_v30, %v1422_v33  ;;  %v5699_v63 = vmul.f32 %v5498_v20, %v939_v27  ;;  %v837_v49 = vld [vmem:[#allocation2 + $0xb1] sm:$0xff] }
  0xd3   : > { %v1496_v0 = vmul.f32 %v5475_v6, %v835_v16  ;;  %v1600_v2 = vmul.f32 %v5509_v31, %v939_v27  ;;  %v1009_v4 = vadd.f32 %v5650_v55, %v905_v53  ;;  %v1319_v46 = vadd.f32 %v5655_v14, %v1215_v23  ;;  %v941_v10 = vld [vmem:[#allocation2 + $0xb2] sm:$0xff] }
  0xd4   : > { %v1629_v40 = vadd.f32 %v1597_v54, %v1525_v28  ;;  %v770_v5 = vmul.f32 %v5423_v34, %v731_v43  ;;  %v1630_v7 = vadd.f32 %v5659_v57, %v1526_v50  ;;  %v771_v19 = vmul.f32 %v5423_v34, %v732_v22  ;;  %v674_v24 = vpop.permute.xlu1 %673  ;;  %v669_v44 = vpop.permute.xlu0 %668 }
  0xd5   : > { %v874_v30 = vmul.f32 %v5428_v35, %v834_v37  ;;  %v978_v29 = vmul.f32 %v5437_v45, %v938_v42  ;;  %v1080_v36 = vmul.f32 %v5460_v60, %v731_v43  ;;  %v1081_v55 = vmul.f32 %v5460_v60, %v732_v22  ;;  %716 = vst.msk [vmem:[#allocation2 + $0x171] sm:$0xff] %vm411_vm0, %v674_v24 }
  0xd6   : > { %v1668_v59 = vmul.f32 %v5578_v56, %v1629_v40  ;;  %v1184_v14 = vmul.f32 %v5465_v61, %v834_v37  ;;  %715 = vst.msk [vmem:[#allocation2 + $0x169] sm:$0xff] %vm411_vm0, %v669_v44  ;;  %v1669_v57 = vmul.f32 %v5578_v56, %v1630_v7  ;;  %v907_v53 = vadd.f32 %v875_v21, %v771_v19  ;;  %v940_v19 = vld [vmem:[#allocation2 + $0xaa] sm:$0xff] }
  0xd7   : > { %v906_v51 = vadd.f32 %v874_v30, %v770_v5  ;;  %v1288_v47 = vmul.f32 %v5498_v20, %v938_v42  ;;  %v1112_v8 = vadd.f32 %v1080_v36, %v1008_v52  ;;  %v1113_v12 = vadd.f32 %v1081_v55, %v1009_v4  ;;  %v733_v4 = vld [vmem:[#allocation2 + $0xa8] sm:$0xff] }
  0xd8   : > { %v1707_v48 = vadd.f32 %v5589_v3, %v1668_v59  ;;  %v1391_v15 = vmul.f32 %v5470_v62, %v731_v43  ;;  %v1708_v16 = vadd.f32 %v5589_v3, %v1669_v57  ;;  %v1392_v13 = vmul.f32 %v5470_v62, %v732_v22  ;;  %v684_v23 = vpop.permute.xlu1 %683  ;;  %v679_v32 = vpop.permute.xlu0 %678 }
  0xd9   : > { %v1010_v58 = vadd.f32 %v978_v29, %v906_v51  ;;  %v1495_v27 = vmul.f32 %v5475_v6, %v834_v37  ;;  %v1216_v54 = vadd.f32 %v1184_v14, %v1112_v8  ;;  %v1217_v21 = vadd.f32 %v1185_v39, %v1113_v12  ;;  %718 = vst.msk [vmem:[#allocation2 + $0x189] sm:$0xff] %vm411_vm0, %v684_v23  ;;  %v734_v39 = vld [vmem:[#allocation2 + $0xb0] sm:$0xff] }
  0xda   : > { %v1739_v33 = vmax.f32 %v1707_v48, 0.0  ;;  %v1423_v11 = vadd.f32 %v1391_v15, %v1318_v38  ;;  %717 = vst.msk [vmem:[#allocation2 + $0x181] sm:$0xff] %vm411_vm0, %v679_v32  ;;  %v1740_v52 = vmax.f32 %v1708_v16, 0.0  ;;  %v1424_v43 = vadd.f32 %v1392_v13, %v1319_v46  ;;  %v943_v16 = vld [vmem:[#allocation2 + $0xca] sm:$0xff] }
  0xdb   : > { %v1599_v18 = vmul.f32 %v5509_v31, %v938_v42  ;;  %v877_v28 = vmul.f32 %v5428_v35, %v837_v49  ;;  %v1320_v37 = vadd.f32 %v1288_v47, %v1216_v54  ;;  %v981_v40 = vmul.f32 %v5437_v45, %v941_v10  ;;  %v836_v42 = vld [vmem:[#allocation2 + $0xa9] sm:$0xff] }
  0xdc   : > { %v1769_v22 = vmax.f32 %v1737_v41, %v1739_v33  ;;  %v1527_v50 = vadd.f32 %v1495_v27, %v1423_v11  ;;  %v1770_v38 = vmax.f32 %v1738_v25, %v1740_v52  ;;  %v1528_v5 = vadd.f32 %v1496_v0, %v1424_v43 }
  0xdd   : > { %v1187_v7 = vmul.f32 %v5465_v61, %v837_v49  ;;  %v1291_v46 = vmul.f32 %v5498_v20, %v941_v10  ;;  %v1498_v41 = vmul.f32 %v5475_v6, %v837_v49  ;;  %v1602_v30 = vmul.f32 %v5509_v31, %v941_v10  ;;  %v839_v49 = vld [vmem:[#allocation2 + $0xc9] sm:$0xff] }
  0xde   : > { %1772 = vst.msk [vmem:[#allocation5 + $0x10] sm:$0xff] %vm411_vm0, %v1769_v22  ;;  %v1631_v9 = vadd.f32 %v1599_v18, %v1527_v50  ;;  %v1011_v29 = vadd.f32 %v5693_v17, %v907_v53  ;;  %1773 = vst.msk [vmem:[#allocation5 + $0x18] sm:$0xff] %vm411_vm0, %v1770_v38  ;;  %v1632_v26 = vadd.f32 %v1600_v2, %v1528_v5  ;;  %v735_v18 = vld [vmem:[#allocation2 + $0xc0] sm:$0xff] }
  0xdf   : > { %v1321_v25 = vadd.f32 %v5699_v63, %v1217_v21  ;;  %v772_v0 = vmul.f32 %v5423_v34, %v733_v4  ;;  %v773_v24 = vmul.f32 %v5423_v34, %v734_v39  ;;  %v876_v59 = vmul.f32 %v5428_v35, %v836_v42  ;;  %v838_v38 = vld [vmem:[#allocation2 + $0xc1] sm:$0xff] }
  0xe0   : > { %v1670_v44 = vmul.f32 %v5578_v56, %v1631_v9  ;;  %v980_v36 = vmul.f32 %v5437_v45, %v940_v19  ;;  %v1082_v55 = vmul.f32 %v5460_v60, %v733_v4  ;;  %v1671_v14 = vmul.f32 %v5578_v56, %v1632_v26  ;;  %v942_v5 = vld [vmem:[#allocation2 + $0xc2] sm:$0xff] }
  0xe1   : > { %v909_v17 = vadd.f32 %v877_v28, %v773_v24  ;;  %v1083_v57 = vmul.f32 %v5460_v60, %v734_v39  ;;  %v1186_v2 = vmul.f32 %v5465_v61, %v836_v42  ;;  %v908_v51 = vadd.f32 %v876_v59, %v772_v0  ;;  %v736_v28 = vld [vmem:[#allocation2 + $0xc8] sm:$0xff] }
  0xe2   : > { %v5750_v63 = vadd.f32 %v5589_v3, %v1670_v44  ;;  %v1114_v53 = vadd.f32 %v1082_v55, %v1010_v58  ;;  %v1290_v47 = vmul.f32 %v5498_v20, %v940_v19  ;;  %v5754_v48 = vadd.f32 %v5589_v3, %v1671_v14 }
  0xe3   : > { %v1115_v8 = vadd.f32 %v1083_v57, %v1011_v29  ;;  %v1393_v12 = vmul.f32 %v5470_v62, %v733_v4  ;;  %v1394_v15 = vmul.f32 %v5470_v62, %v734_v39  ;;  %v1012_v27 = vadd.f32 %v980_v36, %v908_v51 }
  0xe4   : > { %v1741_v13 = vmax.f32 %v5750_v63, 0.0  ;;  %v1218_v10 = vadd.f32 %v1186_v2, %v1114_v53  ;;  %v1497_v23 = vmul.f32 %v5475_v6, %v836_v42  ;;  %v1742_v58 = vmax.f32 %v5754_v48, 0.0  ;;  %v841_v53 = vld [vmem:[#allocation2 + $0xe1] sm:$0xff] }
  0xe5   : > { %v1219_v32 = vadd.f32 %v1187_v7, %v1115_v8  ;;  %v1425_v33 = vadd.f32 %v1393_v12, %v1320_v37  ;;  %v1426_v54 = vadd.f32 %v1394_v15, %v1321_v25  ;;  %v1601_v11 = vmul.f32 %v5509_v31, %v940_v19 }
  0xe6   : > { %v1322_v21 = vadd.f32 %v1290_v47, %v1218_v10  ;;  %v879_v52 = vmul.f32 %v5428_v35, %v839_v49  ;;  %v5764_v43 = vmul.f32 %v5437_v45, %v943_v16  ;;  %v1189_v4 = vmul.f32 %v5465_v61, %v839_v49  ;;  %v945_v47 = vld [vmem:[#allocation2 + $0xe2] sm:$0xff] }
  0xe7   : > { %v1529_v22 = vadd.f32 %v1497_v23, %v1425_v33  ;;  %v1530_v50 = vadd.f32 %v1498_v41, %v1426_v54  ;;  %v1293_v39 = vmul.f32 %v5498_v20, %v943_v16  ;;  %v1500_v37 = vmul.f32 %v5475_v6, %v839_v49 }
  0xe8   : > { %v1604_v7 = vmul.f32 %v5509_v31, %v943_v16  ;;  %v1013_v42 = vadd.f32 %v981_v40, %v909_v17  ;;  %v1323_v19 = vadd.f32 %v1291_v46, %v1219_v32  ;;  %v774_v26 = vmul.f32 %v5423_v34, %v735_v18 }
  0xe9   : > { %v1633_v9 = vadd.f32 %v1601_v11, %v1529_v22  ;;  %v1634_v29 = vadd.f32 %v1602_v30, %v1530_v50  ;;  %v775_v25 = vmul.f32 %v5423_v34, %v736_v28  ;;  %v878_v41 = vmul.f32 %v5428_v35, %v838_v38  ;;  %v737_v11 = vld [vmem:[#allocation2 + $0xd8] sm:$0xff]  ;;  %v738_v50 = vld [vmem:[#allocation2 + $0xe0] sm:$0xff] }
  0xea   : > { %v982_v0 = vmul.f32 %v5437_v45, %v942_v5  ;;  %v1084_v24 = vmul.f32 %v5460_v60, %v735_v18  ;;  %v1085_v44 = vmul.f32 %v5460_v60, %v736_v28  ;;  %v1188_v46 = vmul.f32 %v5465_v61, %v838_v38 }
  0xeb   : > { %v1672_v59 = vmul.f32 %v5578_v56, %v1633_v9  ;;  %v1673_v36 = vmul.f32 %v5578_v56, %v1634_v29  ;;  %v911_v40 = vadd.f32 %v879_v52, %v775_v25  ;;  %v910_v30 = vadd.f32 %v878_v41, %v774_v26 }
  0xec   : > { %v1116_v55 = vadd.f32 %v1084_v24, %v1012_v27  ;;  %v1117_v14 = vadd.f32 %v1085_v44, %v1013_v42  ;;  %v1292_v17 = vmul.f32 %v5498_v20, %v942_v5  ;;  %v1395_v63 = vmul.f32 %v5470_v62, %v735_v18  ;;  %v944_v42 = vld [vmem:[#allocation2 + $0xda] sm:$0xff] }
  0xed   : > { %v1711_v57 = vadd.f32 %v5589_v3, %v1672_v59  ;;  %v1712_v2 = vadd.f32 %v5589_v3, %v1673_v36  ;;  %v1396_v51 = vmul.f32 %v5470_v62, %v736_v28  ;;  %v1014_v48 = vadd.f32 %v982_v0, %v910_v30 }
  0xee   : > { %v1220_v8 = vadd.f32 %v1188_v46, %v1116_v55  ;;  %v1221_v12 = vadd.f32 %v1189_v4, %v1117_v14  ;;  %v1499_v15 = vmul.f32 %v5475_v6, %v838_v38  ;;  %v1427_v27 = vadd.f32 %v1395_v63, %v1322_v21  ;;  %v840_v4 = vld [vmem:[#allocation2 + $0xd9] sm:$0xff] }
  0xef   : > { %v1743_v49 = vmax.f32 %v1711_v57, 0.0  ;;  %v1744_v16 = vmax.f32 %v1712_v2, 0.0  ;;  %v1428_v10 = vadd.f32 %v1396_v51, %v1323_v19  ;;  %v1603_v32 = vmul.f32 %v5509_v31, %v942_v5  ;;  %v843_v55 = vld [vmem:[#allocation2 + $0xf9] sm:$0xff] }
  0xf0   : > { %v1324_v23 = vadd.f32 %v1292_v17, %v1220_v8  ;;  %v881_v33 = vmul.f32 %v5428_v35, %v841_v53  ;;  %v985_v54 = vmul.f32 %v5437_v45, %v945_v47  ;;  %v1531_v28 = vadd.f32 %v1499_v15, %v1427_v27  ;;  %v947_v63 = vld [vmem:[#allocation2 + $0xfa] sm:$0xff] }
  0xf1   : > { %v1774_v52 = vmax.f32 %v1741_v13, %v1743_v49  ;;  %v1775_v18 = vmax.f32 %v1742_v58, %v1744_v16  ;;  %v1532_v22 = vadd.f32 %v1500_v37, %v1428_v10  ;;  %v1191_v38 = vmul.f32 %v5465_v61, %v841_v53  ;;  %v739_v16 = vld [vmem:[#allocation2 + $0xf0] sm:$0xff]  ;;  %v740_v27 = vld [vmem:[#allocation2 + $0xf8] sm:$0xff] }
  0xf2   : > { %v1295_v21 = vmul.f32 %v5498_v20, %v945_v47  ;;  %v1502_v19 = vmul.f32 %v5475_v6, %v841_v53  ;;  %v1606_v5 = vmul.f32 %v5509_v31, %v945_v47  ;;  %v1635_v9 = vadd.f32 %v1603_v32, %v1531_v28 }
  0xf3   : > { %1777 = vst.msk [vmem:[#allocation5 + $0x20] sm:$0xff] %vm411_vm0, %v1774_v52  ;;  %1778 = vst.msk [vmem:[#allocation5 + $0x28] sm:$0xff] %vm411_vm0, %v1775_v18  ;;  %v1636_v13 = vadd.f32 %v1604_v7, %v1532_v22  ;;  %v1015_v58 = vadd.f32 %v5764_v43, %v911_v40  ;;  %v1325_v37 = vadd.f32 %v1293_v39, %v1221_v12  ;;  %v842_v52 = vld [vmem:[#allocation2 + $0xf1] sm:$0xff] }
  0xf4   : > { %v776_v29 = vmul.f32 %v5423_v34, %v737_v11  ;;  %v777_v26 = vmul.f32 %v5423_v34, %v738_v50  ;;  %v880_v25 = vmul.f32 %v5428_v35, %v840_v4  ;;  %v984_v41 = vmul.f32 %v5437_v45, %v944_v42  ;;  %v946_v18 = vld [vmem:[#allocation2 + $0xf2] sm:$0xff] }
  0xf5   : > { %v1674_v0 = vmul.f32 %v5578_v56, %v1635_v9  ;;  %v1675_v24 = vmul.f32 %v5578_v56, %v1636_v13  ;;  %v1086_v44 = vmul.f32 %v5460_v60, %v737_v11  ;;  %v1087_v59 = vmul.f32 %v5460_v60, %v738_v50 }
  0xf6   : > { %v912_v7 = vadd.f32 %v880_v25, %v776_v29  ;;  %v913_v36 = vadd.f32 %v881_v33, %v777_v26  ;;  %v1190_v43 = vmul.f32 %v5465_v61, %v840_v4  ;;  %v1294_v39 = vmul.f32 %v5498_v20, %v944_v42 }
  0xf7   : > { %v5806_v34 = vadd.f32 %v5589_v3, %v1674_v0  ;;  %v5809_v40 = vadd.f32 %v5589_v3, %v1675_v24  ;;  %v1118_v46 = vadd.f32 %v1086_v44, %v1014_v48  ;;  %v1119_v30 = vadd.f32 %v1087_v59, %v1015_v58 }
  0xf8   : > { %v1016_v14 = vadd.f32 %v984_v41, %v912_v7  ;;  %v1397_v17 = vmul.f32 %v5470_v62, %v737_v11  ;;  %v1398_v57 = vmul.f32 %v5470_v62, %v738_v50  ;;  %v1501_v2 = vmul.f32 %v5475_v6, %v840_v4 }
  0xf9   : > { %v1745_v51 = vmax.f32 %v5806_v34, 0.0  ;;  %v1746_v53 = vmax.f32 %v5809_v40, 0.0  ;;  %v1222_v47 = vadd.f32 %v1190_v43, %v1118_v46  ;;  %v1223_v8 = vadd.f32 %v1191_v38, %v1119_v30  ;;  %v949_v46 = vld [vmem:[#allocation2 + $0x112] sm:$0xff]  ;;  %v5876_v34 = vld [vmem:[%s6521_s1 + $0x7] ss:$0 sm:$0xff] }
  0xfa   : > { %v1429_v12 = vadd.f32 %v1397_v17, %v1324_v23  ;;  %v1430_v15 = vadd.f32 %v1398_v57, %v1325_v37  ;;  %v1605_v48 = vmul.f32 %v5509_v31, %v944_v42  ;;  %v883_v49 = vmul.f32 %v5428_v35, %v843_v55  ;;  %v5830_v42 = vld [vmem:[%s6521_s1] ss:$0 sm:$0xff] }
  0xfb   : > { %v1326_v10 = vadd.f32 %v1294_v39, %v1222_v47  ;;  %v5819_v32 = vmul.f32 %v5437_v45, %v947_v63  ;;  %v1193_v33 = vmul.f32 %v5465_v61, %v843_v55  ;;  %v5823_v11 = vmul.f32 %v5498_v20, %v947_v63 }
  0xfc   : > { %v1533_v28 = vadd.f32 %v1501_v2, %v1429_v12  ;;  %v1534_v23 = vadd.f32 %v1502_v19, %v1430_v15  ;;  %v1504_v22 = vmul.f32 %v5475_v6, %v843_v55  ;;  %v1608_v50 = vmul.f32 %v5509_v31, %v947_v63  ;;  %v5837_v19 = vld [vmem:[%s6521_s1 + $0x1] ss:$0 sm:$0xff]  ;;  %v5857_v15 = vld [vmem:[%s6521_s1 + $0x2] ss:$0 sm:$0xff] }
  0xfd   : > { %v1017_v35 = vadd.f32 %v985_v54, %v913_v36  ;;  %v1327_v4 = vadd.f32 %v1295_v21, %v1223_v8  ;;  %v778_v38 = vmul.f32 %v5830_v42, %v739_v16  ;;  %v779_v9 = vmul.f32 %v5830_v42, %v740_v27  ;;  %v845_v36 = vld [vmem:[#allocation2 + $0x111] sm:$0xff] }
  0xfe   : > { %v1637_v13 = vadd.f32 %v1605_v48, %v1533_v28  ;;  %v1638_v58 = vadd.f32 %v1606_v5, %v1534_v23  ;;  %v882_v37 = vmul.f32 %v5837_v19, %v842_v52  ;;  %v986_v54 = vmul.f32 %v5437_v45, %v946_v18  ;;  %v741_v48 = vld [vmem:[#allocation2 + $0x108] sm:$0xff] }
  0xff   : > { %v915_v21 = vadd.f32 %v883_v49, %v779_v9  ;;  %v1088_v29 = vmul.f32 %v5460_v60, %v739_v16  ;;  %v1089_v26 = vmul.f32 %v5460_v60, %v740_v27  ;;  %v1192_v25 = vmul.f32 %v5465_v61, %v842_v52  ;;  %v742_v49 = vld [vmem:[#allocation2 + $0x110] sm:$0xff] }
 0x100   : > { %v1676_v41 = vmul.f32 %v5578_v56, %v1637_v13  ;;  %v1677_v5 = vmul.f32 %v5578_v56, %v1638_v58  ;;  %v914_v0 = vadd.f32 %v882_v37, %v778_v38  ;;  %v1296_v24 = vmul.f32 %v5498_v20, %v946_v18  ;;  %v948_v28 = vld [vmem:[#allocation2 + $0x10a] sm:$0xff]  ;;  %v5893_v58 = vld [vmem:[%s6521_s1 + $0x3] ss:$0 sm:$0xff] }
 0x101   : > { %v1120_v44 = vadd.f32 %v1088_v29, %v1016_v14  ;;  %v1121_v59 = vadd.f32 %v1089_v26, %v1017_v35  ;;  %v1399_v7 = vmul.f32 %v5470_v62, %v739_v16  ;;  %v1400_v45 = vmul.f32 %v5470_v62, %v740_v27  ;;  %v5907_v26 = vld [vmem:[%s6521_s1 + $0x5] ss:$0 sm:$0xff] }
 0x102   : > { %v1715_v43 = vadd.f32 %v5589_v3, %v1676_v41  ;;  %v1716_v60 = vadd.f32 %v5589_v3, %v1677_v5  ;;  %v1018_v39 = vadd.f32 %v986_v54, %v914_v0  ;;  %v1503_v61 = vmul.f32 %v5475_v6, %v842_v52  ;;  %v5913_v0 = vld [vmem:[%s6521_s1 + $0x6] ss:$0 sm:$0xff] }
 0x103   : > { %v1224_v30 = vadd.f32 %v1192_v25, %v1120_v44  ;;  %v1225_v55 = vadd.f32 %v1193_v33, %v1121_v59  ;;  %v1431_v17 = vadd.f32 %v1399_v7, %v1326_v10  ;;  %v1432_v57 = vadd.f32 %v1400_v45, %v1327_v4  ;;  %v5869_v10 = vld [vmem:[%s6521_s1 + $0x4] ss:$0 sm:$0xff]  ;;  %v847_v59 = vld [vmem:[#allocation2 + $0x129] sm:$0xff] }
 0x104   : > { %v1747_v2 = vmax.f32 %v1715_v43, 0.0  ;;  %v1748_v14 = vmax.f32 %v1716_v60, 0.0  ;;  %v1607_v63 = vmul.f32 %v5509_v31, %v946_v18  ;;  %v885_v47 = vmul.f32 %v5837_v19, %v845_v36  ;;  %v844_v18 = vld [vmem:[#allocation2 + $0x109] sm:$0xff] }
 0x105   : > { %v1328_v62 = vadd.f32 %v1296_v24, %v1224_v30  ;;  %v1535_v8 = vadd.f32 %v1503_v61, %v1431_v17  ;;  %v1536_v12 = vadd.f32 %v1504_v22, %v1432_v57  ;;  %v5860_v6 = vmul.f32 %v5857_v15, %v949_v46  ;;  %v951_v7 = vld [vmem:[#allocation2 + $0x12a] sm:$0xff] }
 0x106   : > { %v1779_v16 = vmax.f32 %v1745_v51, %v1747_v2  ;;  %v1780_v27 = vmax.f32 %v1746_v53, %v1748_v14  ;;  %v1195_v33 = vmul.f32 %v5869_v10, %v845_v36  ;;  %v1299_v52 = vmul.f32 %v5498_v20, %v949_v46 }
 0x107   : > { %v1639_v23 = vadd.f32 %v1607_v63, %v1535_v8  ;;  %v1640_v22 = vadd.f32 %v1608_v50, %v1536_v12  ;;  %v1506_v40 = vmul.f32 %v5876_v34, %v845_v36  ;;  %v1610_v51 = vmul.f32 %v5509_v31, %v949_v46  ;;  %v743_v63 = vld [vmem:[#allocation2 + $0x120] sm:$0xff] }
 0x108   : > { %1782 = vst.msk [vmem:[#allocation5 + $0x30] sm:$0xff] %vm411_vm0, %v1779_v16  ;;  %1783 = vst.msk [vmem:[#allocation5 + $0x38] sm:$0xff] %vm411_vm0, %v1780_v27  ;;  %v1019_v53 = vadd.f32 %v5819_v32, %v915_v21  ;;  %v1329_v20 = vadd.f32 %v5823_v11, %v1225_v55  ;;  %v780_v35 = vmul.f32 %v5830_v42, %v741_v48  ;;  %v5923_v55 = vld [vmem:[%s6521_s1 + $0x8] ss:$0 sm:$0xff]  ;;  %s5057_s1 = scalar_lea.vmem %s5056_s29, 32 }
 0x109   : > { %v781_v50 = vmul.f32 %v5830_v42, %v742_v49  ;;  %v1678_v4 = vmul.f32 %v5578_v56, %v1639_v23  ;;  %v1679_v38 = vmul.f32 %v5578_v56, %v1640_v22  ;;  %v884_v9 = vmul.f32 %v5837_v19, %v844_v18  ;;  %v950_v16 = vld [vmem:[#allocation2 + $0x122] sm:$0xff]  ;;  %p5059_p1 = scmp.lt.s32.totalorder %s5057_s1, %s5051_s28 }
 0x10a   : > { %v988_v31 = vmul.f32 %v5857_v15, %v948_v28  ;;  %v1090_v32 = vmul.f32 %v5893_v58, %v741_v48  ;;  %v1091_v11 = vmul.f32 %v5893_v58, %v742_v49  ;;  %v1194_v37 = vmul.f32 %v5869_v10, %v844_v18 }
 0x10b   : > { %v917_v13 = vadd.f32 %v885_v47, %v781_v50  ;;  %v5899_v54 = vadd.f32 %v5589_v3, %v1678_v4  ;;  %v5902_v21 = vadd.f32 %v5589_v3, %v1679_v38  ;;  %v916_v29 = vadd.f32 %v884_v9, %v780_v35  ;;  %v744_v47 = vld [vmem:[#allocation2 + $0x128] sm:$0xff]  ;;  %p5060_p2 = por %p5059_p1, %p5058_p0 }
 0x10c   : > { %v1298_v25 = vmul.f32 %v5907_v26, %v948_v28  ;;  %v1122_v41 = vadd.f32 %v1090_v32, %v1018_v39  ;;  %v1123_v5 = vadd.f32 %v1091_v11, %v1019_v53  ;;  %v1401_v24 = vmul.f32 %v5913_v0, %v741_v48 }
 0x10d   : > { %v1402_v44 = vmul.f32 %v5913_v0, %v742_v49  ;;  %v1749_v45 = vmax.f32 %v5899_v54, 0.0  ;;  %v1750_v36 = vmax.f32 %v5902_v21, 0.0  ;;  %v1020_v43 = vadd.f32 %v988_v31, %v916_v29  ;;  %v846_v49 = vld [vmem:[#allocation2 + $0x121] sm:$0xff]  ;;  %p5061_p3 = pnand %p5060_p2, %p5054_p13 }
 0x10e   : > { %v1505_v60 = vmul.f32 %v5876_v34, %v844_v18  ;;  %v1226_v39 = vadd.f32 %v1194_v37, %v1122_v41  ;;  %v1227_v61 = vadd.f32 %v1195_v33, %v1123_v5  ;;  %v1433_v46 = vadd.f32 %v1401_v24, %v1328_v62  ;;  %v849_v29 = vld [vmem:[#allocation2 + $0x141] sm:$0xff] }
 0x10f   : > { %v1434_v30 = vadd.f32 %v1402_v44, %v1329_v20  ;;  %v1609_v17 = vmul.f32 %v5923_v55, %v948_v28  ;;  %v887_v57 = vmul.f32 %v5837_v19, %v847_v59  ;;  %v5928_v2 = vmul.f32 %v5857_v15, %v951_v7 }
 0x110   : > { %v1197_v14 = vmul.f32 %v5869_v10, %v847_v59  ;;  %v1330_v8 = vadd.f32 %v1298_v25, %v1226_v39  ;;  %v1537_v12 = vadd.f32 %v1505_v60, %v1433_v46  ;;  %v1301_v48 = vmul.f32 %v5907_v26, %v951_v7  ;;  %v953_v25 = vld [vmem:[#allocation2 + $0x142] sm:$0xff]  ;;  %v745_v46 = vld [vmem:[#allocation2 + $0x138] sm:$0xff] }
 0x111   : > { %v1538_v62 = vadd.f32 %v1506_v40, %v1434_v30  ;;  %v1508_v27 = vmul.f32 %v5876_v34, %v847_v59  ;;  %v1612_v33 = vmul.f32 %v5923_v55, %v951_v7  ;;  %v1021_v18 = vadd.f32 %v5860_v6, %v917_v13 }
 0x112   : > { %v1331_v28 = vadd.f32 %v1299_v52, %v1227_v61  ;;  %v1641_v23 = vadd.f32 %v1609_v17, %v1537_v12  ;;  %v782_v53 = vmul.f32 %v5830_v42, %v743_v63  ;;  %v783_v20 = vmul.f32 %v5830_v42, %v744_v47  ;;  %v952_v12 = vld [vmem:[#allocation2 + $0x13a] sm:$0xff] }
 0x113   : > { %v1642_v22 = vadd.f32 %v1610_v51, %v1538_v62  ;;  %v886_v35 = vmul.f32 %v5837_v19, %v846_v49  ;;  %v990_v40 = vmul.f32 %v5857_v15, %v950_v16  ;;  %v1092_v50 = vmul.f32 %v5893_v58, %v743_v63 }
 0x114   : > { %v1093_v4 = vmul.f32 %v5893_v58, %v744_v47  ;;  %v1680_v38 = vmul.f32 %v5578_v56, %v1641_v23  ;;  %v919_v6 = vadd.f32 %v887_v57, %v783_v20  ;;  %v1196_v52 = vmul.f32 %v5869_v10, %v846_v49  ;;  %v5969_v20 = vld [vmem:[%s6505_s2] ss:$0 sm:$0xff] }
 0x115   : > { %v1681_v9 = vmul.f32 %v5578_v56, %v1642_v22  ;;  %v918_v51 = vadd.f32 %v886_v35, %v782_v53  ;;  %v1124_v31 = vadd.f32 %v1092_v50, %v1020_v43  ;;  %v1300_v32 = vmul.f32 %v5907_v26, %v950_v16 }
 0x116   : > { %v1125_v13 = vadd.f32 %v1093_v4, %v1021_v18  ;;  %v1719_v11 = vadd.f32 %v5589_v3, %v1680_v38  ;;  %v1403_v54 = vmul.f32 %v5913_v0, %v743_v63  ;;  %v1404_v21 = vmul.f32 %v5913_v0, %v744_v47  ;;  %v848_v47 = vld [vmem:[#allocation2 + $0x139] sm:$0xff] }
 0x117   : > { %v1720_v37 = vadd.f32 %v5589_v3, %v1681_v9  ;;  %v1022_v41 = vadd.f32 %v990_v40, %v918_v51  ;;  %v1228_v56 = vadd.f32 %v1196_v52, %v1124_v31  ;;  %v1507_v24 = vmul.f32 %v5876_v34, %v846_v49  ;;  %v5980_v9 = vld [vmem:[%s6506_s3] ss:$0 sm:$0xff] }
 0x118   : > { %v1229_v5 = vadd.f32 %v1197_v14, %v1125_v13  ;;  %v1751_v44 = vmax.f32 %v1719_v11, 0.0  ;;  %v1435_v7 = vadd.f32 %v1403_v54, %v1330_v8  ;;  %v1436_v43 = vadd.f32 %v1404_v21, %v1331_v28  ;;  %v746_v14 = vld [vmem:[#allocation2 + $0x140] sm:$0xff] }
 0x119   : > { %v1752_v59 = vmax.f32 %v1720_v37, 0.0  ;;  %v1332_v60 = vadd.f32 %v1300_v32, %v1228_v56  ;;  %v1611_v39 = vmul.f32 %v5923_v55, %v950_v16  ;;  %v889_v3 = vmul.f32 %v5837_v19, %v849_v29  ;;  %v851_v13 = vld [vmem:[#allocation2 + $0x159] sm:$0xff] }
 0x11a   : > { %v5953_v61 = vmul.f32 %v5857_v15, %v953_v25  ;;  %v1784_v30 = vmax.f32 %v1749_v45, %v1751_v44  ;;  %v1539_v57 = vadd.f32 %v1507_v24, %v1435_v7  ;;  %v1540_v63 = vadd.f32 %v1508_v27, %v1436_v43  ;;  %v955_v21 = vld [vmem:[#allocation2 + $0x15a] sm:$0xff]  ;;  %v747_v7 = vld [vmem:[#allocation2 + $0x150] sm:$0xff] }
 0x11b   : > { %v1785_v17 = vmax.f32 %v1750_v36, %v1752_v59  ;;  %v1199_v62 = vmul.f32 %v5869_v10, %v849_v29  ;;  %v1303_v8 = vmul.f32 %v5907_v26, %v953_v25  ;;  %v1510_v49 = vmul.f32 %v5876_v34, %v849_v29  ;;  %v748_v43 = vld [vmem:[#allocation2 + $0x158] sm:$0xff] }
 0x11c   : > { %v1614_v16 = vmul.f32 %v5923_v55, %v953_v25  ;;  %1787 = vst.msk [vmem:[#allocation5 + $0x40] sm:$0xff] %vm411_vm0, %v1784_v30  ;;  %v1643_v18 = vadd.f32 %v1611_v39, %v1539_v57  ;;  %v1644_v45 = vadd.f32 %v1612_v33, %v1540_v63  ;;  %v1023_v36 = vadd.f32 %v5928_v2, %v919_v6  ;;  %v954_v57 = vld [vmem:[#allocation2 + $0x152] sm:$0xff] }
 0x11d   : > { %1788 = vst.msk [vmem:[#allocation5 + $0x48] sm:$0xff] %vm411_vm0, %v1785_v17  ;;  %v1333_v27 = vadd.f32 %v1301_v48, %v1229_v5  ;;  %v784_v28 = vmul.f32 %v5830_v42, %v745_v46  ;;  %v785_v23 = vmul.f32 %v5830_v42, %v746_v14  ;;  %v888_v22 = vmul.f32 %v5837_v19, %v848_v47  ;;  %v850_v17 = vld [vmem:[#allocation2 + $0x151] sm:$0xff] }
 0x11e   : > { %v992_v53 = vmul.f32 %v5857_v15, %v952_v12  ;;  %v1682_v35 = vmul.f32 %v5969_v20, %v1643_v18  ;;  %v1683_v33 = vmul.f32 %v5969_v20, %v1644_v45  ;;  %v1094_v2 = vmul.f32 %v5893_v58, %v745_v46 }
 0x11f   : > { %v1095_v48 = vmul.f32 %v5893_v58, %v746_v14  ;;  %v920_v40 = vadd.f32 %v888_v22, %v784_v28  ;;  %v921_v50 = vadd.f32 %v889_v3, %v785_v23  ;;  %v1198_v4 = vmul.f32 %v5869_v10, %v848_v47 }
 0x120   : > { %v1302_v38 = vmul.f32 %v5907_v26, %v952_v12  ;;  %v5983_v6 = vadd.f32 %v5980_v9, %v1682_v35  ;;  %v5986_v52 = vadd.f32 %v5980_v9, %v1683_v33  ;;  %v1126_v51 = vadd.f32 %v1094_v2, %v1022_v41 }
 0x121   : > { %v1127_v31 = vadd.f32 %v1095_v48, %v1023_v36  ;;  %v1024_v32 = vadd.f32 %v992_v53, %v920_v40  ;;  %v1405_v11 = vmul.f32 %v5913_v0, %v745_v46  ;;  %v1406_v37 = vmul.f32 %v5913_v0, %v746_v14 }
 0x122   : > { %v1509_v54 = vmul.f32 %v5876_v34, %v848_v47  ;;  %v1753_v29 = vmax.f32 %v5983_v6, 0.0  ;;  %v1754_v25 = vmax.f32 %v5986_v52, 0.0  ;;  %v1230_v56 = vadd.f32 %v1198_v4, %v1126_v51  ;;  %v853_v4 = vld [vmem:[#allocation2 + $0x171] sm:$0xff] }
 0x123   : > { %v1231_v5 = vadd.f32 %v1199_v62, %v1127_v31  ;;  %v1437_v24 = vadd.f32 %v1405_v11, %v1332_v60  ;;  %v1438_v44 = vadd.f32 %v1406_v37, %v1333_v27  ;;  %v1613_v41 = vmul.f32 %v5923_v55, %v952_v12  ;;  %v957_v31 = vld [vmem:[#allocation2 + $0x172] sm:$0xff] }
 0x124   : > { %v891_v59 = vmul.f32 %v5837_v19, %v851_v13  ;;  %v1334_v39 = vadd.f32 %v1302_v38, %v1230_v56  ;;  %v995_v3 = vmul.f32 %v5857_v15, %v955_v21  ;;  %v1201_v46 = vmul.f32 %v5869_v10, %v851_v13 }
 0x125   : > { %v1305_v30 = vmul.f32 %v5907_v26, %v955_v21  ;;  %v1541_v63 = vadd.f32 %v1509_v54, %v1437_v24  ;;  %v1542_v14 = vadd.f32 %v1510_v49, %v1438_v44  ;;  %v1512_v60 = vmul.f32 %v5876_v34, %v851_v13 }
 0x126   : > { %v1616_v47 = vmul.f32 %v5923_v55, %v955_v21  ;;  %v1025_v12 = vadd.f32 %v5953_v61, %v921_v50  ;;  %v1335_v62 = vadd.f32 %v1303_v8, %v1231_v5  ;;  %v786_v18 = vmul.f32 %v5830_v42, %v747_v7 }
 0x127   : > { %v787_v45 = vmul.f32 %v5830_v42, %v748_v43  ;;  %v1645_v36 = vadd.f32 %v1613_v41, %v1541_v63  ;;  %v1646_v27 = vadd.f32 %v1614_v16, %v1542_v14  ;;  %v890_v28 = vmul.f32 %v5837_v19, %v850_v17  ;;  %v852_v14 = vld [vmem:[#allocation2 + $0x169] sm:$0xff] }
 0x128   : > { %v994_v23 = vmul.f32 %v5857_v15, %v954_v57  ;;  %v1096_v49 = vmul.f32 %v5893_v58, %v747_v7  ;;  %v1097_v53 = vmul.f32 %v5893_v58, %v748_v43  ;;  %v1200_v35 = vmul.f32 %v5869_v10, %v850_v17 }
 0x129   : > { %v923_v22 = vadd.f32 %v891_v59, %v787_v45  ;;  %v1684_v61 = vmul.f32 %v5969_v20, %v1645_v36  ;;  %v1685_v8 = vmul.f32 %v5969_v20, %v1646_v27  ;;  %v922_v33 = vadd.f32 %v890_v28, %v786_v18 }
 0x12a   : > { %v1304_v2 = vmul.f32 %v5907_v26, %v954_v57  ;;  %v1128_v48 = vadd.f32 %v1096_v49, %v1024_v32  ;;  %v1129_v16 = vadd.f32 %v1097_v53, %v1025_v12  ;;  %v1407_v40 = vmul.f32 %v5913_v0, %v747_v7  ;;  %v749_v7 = vld [vmem:[#allocation2 + $0x168] sm:$0xff] }
 0x12b   : > { %v1408_v50 = vmul.f32 %v5913_v0, %v748_v43  ;;  %v1723_v38 = vadd.f32 %v5980_v9, %v1684_v61  ;;  %v1724_v6 = vadd.f32 %v5980_v9, %v1685_v8  ;;  %v1026_v52 = vadd.f32 %v994_v23, %v922_v33  ;;  %v750_v43 = vld [vmem:[#allocation2 + $0x170] sm:$0xff]  ;;  %v1804_v8 = vld [vmem:[#allocation5] ss:$2 sm:$0xff] }
 0x12c   : > { %v1511_v51 = vmul.f32 %v5876_v34, %v850_v17  ;;  %v1232_v13 = vadd.f32 %v1200_v35, %v1128_v48  ;;  %v1233_v11 = vadd.f32 %v1201_v46, %v1129_v16  ;;  %v1439_v37 = vadd.f32 %v1407_v40, %v1334_v39  ;;  %v956_v12 = vld [vmem:[#allocation2 + $0x16a] sm:$0xff] }
 0x12d   : > { %v1440_v54 = vadd.f32 %v1408_v50, %v1335_v62  ;;  %v1755_v21 = vmax.f32 %v1723_v38, 0.0  ;;  %v1756_v32 = vmax.f32 %v1724_v6, 0.0  ;;  %v1615_v56 = vmul.f32 %v5923_v55, %v954_v57  ;;  %v1820_v48 = vld [vmem:[#allocation5 + $0x1] ss:$2 sm:$0xff] }
 0x12e   : > { %v893_v5 = vmul.f32 %v5837_v19, %v853_v4  ;;  %v1336_v24 = vadd.f32 %v1304_v2, %v1232_v13  ;;  %v1543_v44 = vadd.f32 %v1511_v51, %v1439_v37  ;;  %v6019_v59 = vmul.f32 %v5857_v15, %v957_v31  ;;  %v1165_v16 = vld [vmem:[#allocation2 + $0x189] sm:$0xff] }
 0x12f   : > { %v1544_v41 = vadd.f32 %v1512_v60, %v1440_v54  ;;  %v1789_v17 = vmax.f32 %v1753_v29, %v1755_v21  ;;  %v1790_v63 = vmax.f32 %v1754_v25, %v1756_v32  ;;  %v1203_v46 = vmul.f32 %v5869_v10, %v853_v4  ;;  %v1269_v40 = vld [vmem:[#allocation2 + $0x18a] sm:$0xff] }
 0x130   : > { %v1307_v39 = vmul.f32 %v5907_v26, %v957_v31  ;;  %v1647_v62 = vadd.f32 %v1615_v56, %v1543_v44  ;;  %v1514_v18 = vmul.f32 %v5876_v34, %v853_v4  ;;  %v1618_v45 = vmul.f32 %v5923_v55, %v957_v31  ;;  %v1374_v56 = vld [vmem:[#allocation2 + $0x1a0] sm:$0xff] }
 0x131   : > { %v1648_v57 = vadd.f32 %v1616_v47, %v1544_v41  ;;  %1792 = vst.msk [vmem:[#allocation5 + $0x50] sm:$0xff] %vm411_vm0, %v1789_v17  ;;  %1793 = vst.msk [vmem:[#allocation5 + $0x58] sm:$0xff] %vm411_vm0, %v1790_v63  ;;  %v1027_v60 = vadd.f32 %v995_v3, %v923_v22  ;;  %v1337_v36 = vadd.f32 %v1305_v30, %v1233_v11  ;;  %v1478_v44 = vld [vmem:[#allocation2 + $0x1a1] sm:$0xff] }
 0x132   : > { %v788_v29 = vmul.f32 %v5830_v42, %v749_v7  ;;  %v789_v25 = vmul.f32 %v5830_v42, %v750_v43  ;;  %v1686_v27 = vmul.f32 %v5969_v20, %v1647_v62  ;;  %v892_v47 = vmul.f32 %v5837_v19, %v852_v14  ;;  %v1581_v63 = vld [vmem:[#allocation2 + $0x19a] sm:$0xff] }
 0x133   : > { %v1687_v28 = vmul.f32 %v5969_v20, %v1648_v57  ;;  %v996_v23 = vmul.f32 %v5857_v15, %v956_v12  ;;  %v1098_v53 = vmul.f32 %v5893_v58, %v749_v7  ;;  %v1099_v35 = vmul.f32 %v5893_v58, %v750_v43 }
 0x134   : > { %v925_v49 = vadd.f32 %v893_v5, %v789_v25  ;;  %v1202_v3 = vmul.f32 %v5869_v10, %v852_v14  ;;  %v6037_v30 = vadd.f32 %v5980_v9, %v1686_v27  ;;  %v924_v22 = vadd.f32 %v892_v47, %v788_v29  ;;  %v1477_v5 = vld [vmem:[#allocation2 + $0x199] sm:$0xff] }
 0x135   : > { %v6040_v42 = vadd.f32 %v5980_v9, %v1687_v28  ;;  %v1306_v61 = vmul.f32 %v5907_v26, %v956_v12  ;;  %v1130_v19 = vadd.f32 %v1098_v53, %v1026_v52  ;;  %v1131_v33 = vadd.f32 %v1099_v35, %v1027_v60  ;;  %v1373_v52 = vld [vmem:[#allocation2 + $0x198] sm:$0xff]  ;;  %v1061_v60 = vld [vmem:[#allocation2 + $0x188] sm:$0xff] }
 0x136   : > { %v1409_v15 = vmul.f32 %v5913_v0, %v749_v7  ;;  %v1410_v2 = vmul.f32 %v5913_v0, %v750_v43  ;;  %v1757_v50 = vmax.f32 %v6037_v30, 0.0  ;;  %v1028_v38 = vadd.f32 %v996_v23, %v924_v22  ;;  %v1268_v28 = vld [vmem:[#allocation2 + $0x182] sm:$0xff] }
 0x137   : > { %v1758_v4 = vmax.f32 %v6040_v42, 0.0  ;;  %v1513_v6 = vmul.f32 %v5876_v34, %v852_v14  ;;  %v1234_v51 = vadd.f32 %v1202_v3, %v1130_v19  ;;  %v1235_v31 = vadd.f32 %v1203_v46, %v1131_v33  ;;  %v1060_v46 = vld [vmem:[#allocation2 + $0x180] sm:$0xff]  ;;  %v1806_v19 = vld [vmem:[#allocation5 + $0x10] ss:$2 sm:$0xff]  ;;  %v1822_v33 = vld [vmem:[#allocation5 + $0x11] ss:$2 sm:$0xff] }
 0x138   : > { %v1441_v13 = vadd.f32 %v1409_v15, %v1336_v24  ;;  %v1442_v11 = vadd.f32 %v1410_v2, %v1337_v36  ;;  %v1617_v37 = vmul.f32 %v5923_v55, %v956_v12  ;;  %v1835_v54 = vmax.f32 %v1804_v8, %v1820_v48  ;;  %v1582_v24 = vld [vmem:[#allocation2 + $0x1a2] sm:$0xff] }
 0x139   : > { %v1205_v21 = vmul.f32 %v5869_v10, %v1165_v16  ;;  %v6051_v32 = vmul.f32 %v5907_v26, %v1269_v40  ;;  %v1338_v41 = vadd.f32 %v1306_v61, %v1234_v51  ;;  %v1516_v17 = vmul.f32 %v5876_v34, %v1165_v16  ;;  %v1164_v36 = vld [vmem:[#allocation2 + $0x181] sm:$0xff]  ;;  %v1810_v51 = vld [vmem:[#allocation5 + $0x30] ss:$2 sm:$0xff] }
 0x13a   : > { %v1545_v7 = vadd.f32 %v1513_v6, %v1441_v13  ;;  %v1546_v43 = vadd.f32 %v1514_v18, %v1442_v11  ;;  %1844 = vst.msk [vmem:[#allocation3 + $0x11] sm:$0xff] %vm411_vm0, %v1835_v54  ;;  %v6056_v14 = vmul.f32 %v5923_v55, %v1269_v40  ;;  %v1029_v12 = vadd.f32 %v6019_v59, %v925_v49  ;;  %v1808_v40 = vld [vmem:[#allocation5 + $0x20] ss:$2 sm:$0xff]  ;;  %v4286_v13 = vld [vmem:[%s6507_s4 + $0x38] sm:$0xff] }
 0x13b   : > { %v1339_v62 = vadd.f32 %v1307_v39, %v1235_v31  ;;  %v1413_v57 = vmul.f32 %v5913_v0, %v1373_v52  ;;  %v1414_v18 = vmul.f32 %v5913_v0, %v1374_v56  ;;  %v6062_v27 = vmul.f32 %v5876_v34, %v1477_v5  ;;  %v1826_v31 = vld [vmem:[#allocation5 + $0x31] ss:$2 sm:$0xff]  ;;  %v4295_v42 = vld [vmem:[%s6507_s4 + $0x40] sm:$0xff] }
 0x13c   : > { %v1649_v29 = vadd.f32 %v1617_v37, %v1545_v7  ;;  %v1650_v25 = vadd.f32 %v1618_v45, %v1546_v43  ;;  %v6065_v47 = vmul.f32 %v5876_v34, %v1478_v44  ;;  %v6068_v23 = vmul.f32 %v5923_v55, %v1581_v63  ;;  %v1828_v7 = vld [vmem:[#allocation5 + $0x41] ss:$2 sm:$0xff]  ;;  %v1814_v43 = vld [vmem:[#allocation5 + $0x50] ss:$2 sm:$0xff]  ;;  %v1830_v63 = vld [vmem:[#allocation5 + $0x51] ss:$2 sm:$0xff] }
 0x13d   : > { %v6071_v59 = vmul.f32 %v5923_v55, %v1582_v24  ;;  %v1100_v39 = vmul.f32 %v5893_v58, %v1060_v46  ;;  %v1101_v53 = vmul.f32 %v5893_v58, %v1061_v60  ;;  %v1204_v35 = vmul.f32 %v5869_v10, %v1164_v36 }
 0x13e   : > { %v1688_v49 = vmul.f32 %v5969_v20, %v1649_v29  ;;  %v1689_v45 = vmul.f32 %v5969_v20, %v1650_v25  ;;  %v1308_v22 = vmul.f32 %v5907_v26, %v1268_v28  ;;  %v1411_v61 = vmul.f32 %v5913_v0, %v1060_v46  ;;  %v1824_v26 = vld [vmem:[#allocation5 + $0x21] ss:$2 sm:$0xff] }
 0x13f   : > { %v1132_v3 = vadd.f32 %v1100_v39, %v1028_v38  ;;  %v1412_v8 = vmul.f32 %v5913_v0, %v1061_v60  ;;  %v1133_v48 = vadd.f32 %v1101_v53, %v1029_v12  ;;  %v1515_v16 = vmul.f32 %v5876_v34, %v1164_v36  ;;  %v4285_v0 = vld [vmem:[%s6507_s4 + $0x30] sm:$0xff] }
 0x140   : > { %v1727_v15 = vadd.f32 %v5980_v9, %v1688_v49  ;;  %v1728_v2 = vadd.f32 %v5980_v9, %v1689_v45  ;;  %v1443_v6 = vadd.f32 %v1411_v61, %v1338_v41  ;;  %v1619_v38 = vmul.f32 %v5923_v55, %v1268_v28  ;;  %v1812_v55 = vld [vmem:[#allocation5 + $0x40] ss:$2 sm:$0xff] }
 0x141   : > { %v1236_v58 = vadd.f32 %v1204_v35, %v1132_v3  ;;  %v1444_v10 = vadd.f32 %v1412_v8, %v1339_v62  ;;  %v6091_v34 = vld [vmem:[#allocation3 + $0x11] sm:$0xff]  ;;  %v1237_v54 = vadd.f32 %v1205_v21, %v1133_v48  ;;  %v1836_v56 = vmax.f32 %v1806_v19, %v1822_v33 }
 0x142   : > { %v1759_v11 = vmax.f32 %v1727_v15, 0.0  ;;  %v1760_v52 = vmax.f32 %v1728_v2, 0.0  ;;  %v6093_v37 = vld [vmem:[#allocation3 + $0x12] sm:$0xff]  ;;  %4553 = vmatmul.mubr.msk.f32.vlgmr.msra.gmra.mrb[0].mxu1 %vm411_vm0, %v6091_v34  ;;  %v1547_v44 = vadd.f32 %v1515_v16, %v1443_v6  ;;  %v1837_v12 = vmax.f32 %v1808_v40, %v1824_v26 }
 0x143   : > { %4585 = vmatmul.mubr.msk.f32.vlgmr.msra.gmra.mrb[0].mxu0 %vm411_vm0, %v6093_v37  ;;  %v1340_v5 = vadd.f32 %v1308_v22, %v1236_v58  ;;  %v1548_v41 = vadd.f32 %v1516_v17, %v1444_v10  ;;  %v1341_v46 = vadd.f32 %v6051_v32, %v1237_v54  ;;  %1845 = vst.msk [vmem:[#allocation3 + $0x21] sm:$0xff] %vm411_vm0, %v1836_v56  ;;  %v1860_v62 = vld [vmem:[%s6507_s4] sm:$0xff]  ;;  %v1861_v17 = vld [vmem:[%s6507_s4 + $0x8] sm:$0xff]  ;;  %v4306_v56 = vld [vmem:[%s6507_s4 + $0x58] sm:$0xff] }
 0x144   : > { %v1794_v24 = vmax.f32 %v1757_v50, %v1759_v11  ;;  %v1795_v21 = vmax.f32 %v1758_v4, %v1760_v52  ;;  %v1651_v36 = vadd.f32 %v1619_v38, %v1547_v44  ;;  %v1838_v50 = vmax.f32 %v1810_v51, %v1826_v31  ;;  %v4296_v4 = vld [vmem:[%s6507_s4 + $0x48] sm:$0xff]  ;;  %1846 = vst.msk [vmem:[#allocation3 + $0x31] sm:$0xff] %vm411_vm0, %v1837_v12  ;;  %v4305_v11 = vld [vmem:[%s6507_s4 + $0x50] sm:$0xff] }
 0x145   : > { %v1445_v60 = vadd.f32 %v1413_v57, %v1340_v5  ;;  %v1652_v30 = vadd.f32 %v6056_v14, %v1548_v41  ;;  %v1446_v32 = vadd.f32 %v1414_v18, %v1341_v46  ;;  %v1839_v57 = vmax.f32 %v1812_v55, %v1828_v7  ;;  %v2279_v55 = vld [vmem:[#allocation3 + $0x10] sm:$0xff] }
 0x146   : > { %1797 = vst.msk [vmem:[#allocation5 + $0x60] sm:$0xff] %vm411_vm0, %v1794_v24  ;;  %1798 = vst.msk [vmem:[#allocation5 + $0x68] sm:$0xff] %vm411_vm0, %v1795_v21  ;;  %v4803_v29 = vpack.c.bf16 %v4286_v13, %v4285_v0  ;;  %v1840_v25 = vmax.f32 %v1814_v43, %v1830_v63  ;;  %v1690_v28 = vmul.f32 %v5969_v20, %v1651_v36  ;;  %v1852_v13 = vld [vmem:[#allocation3] sm:$0xff] }
 0x147   : > { %v1549_v14 = vadd.f32 %v6062_v27, %v1445_v60  ;;  %1847 = vst.msk [vmem:[#allocation3 + $0x41] sm:$0xff] %vm411_vm0, %v1838_v50  ;;  %v4795_v39 = vpack.c.bf16 %v1861_v17, %v1860_v62  ;;  %v1550_v49 = vadd.f32 %v6065_v47, %v1446_v32  ;;  %v1691_v45 = vmul.f32 %v5969_v20, %v1652_v30  ;;  %v4315_v17 = vld [vmem:[%s6507_s4 + $0x60] sm:$0xff]  ;;  %v4316_v60 = vld [vmem:[%s6507_s4 + $0x68] sm:$0xff]  ;;  %v4325_v30 = vld [vmem:[%s6507_s4 + $0x70] sm:$0xff] }
 0x148   : > { %1848 = vst.msk [vmem:[#allocation3 + $0x51] sm:$0xff] %vm411_vm0, %v1839_v57  ;;  %4804 = vmatprep.subr.bf16.mxu0 %v4803_v29  ;;  %1849 = vst.msk [vmem:[#allocation3 + $0x61] sm:$0xff] %vm411_vm0, %v1840_v25  ;;  %v4807_v18 = vpack.c.bf16 %v4296_v4, %v4295_v42  ;;  %v1729_v47 = vadd.f32 %v5980_v9, %v1690_v28  ;;  %v4811_v41 = vpack.c.bf16 %v4306_v56, %v4305_v11  ;;  %v4326_v50 = vld [vmem:[%s6507_s4 + $0x78] sm:$0xff]  ;;  %v4335_v4 = vld [vmem:[%s6507_s4 + $0x80] sm:$0xff] }
 0x149   : > { %v1653_v53 = vadd.f32 %v6068_v23, %v1549_v14  ;;  %4806 = vmatpush3.bf16.msra.mxu0 %v4803_v29  ;;  %4796 = vmatprep.subr.bf16.mxu1 %v4795_v39  ;;  %v1654_v27 = vadd.f32 %v6071_v59, %v1550_v49  ;;  %v1730_v8 = vadd.f32 %v5980_v9, %v1691_v45  ;;  %v4336_v32 = vld [vmem:[%s6507_s4 + $0x88] sm:$0xff]  ;;  %v2731_v29 = vld [vmem:[#allocation3 + $0x90] sm:$0xff]  ;;  %v4349_v49 = vld [vmem:[%s6510_s7 + $0x30] sm:$0xff] }
 0x14a   : > { %4798 = vmatpush3.bf16.msra.mxu1 %v4795_v39  ;;  %4808 = vmatprep.subr.bf16.mxu0 %v4807_v18  ;;  %v6132_v3 = vld [vmem:[#allocation3 + $0x21] sm:$0xff]  ;;  %v1761_v16 = vmax.f32 %v1729_v47, 0.0  ;;  %v4815_v36 = vpack.c.bf16 %v4316_v60, %v4315_v17  ;;  %v4819_v42 = vpack.c.bf16 %v4326_v50, %v4325_v30  ;;  %v4823_v57 = vpack.c.bf16 %v4336_v32, %v4335_v4  ;;  %v2879_v25 = vld [vmem:[#allocation3 + $0x91] sm:$0xff] }
 0x14b   : > { %v1692_v35 = vmul.f32 %v5969_v20, %v1653_v53  ;;  %v6134_v22 = vld [vmem:[#allocation3 + $0x22] sm:$0xff]  ;;  %v1693_v61 = vmul.f32 %v5969_v20, %v1654_v27  ;;  %4555 = vmatprep.mubr.msk.f32.mxu1 %vm411_vm0, %v6132_v3  ;;  %v6143_v59 = vld [vmem:[#allocation3 + $0x31] sm:$0xff]  ;;  %v1762_v10 = vmax.f32 %v1730_v8, 0.0 }
 0x14c   : > { %4587 = vmatprep.mubr.msk.f32.mxu0 %vm411_vm0, %v6134_v22  ;;  %v6145_v19 = vld [vmem:[#allocation3 + $0x32] sm:$0xff]  ;;  %4556 = vmatmul.mubr.msk.f32.gmra.mrb[2].mxu1 %vm411_vm0, %v6143_v59  ;;  %v2280_v7 = vld [vmem:[#allocation3 + $0x20] sm:$0xff] }
 0x14d   : > { %v1731_v23 = vadd.f32 %v5980_v9, %v1692_v35  ;;  %v1816_v33 = vld [vmem:[#allocation5 + $0x60] ss:$2 sm:$0xff]  ;;  %v1732_v15 = vadd.f32 %v5980_v9, %v1693_v61  ;;  %4588 = vmatmul.mubr.msk.f32.gmra.mrb[2].mxu0 %vm411_vm0, %v6145_v19  ;;  %v1832_v48 = vld [vmem:[#allocation5 + $0x61] ss:$2 sm:$0xff] }
 0x14e   : > { %v6152_v20 = vld [vmem:[#allocation3 + $0x41] sm:$0xff]  ;;  %v1841_v6 = vmax.f32 %v1816_v33, %v1832_v48  ;;  %v2281_v63 = vld [vmem:[#allocation3 + $0x30] sm:$0xff]  ;;  %v4348_v39 = vld [vmem:[%s6510_s7 + $0x28] sm:$0xff] }
 0x14f   : > { %v6154_v2 = vld [vmem:[#allocation3 + $0x42] sm:$0xff]  ;;  %v1763_v40 = vmax.f32 %v1731_v23, 0.0  ;;  %4558 = vmatprep.mubr.msk.f32.mxu1 %vm411_vm0, %v6152_v20  ;;  %v6160_v9 = vld [vmem:[#allocation3 + $0x51] sm:$0xff]  ;;  %v1764_v38 = vmax.f32 %v1732_v15, 0.0  ;;  %v4345_v15 = vld [vmem:[%s6508_s5] ss:$0 sm:$0xff] }
 0x150   : > { %4590 = vmatprep.mubr.msk.f32.mxu0 %vm411_vm0, %v6154_v2  ;;  %v6162_v58 = vld [vmem:[#allocation3 + $0x52] sm:$0xff]  ;;  %v6164_v26 = vld [vmem:[#allocation3 + $0x61] sm:$0xff]  ;;  %1850 = vst.msk [vmem:[#allocation3 + $0x71] sm:$0xff] %vm411_vm0, %v1841_v6  ;;  %4559 = vmatmul.mubr.msk.f32.gmra.mrb[4].mxu1 %vm411_vm0, %v6160_v9  ;;  %v4346_v48 = vld [vmem:[%s6509_s6] ss:$0 sm:$0xff] }
 0x151   : > { %v6166_v51 = vld [vmem:[#allocation3 + $0x62] sm:$0xff]  ;;  %v1799_v31 = vmax.f32 %v1761_v16, %v1763_v40  ;;  %v1800_v0 = vmax.f32 %v1762_v10, %v1764_v38  ;;  %4591 = vmatmul.mubr.msk.f32.gmra.mrb[4].mxu0 %vm411_vm0, %v6162_v58  ;;  %4561 = vmatprep.mubr.msk.f32.mxu1 %vm411_vm0, %v6164_v26  ;;  %v2283_v21 = vld [vmem:[#allocation3 + $0x50] sm:$0xff]  ;;  %v3248_v35 = vld [vmem:[%s6510_s7 + $0x8] sm:$0xff] }
 0x152   : > { %4593 = vmatprep.mubr.msk.f32.mxu0 %vm411_vm0, %v6166_v51  ;;  %v2282_v24 = vld [vmem:[#allocation3 + $0x40] sm:$0xff]  ;;  %v3027_v14 = vld [vmem:[#allocation3 + $0x92] sm:$0xff] }
 0x153   : > { %1802 = vst.msk [vmem:[#allocation5 + $0x70] sm:$0xff] %vm411_vm0, %v1799_v31  ;;  %1803 = vst.msk [vmem:[#allocation5 + $0x78] sm:$0xff] %vm411_vm0, %v1800_v0  ;;  %v2284_v46 = vld [vmem:[#allocation3 + $0x60] sm:$0xff]  ;;  %v4347_v28 = vld [vmem:[%s6510_s7 + $0x20] sm:$0xff] }
 0x154   : > { %v4827_v45 = vpack.c.bf16 %v4348_v39, %v4347_v28  ;;  %v3247_v27 = vld [vmem:[%s6510_s7] sm:$0xff] }
 0x155   : > { %v6318_v47 = vpack.c.bf16 %v3248_v35, %v3247_v27 }
 0x156   : > { %4828 = vmatprep.subr.bf16.mxu1 %v4827_v45 }
 0x157   : > { %v6182_v52 = vld [vmem:[#allocation3 + $0x71] sm:$0xff] }
 0x158   : > { %v6184_v54 = vld [vmem:[#allocation3 + $0x72] sm:$0xff]  ;;  %4562 = vmatmul.mubr.msk.f32.gmra.mrb[6].mxu1 %vm411_vm0, %v6182_v52 }
 0x159   : > { %4594 = vmatmul.mubr.msk.f32.gmra.mrb[6].mxu0 %vm411_vm0, %v6184_v54  ;;  %4568 = vmatprep.mubr.msk.f32.mxu1 %vm411_vm0, %v1852_v13  ;;  %v2285_v12 = vld [vmem:[#allocation3 + $0x70] sm:$0xff] }
 0x15a   : > { %4600 = vmatprep.mubr.msk.f32.mxu0 %vm411_vm0, %v2279_v55  ;;  %v1818_v5 = vld [vmem:[#allocation5 + $0x70] ss:$2 sm:$0xff]  ;;  %v1834_v44 = vld [vmem:[#allocation5 + $0x71] ss:$2 sm:$0xff] }
 0x15b   : > { %v1842_v43 = vmax.f32 %v1818_v5, %v1834_v44 }
 0x15c   : > { %4569 = vmatmul.mubr.msk.f32.vlgmr.msra.gmra.mrb[0].mxu1 %vm411_vm0, %v2279_v55 }
 0x15d   : > { %4601 = vmatmul.mubr.msk.f32.vlgmr.msra.gmra.mrb[0].mxu0 %vm411_vm0, %v2280_v7  ;;  %4571 = vmatprep.mubr.msk.f32.mxu1 %vm411_vm0, %v2280_v7  ;;  %1851 = vst.msk [vmem:[#allocation3 + $0x81] sm:$0xff] %vm411_vm0, %v1842_v43 }
 0x15e   : > { %4810 = vmatpush3.bf16.msra.mxu0 %v4807_v18  ;;  %4603 = vmatprep.mubr.msk.f32.mxu0 %vm411_vm0, %v2281_v63  ;;  %v4350_v18 = vld [vmem:[%s6510_s7 + $0x38] sm:$0xff] }
 0x15f   : > { %4812 = vmatprep.subr.bf16.mxu0 %v4811_v41  ;;  %v4831_v53 = vpack.c.bf16 %v4350_v18, %v4349_v49  ;;  %4830 = vmatpush3.bf16.msra.mxu1 %v4827_v45 }
 0x160   : > { %4572 = vmatmul.mubr.msk.f32.gmra.mrb[2].mxu1 %vm411_vm0, %v2281_v63 }
 0x161   : > { %4604 = vmatmul.mubr.msk.f32.gmra.mrb[2].mxu0 %vm411_vm0, %v2282_v24  ;;  %4574 = vmatprep.mubr.msk.f32.mxu1 %vm411_vm0, %v2282_v24 }
 0x162   : > { %4606 = vmatprep.mubr.msk.f32.mxu0 %vm411_vm0, %v2283_v21  ;;  %4832 = vmatprep.subr.bf16.mxu1 %v4831_v53 }
 0x163   : > { %4834 = vmatpush3.bf16.msra.mxu1 %v4831_v53 }
 0x164   : > { %4575 = vmatmul.mubr.msk.f32.gmra.mrb[4].mxu1 %vm411_vm0, %v2283_v21  ;;  %v2286_v62 = vld [vmem:[#allocation3 + $0x80] sm:$0xff]  ;;  %4836 = vmatprep.subr.bf16.mxu1 %v6318_v47 }
 0x165   : > { %4607 = vmatmul.mubr.msk.f32.gmra.mrb[4].mxu0 %vm411_vm0, %v2284_v46  ;;  %4577 = vmatprep.mubr.msk.f32.mxu1 %vm411_vm0, %v2284_v46 }
 0x166   : > { %4609 = vmatprep.mubr.msk.f32.mxu0 %vm411_vm0, %v2285_v12 }
 0x168   : > { %4578 = vmatmul.mubr.msk.f32.gmra.mrb[6].mxu1 %vm411_vm0, %v2285_v12 }
 0x169   : > { %4610 = vmatmul.mubr.msk.f32.gmra.mrb[6].mxu0 %vm411_vm0, %v2286_v62 }
 0x16a   : > { %4616 = vmatprep.mubr.msk.f32.mxu0 %vm411_vm0, %v6091_v34  ;;  %v2434_v34 = vld [vmem:[#allocation3 + $0x81] sm:$0xff] }
 0x16d   : > { %4617 = vmatmul.mubr.msk.f32.vlgmr.msra.gmra.mrb[0].mxu0 %vm411_vm0, %v6132_v3 }
 0x16e   : > { %4814 = vmatpush3.bf16.msra.mxu0 %v4811_v41  ;;  %4619 = vmatprep.mubr.msk.f32.mxu0 %vm411_vm0, %v6143_v59 }
 0x16f   : > { %4816 = vmatprep.subr.bf16.mxu0 %v4815_v36 }
 0x171   : > { %4620 = vmatmul.mubr.msk.f32.gmra.mrb[2].mxu0 %vm411_vm0, %v6152_v20 }
 0x172   : > { %4622 = vmatprep.mubr.msk.f32.mxu0 %vm411_vm0, %v6160_v9 }
 0x175   : > { %4623 = vmatmul.mubr.msk.f32.gmra.mrb[4].mxu0 %vm411_vm0, %v6164_v26 }
 0x176   : > { %4625 = vmatprep.mubr.msk.f32.mxu0 %vm411_vm0, %v6182_v52 }
 0x179   : > { %4626 = vmatmul.mubr.msk.f32.gmra.mrb[6].mxu0 %vm411_vm0, %v2434_v34 }
 0x17a   : > { %4632 = vmatprep.mubr.msk.f32.mxu0 %vm411_vm0, %v6093_v37  ;;  %v2582_v37 = vld [vmem:[#allocation3 + $0x82] sm:$0xff] }
 0x17d   : > { %4633 = vmatmul.mubr.msk.f32.vlgmr.msra.gmra.mrb[0].mxu0 %vm411_vm0, %v6134_v22 }
 0x17e   : > { %4818 = vmatpush3.bf16.msra.mxu0 %v4815_v36  ;;  %4635 = vmatprep.mubr.msk.f32.mxu0 %vm411_vm0, %v6145_v19 }
 0x17f   : > { %4820 = vmatprep.subr.bf16.mxu0 %v4819_v42 }
 0x181   : > { %4636 = vmatmul.mubr.msk.f32.gmra.mrb[2].mxu0 %vm411_vm0, %v6154_v2 }
 0x182   : > { %4638 = vmatprep.mubr.msk.f32.mxu0 %vm411_vm0, %v6162_v58 }
 0x185   : > { %4639 = vmatmul.mubr.msk.f32.gmra.mrb[4].mxu0 %vm411_vm0, %v6166_v51 }
 0x186   : > { %4641 = vmatprep.mubr.msk.f32.mxu0 %vm411_vm0, %v6184_v54 }
 0x189   : > { %4642 = vmatmul.mubr.msk.f32.gmra.mrb[6].mxu0 %vm411_vm0, %v2582_v37 }
 0x18a   : > { %4648 = vmatprep.mubr.msk.f32.mxu0 %vm411_vm0, %v2280_v7 }
 0x18d   : > { %4649 = vmatmul.mubr.msk.f32.vlgmr.msra.gmra.mrb[0].mxu0 %vm411_vm0, %v2281_v63 }
 0x18e   : > { %4822 = vmatpush3.bf16.msra.mxu0 %v4819_v42  ;;  %4651 = vmatprep.mubr.msk.f32.mxu0 %vm411_vm0, %v2282_v24 }
 0x18f   : > { %4824 = vmatprep.subr.bf16.mxu0 %v4823_v57 }
 0x191   : > { %4652 = vmatmul.mubr.msk.f32.gmra.mrb[2].mxu0 %vm411_vm0, %v2283_v21 }
 0x192   : > { %4654 = vmatprep.mubr.msk.f32.mxu0 %vm411_vm0, %v2284_v46 }
 0x195   : > { %4655 = vmatmul.mubr.msk.f32.gmra.mrb[4].mxu0 %vm411_vm0, %v2285_v12 }
 0x196   : > { %4657 = vmatprep.mubr.msk.f32.mxu0 %vm411_vm0, %v2286_v62 }
 0x199   : > { %4658 = vmatmul.mubr.msk.f32.gmra.mrb[6].mxu0 %vm411_vm0, %v2731_v29 }
 0x19a   : > { %4664 = vmatprep.mubr.msk.f32.mxu0 %vm411_vm0, %v6132_v3 }
 0x19d   : > { %4665 = vmatmul.mubr.msk.f32.vlgmr.msra.gmra.mrb[0].mxu0 %vm411_vm0, %v6143_v59 }
 0x19e   : > { %4826 = vmatpush3.bf16.msra.mxu0 %v4823_v57  ;;  %4667 = vmatprep.mubr.msk.f32.mxu0 %vm411_vm0, %v6152_v20 }
 0x1a1   : > { %4668 = vmatmul.mubr.msk.f32.gmra.mrb[2].mxu0 %vm411_vm0, %v6160_v9 }
 0x1a2   : > { %4670 = vmatprep.mubr.msk.f32.mxu0 %vm411_vm0, %v6164_v26 }
 0x1a5   : > { %4671 = vmatmul.mubr.msk.f32.gmra.mrb[4].mxu0 %vm411_vm0, %v6182_v52 }
 0x1a6   : > { %4673 = vmatprep.mubr.msk.f32.mxu0 %vm411_vm0, %v2434_v34 }
 0x1a9   : > { %4674 = vmatmul.mubr.msk.f32.gmra.mrb[6].mxu0 %vm411_vm0, %v2879_v25 }
 0x1aa   : > { %4680 = vmatprep.mubr.msk.f32.mxu0 %vm411_vm0, %v6134_v22 }
 0x1ad   : > { %4681 = vmatmul.mubr.msk.f32.vlgmr.msra.gmra.mrb[0].mxu0 %vm411_vm0, %v6145_v19 }
 0x1ae   : > { %4683 = vmatprep.mubr.msk.f32.mxu0 %vm411_vm0, %v6154_v2 }
 0x1b1   : > { %4684 = vmatmul.mubr.msk.f32.gmra.mrb[2].mxu0 %vm411_vm0, %v6162_v58 }
 0x1b2   : > { %4686 = vmatprep.mubr.msk.f32.mxu0 %vm411_vm0, %v6166_v51 }
 0x1b5   : > { %4687 = vmatmul.mubr.msk.f32.gmra.mrb[4].mxu0 %vm411_vm0, %v6184_v54 }
 0x1b6   : > { %4689 = vmatprep.mubr.msk.f32.mxu0 %vm411_vm0, %v2582_v37 }
 0x1b9   : > { %4690 = vmatmul.mubr.msk.f32.gmra.mrb[6].mxu0 %vm411_vm0, %v3027_v14 }
 0x22f   : > { %v4570_v3 = vpop.f32.mrb[0].mxu1 }
 0x230   : > { %v2092_v22 = vpop.f32.mrb[1].mxu1 }
 0x233   : > { %v4573_v1 = vpop.f32.mrb[2].mxu1 }
 0x234   : > { %v2102_v61 = vpop.f32.mrb[3].mxu1 }
 0x237   : > { %v4576_v8 = vpop.f32.mrb[4].mxu1 }
 0x238   : > { %v2112_v23 = vpop.f32.mrb[5].mxu1 }
 0x23b   : > { %v4579_v59 = vpop.f32.mrb[6].mxu1 }
 0x23c   : > { %v2122_v19 = vpop.f32.mrb[7].mxu1 }
 0x280   : > { %v4682_v33 = vpop.f32.mrb[0].mxu0 }
 0x281   : > { %v4899_v20 = vadd.f32 %v4682_v33, %v4570_v3  ;;  %v3121_v2 = vpop.f32.mrb[1].mxu0 }
 0x282   : > { %v4900_v16 = vadd.f32 %v3121_v2, %v2092_v22 }
 0x283   : > { %v3176_v40 = vmul.f32 %v4899_v20, %v4345_v15  ;;  %v4356_v20 = vld [vmem:[%s6510_s7 + $0x48] sm:$0xff] }
 0x284   : > { %v3175_v9 = vmul.f32 %v4900_v16, %v4345_v15  ;;  %v4685_v58 = vpop.f32.mrb[2].mxu0  ;;  %v4358_v16 = vld [vmem:[%s6510_s7 + $0x58] sm:$0xff] }
 0x285   : > { %v3191_v6 = vadd.f32 %v4346_v48, %v3176_v40  ;;  %v4901_v10 = vadd.f32 %v4685_v58, %v4573_v1  ;;  %v3131_v38 = vpop.f32.mrb[3].mxu0 }
 0x286   : > { %v3190_v26 = vadd.f32 %v4346_v48, %v3175_v9  ;;  %v4902_v51 = vadd.f32 %v3131_v38, %v2102_v61  ;;  %v4363_v38 = vld [vmem:[%s6510_s7 + $0x70] sm:$0xff] }
 0x287   : > { %v3199_v31 = vmax.f32 %v3191_v6, 0.0  ;;  %v3178_v0 = vmul.f32 %v4901_v10, %v4345_v15  ;;  %v4362_v6 = vld [vmem:[%s6510_s7 + $0x68] sm:$0xff] }
 0x288   : > { %v3198_v13 = vmax.f32 %v3190_v26, 0.0  ;;  %v3177_v11 = vmul.f32 %v4902_v51, %v4345_v15  ;;  %v4688_v52 = vpop.f32.mrb[4].mxu0  ;;  %v4364_v26 = vld [vmem:[%s6510_s7 + $0x78] sm:$0xff] }
 0x289   : > { %v3193_v54 = vadd.f32 %v4346_v48, %v3178_v0  ;;  %v4903_v56 = vadd.f32 %v4688_v52, %v4576_v8  ;;  %v3141_v55 = vpop.f32.mrb[5].mxu0  ;;  %v3249_v8 = vld [vmem:[%s6510_s7 + $0x10] sm:$0xff] }
 0x28a   : > { %v3206_v5 = vmax.f32 %v3198_v13, %v3199_v31  ;;  %v3192_v44 = vadd.f32 %v4346_v48, %v3177_v11  ;;  %v4904_v41 = vadd.f32 %v3141_v55, %v2112_v23  ;;  %v3250_v23 = vld [vmem:[%s6510_s7 + $0x18] sm:$0xff]  ;;  %v4855_v31 = vpack.c.bf16 %v4364_v26, %v4363_v38  ;;  %v4367_v13 = vld [vmem:[%s6510_s7 + $0x80] sm:$0xff]  ;;  %v4368_v11 = vld [vmem:[%s6510_s7 + $0x88] sm:$0xff] }
 0x28b   : > { %v3201_v7 = vmax.f32 %v3193_v54, 0.0  ;;  %v3180_v43 = vmul.f32 %v4903_v56, %v4345_v15  ;;  %v4839_v33 = vpack.c.bf16 %v3250_v23, %v3249_v8  ;;  %v4859_v52 = vpack.c.bf16 %v4368_v11, %v4367_v13  ;;  %v4369_v54 = vld [vmem:[%s6510_s7 + $0x90] sm:$0xff]  ;;  %v4370_v56 = vld [vmem:[%s6510_s7 + $0x98] sm:$0xff]  ;;  %v4398_v23 = vld [vmem:[%s6512_s9] ss:$0 sm:$0xff] }
 0x28c   : > { %3208 = vst.msk [vmem:[#allocation6] sm:$0xff] %vm3207_vm3, %v3206_v5  ;;  %v3200_v63 = vmax.f32 %v3192_v44, 0.0  ;;  %v3179_v24 = vmul.f32 %v4904_v41, %v4345_v15  ;;  %v4691_v21 = vpop.f32.mrb[6].mxu0  ;;  %v4863_v5 = vpack.c.bf16 %v4370_v56, %v4369_v54  ;;  %v4373_v41 = vld [vmem:[%s6510_s7 + $0xa0] sm:$0xff]  ;;  %v4155_v56 = vlaneseq }
 0x28d   : > { %v3195_v46 = vadd.f32 %v4346_v48, %v3180_v43  ;;  %v4905_v12 = vadd.f32 %v4691_v21, %v4579_v59  ;;  %v3151_v62 = vpop.f32.mrb[7].mxu0  ;;  %v4355_v59 = vld [vmem:[%s6510_s7 + $0x40] sm:$0xff] }
 0x28e   : > { %v3209_v17 = vmax.f32 %v3200_v63, %v3201_v7  ;;  %v3194_v60 = vadd.f32 %v4346_v48, %v3179_v24  ;;  %v4906_v36 = vadd.f32 %v3151_v62, %v2122_v19  ;;  %v4843_v2 = vpack.c.bf16 %v4356_v20, %v4355_v59  ;;  %v4374_v7 = vld [vmem:[%s6510_s7 + $0xa8] sm:$0xff]  ;;  %v4375_v63 = vld [vmem:[%s6510_s7 + $0xb0] sm:$0xff]  ;;  %v4376_v24 = vld [vmem:[%s6510_s7 + $0xb8] sm:$0xff] }
 0x28f   : > { %v3203_v34 = vmax.f32 %v3195_v46, 0.0  ;;  %v3182_v30 = vmul.f32 %v4905_v12, %v4345_v15  ;;  %v4867_v43 = vpack.c.bf16 %v4374_v7, %v4373_v41  ;;  %v4871_v46 = vpack.c.bf16 %v4376_v24, %v4375_v63  ;;  %v4379_v62 = vld [vmem:[%s6510_s7 + $0xc0] sm:$0xff] }
 0x290   : > { %3211 = vst.msk [vmem:[#allocation6 + $0x8] sm:$0xff] %vm3207_vm3, %v3209_v17  ;;  %v3202_v50 = vmax.f32 %v3194_v60, 0.0  ;;  %v3181_v42 = vmul.f32 %v4906_v36, %v4345_v15  ;;  %v4380_v17 = vld [vmem:[%s6510_s7 + $0xc8] sm:$0xff]  ;;  %v4381_v36 = vld [vmem:[%s6510_s7 + $0xd0] sm:$0xff] }
 0x291   : > { %v3197_v37 = vadd.f32 %v4346_v48, %v3182_v30  ;;  %v4875_v60 = vpack.c.bf16 %v4380_v17, %v4379_v62 }
 0x292   : > { %v3212_v4 = vmax.f32 %v3202_v50, %v3203_v34  ;;  %v3196_v32 = vadd.f32 %v4346_v48, %v3181_v42  ;;  %v4357_v48 = vld [vmem:[%s6510_s7 + $0x50] sm:$0xff]  ;;  %v4382_v34 = vld [vmem:[%s6510_s7 + $0xd8] sm:$0xff] }
 0x293   : > { %v3218_v57 = vld [vmem:[#allocation6] ss:$2 sm:$0xf]  ;;  %v3226_v29 = vld [vmem:[#allocation6 + $0x1] ss:$2 sm:$0xf]  ;;  %v4847_v9 = vpack.c.bf16 %v4358_v16, %v4357_v48  ;;  %v4879_v50 = vpack.c.bf16 %v4382_v34, %v4381_v36 }
 0x294   : > { %v3233_v25 = vmax.f32 %v3218_v57, %v3226_v29  ;;  %3214 = vst.msk [vmem:[#allocation6 + $0x10] sm:$0xff] %vm3207_vm3, %v3212_v4  ;;  %v3205_v14 = vmax.f32 %v3197_v37, 0.0  ;;  %v3204_v28 = vmax.f32 %v3196_v32, 0.0  ;;  %v4385_v37 = vld [vmem:[%s6510_s7 + $0xe0] sm:$0xff]  ;;  %v4386_v4 = vld [vmem:[%s6510_s7 + $0xe8] sm:$0xff]  ;;  %v4387_v57 = vld [vmem:[%s6510_s7 + $0xf0] sm:$0xff] }
 0x295   : > { %v4883_v32 = vpack.c.bf16 %v4386_v4, %v4385_v37  ;;  %v4388_v29 = vld [vmem:[%s6510_s7 + $0xf8] sm:$0xff] }
 0x296   : > { %v3215_v39 = vmax.f32 %v3204_v28, %v3205_v14  ;;  %3239 = vst.msk [vmem:[#allocation4 + $0x9] sm:$0xf] %vm3238_vm4, %v3233_v25  ;;  %v4887_v14 = vpack.c.bf16 %v4388_v29, %v4387_v57 }
 0x297   : > { %v3220_v49 = vld [vmem:[#allocation6 + $0x8] ss:$2 sm:$0xf]  ;;  %v3228_v45 = vld [vmem:[#allocation6 + $0x9] ss:$2 sm:$0xf] }
 0x298   : > { %v3234_v18 = vmax.f32 %v3220_v49, %v3228_v45  ;;  %3217 = vst.msk [vmem:[#allocation6 + $0x18] sm:$0xff] %vm3207_vm3, %v3215_v39  ;;  %v4391_v39 = vld [vmem:[%s6510_s7 + $0x100] sm:$0xff]  ;;  %v4392_v49 = vld [vmem:[%s6510_s7 + $0x108] sm:$0xff] }
 0x299   : > { %v4891_v45 = vpack.c.bf16 %v4392_v49, %v4391_v39 }
 0x29a   : > { %3240 = vst.msk [vmem:[#allocation4 + $0x11] sm:$0xf] %vm3238_vm4, %v3234_v18  ;;  %v4393_v18 = vld [vmem:[%s6510_s7 + $0x110] sm:$0xff] }
 0x29b   : > { %v3222_v53 = vld [vmem:[#allocation6 + $0x10] ss:$2 sm:$0xf]  ;;  %v3230_v27 = vld [vmem:[#allocation6 + $0x11] ss:$2 sm:$0xf] }
 0x29c   : > { %v3235_v35 = vmax.f32 %v3222_v53, %v3230_v27  ;;  %v4394_v53 = vld [vmem:[%s6510_s7 + $0x118] sm:$0xff] }
 0x29d   : > { %v5022_v3 = vld [vmem:[#allocation4 + $0x1] ss:$8 sps:$4 sm:$0xff]  }
 0x29e   : > { %3241 = vst.msk [vmem:[#allocation4 + $0x19] sm:$0xf] %vm3238_vm4, %v3235_v35  ;;  %4700 = vmatprep.mubr.msk.f32.mxu1 %vm3207_vm3, %v5022_v3  ;;  %v5024_v15 = vld [vmem:[#allocation4] ss:$8 sps:$4 sm:$0xff]   ;;  %v4895_v35 = vpack.c.bf16 %v4394_v53, %v4393_v18 }
 0x29f   : > { %v3224_v22 = vld [vmem:[#allocation6 + $0x18] ss:$2 sm:$0xf]  ;;  %v3232_v1 = vld [vmem:[#allocation6 + $0x19] ss:$2 sm:$0xf] }
 0x2a0   : > { %v3236_v61 = vmax.f32 %v3224_v22, %v3232_v1  ;;  %v5026_v58 = vld [vmem:[#allocation4 + $0x2] ss:$8 sps:$4 sm:$0xff]   ;;  %v4399_v1 = vld [vmem:[%s6514_s11] ss:$0 sm:$0xff] }
 0x2a1   : > { %v5028_v0 = vld [vmem:[#allocation4 + $0x8] ss:$8 sps:$4 sm:$0xff]   ;;  %4147 = vbcast.lane.b32.xlu1 %v4399_v1, 256 }
 0x2a2   : > { %3242 = vst.msk [vmem:[#allocation4 + $0x21] sm:$0xf] %vm3238_vm4, %v3236_v61  ;;  %v5030_v44 = vld [vmem:[#allocation4 + $0x9] ss:$8 sps:$4 sm:$0xff]   ;;  %v4397_v61 = vld [vmem:[%s6511_s8] ss:$0 sm:$0xff] }
 0x2a3   : > { %v5032_v12 = vld [vmem:[#allocation4 + $0xa] ss:$8 sps:$4 sm:$0xff]  }
 0x2a5   : > { %v5023_v19 = vld [vmem:[#allocation4 + $0x11] ss:$8 sps:$4 sm:$0xff]  }
 0x2a6   : > { %4701 = vmatmul.mubr.msk.f32.vlgmr.msra.gmra.mrb[8].mxu1 %vm3207_vm3, %v5023_v19  ;;  %v5025_v40 = vld [vmem:[#allocation4 + $0x10] ss:$8 sps:$4 sm:$0xff]  }
 0x2a7   : > { %4838 = vmatpush3.bf16.msra.mxu1 %v6318_v47  ;;  %4711 = vmatprep.mubr.msk.f32.mxu1 %vm3207_vm3, %v5024_v15  ;;  %v4361_v47 = vld [vmem:[%s6510_s7 + $0x60] sm:$0xff] }
 0x2a8   : > { %4840 = vmatprep.subr.bf16.mxu1 %v4839_v33  ;;  %v4851_v10 = vpack.c.bf16 %v4362_v6, %v4361_v47  ;;  %v5027_v51 = vld [vmem:[#allocation4 + $0x12] ss:$8 sps:$4 sm:$0xff]  }
 0x2a9   : > { %v5029_v55 = vld [vmem:[#allocation4 + $0x18] ss:$8 sps:$4 sm:$0xff]  }
 0x2aa   : > { %v5031_v21 = vld [vmem:[#allocation4 + $0x19] ss:$8 sps:$4 sm:$0xff]  }
 0x2ab   : > { %4842 = vmatpush3.bf16.msra.mxu1 %v4839_v33  ;;  %v5033_v30 = vld [vmem:[#allocation4 + $0x1a] ss:$8 sps:$4 sm:$0xff]  }
 0x2ac   : > { %4844 = vmatprep.subr.bf16.mxu1 %v4843_v2  ;;  %v5034_v42 = vld [vmem:[#allocation4 + $0x10] ss:$8 sps:$4 sm:$0xff]   ;;  %v5035_v25 = vld [vmem:[#allocation4 + $0x20] ss:$8 sps:$4 sm:$0xff]  }
 0x2ad   : > { %v5036_v28 = vld [vmem:[#allocation4 + $0x11] ss:$8 sps:$4 sm:$0xff]   ;;  %v5037_v27 = vld [vmem:[#allocation4 + $0x21] ss:$8 sps:$4 sm:$0xff]  }
 0x2ae   : > { %4712 = vmatmul.mubr.msk.f32.vlgmr.msra.gmra.mrb[8].mxu1 %vm3207_vm3, %v5025_v40  ;;  %v5038_v3 = vld [vmem:[#allocation4 + $0x12] ss:$8 sps:$4 sm:$0xff]   ;;  %v5039_v22 = vld [vmem:[#allocation4 + $0x22] ss:$8 sps:$4 sm:$0xff]  }
 0x2af   : > { %4846 = vmatpush3.bf16.msra.mxu1 %v4843_v2  ;;  %4722 = vmatprep.mubr.msk.f32.mxu1 %vm3207_vm3, %v5026_v58 }
 0x2b0   : > { %4848 = vmatprep.subr.bf16.mxu1 %v4847_v9 }
 0x2b3   : > { %4850 = vmatpush3.bf16.msra.mxu1 %v4847_v9 }
 0x2b4   : > { %4852 = vmatprep.subr.bf16.mxu1 %v4851_v10 }
 0x2b6   : > { %4723 = vmatmul.mubr.msk.f32.vlgmr.msra.gmra.mrb[8].mxu1 %vm3207_vm3, %v5027_v51  ;;  %v4134_v51 = vld [vmem:[%s6513_s10] sm:$0x3] }
 0x2b7   : > { %4854 = vmatpush3.bf16.msra.mxu1 %v4851_v10  ;;  %4733 = vmatprep.mubr.msk.f32.mxu1 %vm3207_vm3, %v5028_v0 }
 0x2b8   : > { %4856 = vmatprep.subr.bf16.mxu1 %v4855_v31 }
 0x2bb   : > { %4858 = vmatpush3.bf16.msra.mxu1 %v4855_v31 }
 0x2bc   : > { %4860 = vmatprep.subr.bf16.mxu1 %v4859_v52 }
 0x2be   : > { %4734 = vmatmul.mubr.msk.f32.vlgmr.msra.gmra.mrb[8].mxu1 %vm3207_vm3, %v5029_v55  ;;  %v4156_v55 = vand.u32 127, %v4155_v56 }
 0x2bf   : > { %4862 = vmatpush3.bf16.msra.mxu1 %v4859_v52  ;;  %4744 = vmatprep.mubr.msk.f32.mxu1 %vm3207_vm3, %v5030_v44 }
 0x2c0   : > { %4864 = vmatprep.subr.bf16.mxu1 %v4863_v5 }
 0x2c3   : > { %4866 = vmatpush3.bf16.msra.mxu1 %v4863_v5  ;;  %v4158_v5 = vshrl.u32 %v4155_v56, 7 }
 0x2c4   : > { %4868 = vmatprep.subr.bf16.mxu1 %v4867_v43 }
 0x2c5   : > { %v4159_v44 = vsub.s32 %v4156_v55, %v4158_v5 }
 0x2c6   : > { %4745 = vmatmul.mubr.msk.f32.vlgmr.msra.gmra.mrb[8].mxu1 %vm3207_vm3, %v5031_v21 }
 0x2c7   : > { %4870 = vmatpush3.bf16.msra.mxu1 %v4867_v43  ;;  %4755 = vmatprep.mubr.msk.f32.mxu1 %vm3207_vm3, %v5032_v12 }
 0x2c8   : > { %4872 = vmatprep.subr.bf16.mxu1 %v4871_v46 }
 0x2cb   : > { %4874 = vmatpush3.bf16.msra.mxu1 %v4871_v46 }
 0x2cc   : > { %4876 = vmatprep.subr.bf16.mxu1 %v4875_v60 }
 0x2ce   : > { %4756 = vmatmul.mubr.msk.f32.vlgmr.msra.gmra.mrb[8].mxu1 %vm3207_vm3, %v5033_v30 }
 0x2cf   : > { %4878 = vmatpush3.bf16.msra.mxu1 %v4875_v60  ;;  %4766 = vmatprep.mubr.msk.f32.mxu1 %vm3207_vm3, %v5034_v42 }
 0x2d0   : > { %4880 = vmatprep.subr.bf16.mxu1 %v4879_v50 }
 0x2d3   : > { %4882 = vmatpush3.bf16.msra.mxu1 %v4879_v50 }
 0x2d4   : > { %4884 = vmatprep.subr.bf16.mxu1 %v4883_v32 }
 0x2d6   : > { %4767 = vmatmul.mubr.msk.f32.vlgmr.msra.gmra.mrb[8].mxu1 %vm3207_vm3, %v5035_v25 }
 0x2d7   : > { %4886 = vmatpush3.bf16.msra.mxu1 %v4883_v32  ;;  %4777 = vmatprep.mubr.msk.f32.mxu1 %vm3207_vm3, %v5036_v28 }
 0x2d8   : > { %4888 = vmatprep.subr.bf16.mxu1 %v4887_v14 }
 0x2db   : > { %4890 = vmatpush3.bf16.msra.mxu1 %v4887_v14 }
 0x2dc   : > { %4892 = vmatprep.subr.bf16.mxu1 %v4891_v45 }
 0x2de   : > { %4778 = vmatmul.mubr.msk.f32.vlgmr.msra.gmra.mrb[8].mxu1 %vm3207_vm3, %v5037_v27 }
 0x2df   : > { %4894 = vmatpush3.bf16.msra.mxu1 %v4891_v45  ;;  %4788 = vmatprep.mubr.msk.f32.mxu1 %vm3207_vm3, %v5038_v3 }
 0x2e0   : > { %4896 = vmatprep.subr.bf16.mxu1 %v4895_v35 }
 0x2e3   : > { %4898 = vmatpush3.bf16.msra.mxu1 %v4895_v35 }
 0x2e6   : > { %4789 = vmatmul.mubr.msk.f32.vlgmr.msra.gmra.mrb[8].mxu1 %vm3207_vm3, %v5039_v22 }
 0x313   : > { %v4148_v11 = vpop.permute.xlu1 %4147 }
 0x3b9   : > { %v4790_v8 = vpop.f32.mrb[8].mxu1 }
 0x3ba   : > { %v4111_v59 = vmul.f32 %v4790_v8, %v4397_v61  ;;  %v4092_v19 = vpop.f32.mrb[9].mxu1 }
 0x3bb   : > { %v4110_v33 = vmul.f32 %v4397_v61, %v4092_v19 }
 0x3bc   : > { %v4120_v15 = vadd.f32 %v4398_v23, %v4111_v59 }
 0x3bd   : > { %v4119_v20 = vadd.f32 %v4398_v23, %v4110_v33 }
 0x3be   : > { %v4122_v2 = vmax.f32 %v4120_v15, 0.0 }
 0x3bf   : > { %v4121_v48 = vmax.f32 %v4119_v20, 0.0 }
 0x3c0   : > { %v4125_v16 = vsel %vm4123_vm5, %v4122_v2, 0.0 }
 0x3c1   : > { %v4124_v40 = vsel %vm4123_vm5, %v4121_v48, 0.0 }
 0x3c2   : > { %v4126_v9 = vadd.f32 %v4125_v16, %v4124_v40 }
 0x3c4   : > { %v4127_v58 = vrot.slane %v4126_v9, 4 }
 0x3c6   : > { %v4128_v47 = vadd.f32 %v4127_v58, %v4126_v9 }
 0x3c8   : > { %v4129_v6 = vrot.slane %v4128_v47, 2 }
 0x3ca   : > { %v4130_v10 = vadd.f32 %v4129_v6, %v4128_v47 }
 0x3cc   : > { %v4131_v38 = vrot.slane %v4130_v10, 1 }
 0x3ce   : > { %v4132_v26 = vadd.f32 %v4131_v38, %v4130_v10 }
 0x3d0   : > { %v4133_v31 = vmul.f32 0.0625, %v4132_v26 }
 0x3d2   : > { %v4135_v0 = vmul.f32 %v4134_v51, %v4133_v31 }
 0x3d4   : > { %v4137_v13 = vsel %vm4136_vm6, %v4135_v0, 0.0 }
 0x3d5   : > { %4138 = vadd.xlane.f32.xlu0 %v4137_v13 }
 0x462   : > { %v4139_v52 = vpop.xlane.xlu0 %4138 }
 0x463   : > { %v4150_v54 = vadd.f32 %v4148_v11, %v4139_v52 }
 0x465   : > { %4153 = vperm.xlu1 %5021, %v4150_v54  }
 0x4e4   : > { %v4154_v41 = vpop.permute.xlu1 %4153 }
 0x4e5   : > { %v4160_v7 = vrot.slane %v4154_v41, %v4159_v44 }
 0x4e7   : > { %4163 = vst.msk [vmem:[%s405_s17] sm:$0x1] %vm4162_vm7, %v4160_v7 }
 0x4e8   : > { %5064 = shalt.err (!%p5061_p3)
}
 0x4e9   : > { %s5065_s15 = scalar_lea.hbm %s6461_s0, 16  ;;  %s5069_s19 = scalar_lea.hbm %s6515_s12, 32 }
 0x4ea   : > { %p5066_p4 = scmp.ne.s32.totalorder %s6461_s0, %s5065_s15  ;;  %p5070_p9 = scmp.lt.u32.totalorder %s6461_s0, %s6515_s12 }
 0x4eb   : > { %p5071_p10 = scmp.lt.u32.totalorder %s5069_s19, %s5065_s15  ;;  %p5073_p12 = scmp.lt.u32.totalorder %s5065_s15, %s6461_s0 }
 0x4ec   : > { %p5067_p7 = pnand %p5066_p4, %p5221_p5 }
 0x4ed   : > { %p5072_p11 = por %p5071_p10, %p5070_p9 }
 0x4ee   : > { %p5068_p8 = pneg %p5067_p7 }
 0x4ef   : > { %p5074_p13 = por %p5073_p12, %p5072_p11 }
 0x4f1   : > { %p5075_p0 = pnand %p5074_p13, %p5068_p8 }
 0x4f3   : > { %5078 = shalt.err (!%p5075_p0)
}
 0x4f4   : > { %4979 = dma.vmem_to_hbm [thread:$0]  (%p5221_p5), %s6463_s18, 16, %s6461_s0, %s4165_s26  }
 0x4f5 PF: > { %p4985_p1 = scmp.ge.s32.totalorder %s5113_s24, 2  ;;  %s4189_s1 = sand.u32 1, %s5101_s21  }
 0x4f6   : > { %s4190_s28 = scalar_lea.sflag [#allocation8], %s4189_s1 }
 0x4f7   : > { %p4982_p2 = pnand %p4985_p1, %p5225_p6 }
 0x4f9   : > { %5096 = dma.done.wait (!%p4982_p2), %s4190_s28, 16  }
 0x4fa   : > { %5098 = vsyncadd (!%p4982_p2), %s4190_s28, 4294967280  ;;  %p22_p3 = scmp.ge.s32.totalorder %s5208_s27, 4   ;;  %s6522_s21 = smov %s5105_s22 }
 0x4fb   : > { %s6523_s22 = smov %s5109_s23  ;;  %s6524_s23 = smov %s5219_s30 }
 0x4fc   : > { %s6525_s24 = smov %s5208_s27  ;;  %24 = sbr.rel (!%p22_p3) target bundleno = 6 (0x6), region = 165 }
 0x503   :  { %4194 = vsyncpa [#allocation8], 1 }
 0x504   :  { %4196 = vsyncpa [#allocation8 + $0x1], 1 }

</bundles_post_ra>
